<compile_context>
chip_gen: v5e
topology: v5e:2x2
jax: 0.10.0
libtpu: 0.0.40
codegen_flags: <defaults>
</compile_context>

<pallas_src>
import jax
import jax.numpy as jnp
from jax.experimental import pallas as pl
from jax.experimental.pallas import tpu as pltpu


def _round_up(x, m):
    return ((x + m - 1) // m) * m


def stcm_kernel(x_ref, mask_ref, wf_ref, bf_ref, bd_ref, o_ref):
    x = x_ref[...]                                      # (C, tn) f32
    # Single full-width MXU matmul per tile: bf16 operands, f32 accumulation.
    y = jnp.dot(wf_ref[...], x.astype(jnp.bfloat16),
                preferred_element_type=jnp.float32)     # (C, tn) f32
    # Per-voxel scalar gate (1, tn) broadcasts over sublanes; folded enc bias
    # and dec bias are (C, 1) columns broadcasting over lanes; residual; relu.
    y = mask_ref[...] * (y + bf_ref[...]) + bd_ref[...] + x
    o_ref[...] = jnp.maximum(y, 0.0).astype(o_ref.dtype)


def stcm_forward(x_ncthw, mask_pred, w_enc, b_enc, w_dec, b_dec, *, tn=2048):
    """x_ncthw: [N, C, T, H, W] f32, mask_pred: [N, 1, T, H, W] f32.

    w_enc: [inter, C, 1, 1, 1], b_enc: [inter]
    w_dec: [C, inter, 1, 1, 1], b_dec: [C]
    Returns: [N, C, T, H, W] f32 (same semantics as the PyTorch module).
    """
    N, C, T, H, W = x_ncthw.shape
    inter = w_enc.shape[0]
    THW = T * H * W

    # Spatial tile: lane-dense multiple of 128, capped at 4096 (keeps the
    # double-buffered in+out tiles ~16.5 MiB, inside v7x's default scoped
    # VMEM), and capped at the rounded-up spatial extent for small inputs.
    tn = max(128, min(int(tn), 4096))
    tn = _round_up(tn, 128)
    tn = min(tn, _round_up(THW, 128))

    # ---- glue (plain JAX, zero data movement) ------------------------------
    x_flat = x_ncthw.reshape(N, C, THW)          # trailing dims are contiguous
    m_flat = mask_pred.reshape(N, 1, THW)

    w_enc2d = w_enc.reshape(inter, C)            # [inter, C]
    w_dec2d = w_dec.reshape(C, inter)            # [C, inter]
    hi = jax.lax.Precision.HIGHEST
    wf = jnp.dot(w_dec2d, w_enc2d, precision=hi).astype(jnp.bfloat16)  # [C, C]
    bf = jnp.dot(w_dec2d, b_enc, precision=hi).reshape(C, 1)           # [C, 1]
    bd = b_dec.reshape(C, 1)                                           # [C, 1]

    out_flat = pl.pallas_call(
        stcm_kernel,
        out_shape=jax.ShapeDtypeStruct((N, C, THW), x_flat.dtype),
        grid_spec=pltpu.PrefetchScalarGridSpec(
            num_scalar_prefetch=0,
            grid=(N, pl.cdiv(THW, tn)),
            in_specs=[
                pl.BlockSpec((None, C, tn), lambda n, s: (n, 0, s)),   # x tile
                pl.BlockSpec((None, 1, tn), lambda n, s: (n, 0, s)),   # mask row
                pl.BlockSpec((C, C), lambda n, s: (0, 0)),             # fused weight (resident, bf16)
                pl.BlockSpec((C, 1), lambda n, s: (0, 0)),             # folded enc bias
                pl.BlockSpec((C, 1), lambda n, s: (0, 0)),             # dec bias
            ],
            out_specs=pl.BlockSpec((None, C, tn), lambda n, s: (n, 0, s)),
        ),
        compiler_params=pltpu.CompilerParams(
            # Both axes independent -> shard across TensorCores on v7x.
            dimension_semantics=("parallel", "parallel"),
            # 32 MiB: raises v5e's 16 MiB scoped default (so tn=4096 works),
            # matches v6e/v7x defaults, leaves half of v7x's 64 MiB free.
            vmem_limit_bytes=32 * 1024 * 1024,
        ),
    )(x_flat, m_flat, wf, bf, bd)

    return out_flat.reshape(N, C, T, H, W)


if __name__ == "__main__":
    feats_dim = 256
    inter = feats_dim // 4            # 64
    N, T, H, W = 2, 3, 14, 16         # THW = 672 -> exercises the ragged-tail path

    key = jax.random.PRNGKey(0)
    kx, km, kwe, kbe, kwd, kbd = jax.random.split(key, 6)

    x = jax.random.normal(kx, (N, feats_dim, T, H, W), dtype=jnp.float32)
    mask_pred = jax.nn.sigmoid(
        jax.random.normal(km, (N, 1, T, H, W), dtype=jnp.float32))

    # deterministic parameter init (conv3d kernel_size=1 weights/biases)
    w_enc = 0.05 * jax.random.normal(kwe, (inter, feats_dim, 1, 1, 1), dtype=jnp.float32)
    b_enc = 0.05 * jax.random.normal(kbe, (inter,), dtype=jnp.float32)
    w_dec = 0.05 * jax.random.normal(kwd, (feats_dim, inter, 1, 1, 1), dtype=jnp.float32)
    b_dec = 0.05 * jax.random.normal(kbd, (feats_dim,), dtype=jnp.float32)

    out = stcm_forward(x, mask_pred, w_enc, b_enc, w_dec, b_dec)
    jax.block_until_ready(out)
    assert out.shape == (N, feats_dim, T, H, W)

    # unfused pure-JAX reference of the PyTorch forward (enc -> gate -> dec -> +x -> relu)
    def ref(x, m, we, be, wd, bd):
        hi = jax.lax.Precision.HIGHEST
        xe = jnp.einsum("ncthw,oc->nothw", x, we.reshape(inter, feats_dim),
                        precision=hi) + be[None, :, None, None, None]
        xg = xe * m                                       # mask broadcasts over inter channels
        xd = jnp.einsum("ncthw,oc->nothw", xg, wd.reshape(feats_dim, inter),
                        precision=hi) + bd[None, :, None, None, None]
        return jnp.maximum(xd + x, 0.0)

    ref_out = ref(x, mask_pred, w_enc, b_enc, w_dec, b_dec)
    err = float(jnp.max(jnp.abs(out - ref_out)))
    # bf16 MXU operands (f32 accumulate) add ~1e-3-scale rounding vs the f32
    # HIGHEST reference; 1e-2 still catches any structural error (O(0.1)+).
    assert jnp.allclose(out, ref_out, atol=1e-2, rtol=1e-2), err

    print("KERNEL_OK")
</pallas_src>

<mosaic_0001>
module attributes {stable_mosaic.version = 11 : i64} {
  func.func @stcm_kernel(%arg0: i32, %arg1: i32, %arg2: memref<1x256x768xf32, #tpu.memory_space<vmem>>, %arg3: memref<1x1x768xf32, #tpu.memory_space<vmem>>, %arg4: memref<256x256xbf16, #tpu.memory_space<vmem>>, %arg5: memref<256x1xf32, #tpu.memory_space<vmem>>, %arg6: memref<256x1xf32, #tpu.memory_space<vmem>>, %arg7: memref<1x256x768xf32, #tpu.memory_space<vmem>>) attributes {dimension_semantics = [#tpu.dimension_semantics<parallel>, #tpu.dimension_semantics<parallel>], iteration_bounds = array<i64: 2, 1>, scalar_prefetch = 0 : i64, scratch_operands = 0 : i64, tpu.core_type = #tpu.core_type<tc>, window_params = [{transform_indices = @transform_0, window_bounds = array<i64: 1, 256, 768>}, {transform_indices = @transform_1, window_bounds = array<i64: 1, 1, 768>}, {pipeline_mode = #tpu.pipeline_mode<synchronous>, transform_indices = @transform_2, window_bounds = array<i64: 256, 256>}, {pipeline_mode = #tpu.pipeline_mode<synchronous>, transform_indices = @transform_3, window_bounds = array<i64: 256, 1>}, {pipeline_mode = #tpu.pipeline_mode<synchronous>, transform_indices = @transform_4, window_bounds = array<i64: 256, 1>}, {transform_indices = @transform_5, window_bounds = array<i64: 1, 256, 768>}]} {
    %c0 = arith.constant 0 : index
    %c0_0 = arith.constant 0 : index
    %c0_1 = arith.constant 0 : index
    %0 = vector.load %arg2[%c0, %c0_0, %c0_1] : memref<1x256x768xf32, #tpu.memory_space<vmem>>, vector<1x256x768xf32>
    %1 = vector.shape_cast %0 : vector<1x256x768xf32> to vector<256x768xf32>
    %c0_2 = arith.constant 0 : index
    %c0_3 = arith.constant 0 : index
    %2 = vector.load %arg4[%c0_2, %c0_3] : memref<256x256xbf16, #tpu.memory_space<vmem>>, vector<256x256xbf16>
    %3 = arith.truncf %1 : vector<256x768xf32> to vector<256x768xbf16>
    %cst = arith.constant dense<0.000000e+00> : vector<256x768xf32>
    %4 = tpu.matmul %2, %3, %cst {dimension_numbers = #tpu.dot_dimension_numbers<[1], [0], [0], [1], [0, 0, 1, 1], [], []>} : vector<256x256xbf16>, vector<256x768xbf16>, vector<256x768xf32> -> vector<256x768xf32>
    %c0_4 = arith.constant 0 : index
    %c0_5 = arith.constant 0 : index
    %c0_6 = arith.constant 0 : index
    %5 = vector.load %arg3[%c0_4, %c0_5, %c0_6] : memref<1x1x768xf32, #tpu.memory_space<vmem>>, vector<1x1x768xf32>
    %6 = vector.shape_cast %5 : vector<1x1x768xf32> to vector<1x768xf32>
    %c0_7 = arith.constant 0 : index
    %c0_8 = arith.constant 0 : index
    %7 = vector.load %arg5[%c0_7, %c0_8] : memref<256x1xf32, #tpu.memory_space<vmem>>, vector<256x1xf32>
    %8 = vector.broadcast %7 : vector<256x1xf32> to vector<256x768xf32>
    %9 = arith.addf %4, %8 : vector<256x768xf32>
    %10 = vector.broadcast %6 : vector<1x768xf32> to vector<256x768xf32>
    %11 = arith.mulf %10, %9 : vector<256x768xf32>
    %c0_9 = arith.constant 0 : index
    %c0_10 = arith.constant 0 : index
    %12 = vector.load %arg6[%c0_9, %c0_10] : memref<256x1xf32, #tpu.memory_space<vmem>>, vector<256x1xf32>
    %13 = vector.broadcast %12 : vector<256x1xf32> to vector<256x768xf32>
    %14 = arith.addf %11, %13 : vector<256x768xf32>
    %15 = arith.addf %14, %1 : vector<256x768xf32>
    %cst_11 = arith.constant 0.000000e+00 : f32
    %16 = vector.broadcast %cst_11 : f32 to vector<256x768xf32>
    %17 = arith.maximumf %15, %16 : vector<256x768xf32>
    %c0_12 = arith.constant 0 : index
    %c0_13 = arith.constant 0 : index
    %c0_14 = arith.constant 0 : index
    %18 = vector.load %arg7[%c0_12, %c0_13, %c0_14] : memref<1x256x768xf32, #tpu.memory_space<vmem>>, vector<1x256x768xf32>
    %19 = vector.shape_cast %18 : vector<1x256x768xf32> to vector<256x768xf32>
    %20 = vector.shape_cast %17 : vector<256x768xf32> to vector<1x256x768xf32>
    tpu.vector_store %arg7[%c0_12, %c0_13, %c0_14], %20 {strides = array<i32>} : memref<1x256x768xf32, #tpu.memory_space<vmem>>, vector<1x256x768xf32>,
    return
  }
  func.func @transform_0(%arg0: i32, %arg1: i32) -> (i32, i32, i32) {
    %c0_i32 = arith.constant 0 : i32
    %c0_i32_0 = arith.constant 0 : i32
    return %arg0, %c0_i32, %arg1 : i32, i32, i32
  }
  func.func @transform_1(%arg0: i32, %arg1: i32) -> (i32, i32, i32) {
    %c0_i32 = arith.constant 0 : i32
    %c0_i32_0 = arith.constant 0 : i32
    return %arg0, %c0_i32, %arg1 : i32, i32, i32
  }
  func.func @transform_2(%arg0: i32, %arg1: i32) -> (i32, i32) {
    %c0_i32 = arith.constant 0 : i32
    %c0_i32_0 = arith.constant 0 : i32
    %c0_i32_1 = arith.constant 0 : i32
    return %c0_i32, %c0_i32_0 : i32, i32
  }
  func.func @transform_3(%arg0: i32, %arg1: i32) -> (i32, i32) {
    %c0_i32 = arith.constant 0 : i32
    %c0_i32_0 = arith.constant 0 : i32
    %c0_i32_1 = arith.constant 0 : i32
    return %c0_i32, %c0_i32_0 : i32, i32
  }
  func.func @transform_4(%arg0: i32, %arg1: i32) -> (i32, i32) {
    %c0_i32 = arith.constant 0 : i32
    %c0_i32_0 = arith.constant 0 : i32
    %c0_i32_1 = arith.constant 0 : i32
    return %c0_i32, %c0_i32_0 : i32, i32
  }
  func.func @transform_5(%arg0: i32, %arg1: i32) -> (i32, i32, i32) {
    %c0_i32 = arith.constant 0 : i32
    %c0_i32_0 = arith.constant 0 : i32
    return %arg0, %c0_i32, %arg1 : i32, i32, i32
  }
}

</mosaic_0001>

<bundles_post_ra>
// kernel: tpu_custom_call.1
= control target key start
LH: loop header
LB: loop body
LE: loop exit
PB: predicated region body
PF: predicated region fallthrough
CT: control target
= control target key end

     0   :  { %s3740_s18 = smov 0   ;;  %s3742_s19 = smov 0   ;;  %s5767_s0 = inlined_call_operand.vmem [shape: f32[2,256,672], index: 0, kind: input, shape index: {}]   ;;  %s5768_s1 = inlined_call_operand.vmem [shape: f32[2,1,672], index: 1, kind: input, shape index: {}]   ;;  %s5769_s2 = inlined_call_operand.vmem [shape: bf16[256,256], index: 2, kind: input, shape index: {}]   ;;  %s5770_s3 = inlined_call_operand.vmem [shape: f32[256,1], index: 3, kind: input, shape index: {}]   ;;  %s5771_s4 = inlined_call_operand.vmem [shape: f32[256,1], index: 4, kind: input, shape index: {}]   ;;  %s5772_s5 = inlined_call_operand.vmem [shape: f32[2,256,672], index: 5, kind: output, shape index: {}]  }
   0x1   :  { %s3744_s20 = smov 0  }
   0x2 LB: > { %s27_s21 = sadd.s32 1, %s3703_s19  ;;  %p3309_p0 = scmp.ge.s32.totalorder %s3707_s20, 1  ;;  %s3707_s20 = sphi %s3744_s20, %s15_s20   ;;  %s3703_s19 = sphi %s3742_s19, %s6126_s19   ;;  %s3699_s18 = sphi %s3740_s18, %s6125_s18  }
   0x3   : > { %p29_p1 = scmp.ge.s32.totalorder %s27_s21, 2  ;;  %p224_p2 = scmp.lt.s32.totalorder %s3707_s20, 3 }
   0x5   : > { %s6128_s21 = smov (%p29_p1, %s27_s21), 0  ;;  %p225_p3 = pnand %p3309_p0, %p224_p2 }
   0x7   : > { %228 = sbr.rel (%p225_p3) target bundleno = 959 (0x3bf), region = 40 }
   0xc   : > { %v620_v0 = vld [vmem:[%s5770_s3 + $0x10] sm:$0xff]  ;;  %v618_v1 = vld [vmem:[%s5770_s3] sm:$0xff]  ;;  %p269_p4 = scmp.lt.s32.totalorder %s3699_s18, 1  ;;  %v3709_v2 = vmov 0   ;;  %v621_v4 = vld [vmem:[%s5770_s3 + $0x18] sm:$0xff] }
   0xd   : > { %3502 = vset.pattern.permute.xlu1 %v3709_v2  ;;  %3501 = vset.pattern.permute.xlu0 %v3709_v2  ;;  %v622_v3 = vld [vmem:[%s5770_s3 + $0x20] sm:$0xff]  ;;  %v619_v5 = vld [vmem:[%s5770_s3 + $0x8] sm:$0xff]  ;;  %v625_v33 = vld [vmem:[%s5770_s3 + $0x38] sm:$0xff] }
   0xe   : > { %662 = vperm.xlu1 %3502, %v620_v0   ;;  %652 = vperm.xlu0 %3501, %v618_v1   ;;  %s6130_s18 = smov (!%p269_p4, %s3699_s18), 1  ;;  %v623_v13 = vld [vmem:[%s5770_s3 + $0x28] sm:$0xff]  ;;  %v624_v40 = vld [vmem:[%s5770_s3 + $0x30] sm:$0xff]  ;;  %v626_v53 = vld [vmem:[%s5770_s3 + $0x40] sm:$0xff] }
   0xf   : > { %3503 = vset.pattern.permute.xlu2 %v3709_v2  ;;  %s3474_s28 = smul.u32 1536, %s6130_s18  ;;  %v628_v2 = vld [vmem:[%s5770_s3 + $0x50] sm:$0xff] }
  0x10   : > { %672 = vperm.xlu2 %3503, %v622_v3   ;;  %v627_v3 = vld [vmem:[%s5770_s3 + $0x48] sm:$0xff]  ;;  %s3475_s6 = smul.u32 6, %s6130_s18 }
  0x11   : > { %s3781_s10 = scalar_lea.vmem %s5767_s0, %s3474_s28  ;;  %s4325_s16 = scalar_lea.vmem %s5772_s5, %s3474_s28 }
  0x12   : > { %v381_v6 = vld [vmem:[%s3781_s10 + $0x2a0] sm:$0xff]  ;;  %v387_v7 = vld [vmem:[%s3781_s10 + $0x2d0] sm:$0xff]  ;;  %v382_v11 = vld [vmem:[%s3781_s10 + $0x2a8] sm:$0xff]  ;;  %s4264_s24 = scalar_lea.vmem %s5768_s1, %s3475_s6 }
  0x13   : > { %v477_v8 = vld [vmem:[%s3781_s10 + $0x5a0] sm:$0xff]  ;;  %v563_v9 = vpack.c.bf16 %v387_v7, %v381_v6  ;;  %v483_v10 = vld [vmem:[%s3781_s10 + $0x5d0] sm:$0xff]  ;;  %v388_v12 = vld [vmem:[%s3781_s10 + $0x2d8] sm:$0xff] }
  0x14   : > { %v611_v14 = vpack.c.bf16 %v483_v10, %v477_v8  ;;  %v564_v15 = vpack.c.bf16 %v388_v12, %v382_v11  ;;  %v478_v16 = vld [vmem:[%s3781_s10 + $0x5a8] sm:$0xff]  ;;  %v484_v17 = vld [vmem:[%s3781_s10 + $0x5d8] sm:$0xff]  ;;  %v369_v18 = vld [vmem:[%s3781_s10 + $0x240] sm:$0xff] }
  0x15   : > { %v612_v19 = vpack.c.bf16 %v484_v17, %v478_v16  ;;  %v375_v20 = vld [vmem:[%s3781_s10 + $0x270] sm:$0xff]  ;;  %v465_v21 = vld [vmem:[%s3781_s10 + $0x540] sm:$0xff]  ;;  %970 = vmatpush.bf16.msra.mxu0 %v563_v9  ;;  %v370_v25 = vld [vmem:[%s3781_s10 + $0x248] sm:$0xff] }
  0x16   : > { %667 = vperm.xlu1 %3502, %v621_v4   ;;  %657 = vperm.xlu0 %3501, %v619_v5   ;;  %v471_v22 = vld [vmem:[%s3781_s10 + $0x570] sm:$0xff]  ;;  %v557_v23 = vpack.c.bf16 %v375_v20, %v369_v18  ;;  %v376_v26 = vld [vmem:[%s3781_s10 + $0x278] sm:$0xff]  ;;  %v466_v27 = vld [vmem:[%s3781_s10 + $0x548] sm:$0xff] }
  0x17   : > { %1059 = vmatpush.bf16.msra.mxu1 %v611_v14  ;;  %v605_v24 = vpack.c.bf16 %v471_v22, %v465_v21  ;;  %1148 = vmatpush.bf16.msra.mxu2 %v564_v15  ;;  %v558_v28 = vpack.c.bf16 %v376_v26, %v370_v25  ;;  %v472_v29 = vld [vmem:[%s3781_s10 + $0x578] sm:$0xff]  ;;  %v357_v30 = vld [vmem:[%s3781_s10 + $0x1e0] sm:$0xff]  ;;  %v363_v31 = vld [vmem:[%s3781_s10 + $0x210] sm:$0xff] }
  0x18   : > { %1237 = vmatpush.bf16.msra.mxu3 %v612_v19  ;;  %v606_v32 = vpack.c.bf16 %v472_v29, %v466_v27  ;;  %677 = vperm.xlu2 %3503, %v623_v13   ;;  %v453_v34 = vld [vmem:[%s3781_s10 + $0x4e0] sm:$0xff]  ;;  %v459_v35 = vld [vmem:[%s3781_s10 + $0x510] sm:$0xff]  ;;  %v358_v36 = vld [vmem:[%s3781_s10 + $0x1e8] sm:$0xff]  ;;  %v551_v41 = vpack.c.bf16 %v363_v31, %v357_v30 }
  0x19   : > { %v364_v37 = vld [vmem:[%s3781_s10 + $0x218] sm:$0xff]  ;;  %v454_v38 = vld [vmem:[%s3781_s10 + $0x4e8] sm:$0xff]  ;;  %971 = vmatpush.bf16.msra.mxu0 %v557_v23  ;;  %v599_v42 = vpack.c.bf16 %v459_v35, %v453_v34  ;;  %v345_v43 = vld [vmem:[%s3781_s10 + $0x180] sm:$0xff] }
  0x1a   : > { %v460_v39 = vld [vmem:[%s3781_s10 + $0x518] sm:$0xff]  ;;  %v351_v44 = vld [vmem:[%s3781_s10 + $0x1b0] sm:$0xff]  ;;  %v552_v45 = vpack.c.bf16 %v364_v37, %v358_v36  ;;  %v441_v47 = vld [vmem:[%s3781_s10 + $0x480] sm:$0xff] }
  0x1b   : > { %1060 = vmatpush.bf16.msra.mxu1 %v605_v24  ;;  %1149 = vmatpush.bf16.msra.mxu2 %v558_v28  ;;  %v600_v46 = vpack.c.bf16 %v460_v39, %v454_v38  ;;  %v447_v48 = vld [vmem:[%s3781_s10 + $0x4b0] sm:$0xff]  ;;  %v346_v49 = vld [vmem:[%s3781_s10 + $0x188] sm:$0xff]  ;;  %v352_v50 = vld [vmem:[%s3781_s10 + $0x1b8] sm:$0xff]  ;;  %v545_v54 = vpack.c.bf16 %v351_v44, %v345_v43 }
  0x1c   : > { %1238 = vmatpush.bf16.msra.mxu3 %v606_v32  ;;  %v442_v51 = vld [vmem:[%s3781_s10 + $0x488] sm:$0xff]  ;;  %v448_v52 = vld [vmem:[%s3781_s10 + $0x4b8] sm:$0xff]  ;;  %v593_v55 = vpack.c.bf16 %v447_v48, %v441_v47  ;;  %v333_v56 = vld [vmem:[%s3781_s10 + $0x120] sm:$0xff]  ;;  %v546_v58 = vpack.c.bf16 %v352_v50, %v346_v49 }
  0x1d   : > { %972 = vmatpush.bf16.msra.mxu0 %v551_v41  ;;  %v339_v57 = vld [vmem:[%s3781_s10 + $0x150] sm:$0xff]  ;;  %v594_v59 = vpack.c.bf16 %v448_v52, %v442_v51  ;;  %v429_v60 = vld [vmem:[%s3781_s10 + $0x420] sm:$0xff]  ;;  %v334_v62 = vld [vmem:[%s3781_s10 + $0x128] sm:$0xff] }
  0x1e   : > { %687 = vperm.xlu1 %3502, %v625_v33   ;;  %682 = vperm.xlu0 %3501, %v624_v40   ;;  %v435_v61 = vld [vmem:[%s3781_s10 + $0x450] sm:$0xff]  ;;  %v340_v63 = vld [vmem:[%s3781_s10 + $0x158] sm:$0xff]  ;;  %v430_v0 = vld [vmem:[%s3781_s10 + $0x428] sm:$0xff]  ;;  %v539_v4 = vpack.c.bf16 %v339_v57, %v333_v56 }
  0x1f   : > { %1061 = vmatpush.bf16.msra.mxu1 %v599_v42  ;;  %1150 = vmatpush.bf16.msra.mxu2 %v552_v45  ;;  %v436_v1 = vld [vmem:[%s3781_s10 + $0x458] sm:$0xff]  ;;  %v587_v5 = vpack.c.bf16 %v435_v61, %v429_v60  ;;  %v3842_v6 = vld [vmem:[%s3781_s10 + $0xc0] sm:$0xff]  ;;  %v327_v7 = vld [vmem:[%s3781_s10 + $0xf0] sm:$0xff]  ;;  %v540_v8 = vpack.c.bf16 %v340_v63, %v334_v62 }
  0x20   : > { %1239 = vmatpush.bf16.msra.mxu3 %v600_v46  ;;  %692 = vperm.xlu2 %3503, %v626_v53   ;;  %v588_v9 = vpack.c.bf16 %v436_v1, %v430_v0  ;;  %v417_v10 = vld [vmem:[%s3781_s10 + $0x3c0] sm:$0xff]  ;;  %v423_v11 = vld [vmem:[%s3781_s10 + $0x3f0] sm:$0xff]  ;;  %v3848_v12 = vld [vmem:[%s3781_s10 + $0xc8] sm:$0xff]  ;;  %v533_v17 = vpack.c.bf16 %v327_v7, %v3842_v6 }
  0x21   : > { %973 = vmatpush.bf16.msra.mxu0 %v545_v54  ;;  %v328_v13 = vld [vmem:[%s3781_s10 + $0xf8] sm:$0xff]  ;;  %v418_v14 = vld [vmem:[%s3781_s10 + $0x3c8] sm:$0xff]  ;;  %v581_v18 = vpack.c.bf16 %v423_v11, %v417_v10  ;;  %v3858_v19 = vld [vmem:[%s3781_s10 + $0x60] sm:$0xff] }
  0x22   : > { %v424_v15 = vld [vmem:[%s3781_s10 + $0x3f8] sm:$0xff]  ;;  %v3861_v20 = vld [vmem:[%s3781_s10 + $0x90] sm:$0xff]  ;;  %v534_v21 = vpack.c.bf16 %v328_v13, %v3848_v12  ;;  %v405_v23 = vld [vmem:[%s3781_s10 + $0x360] sm:$0xff] }
  0x23   : > { %1062 = vmatpush.bf16.msra.mxu1 %v593_v55  ;;  %1151 = vmatpush.bf16.msra.mxu2 %v546_v58  ;;  %v629_v16 = vld [vmem:[%s5770_s3 + $0x58] sm:$0xff]  ;;  %v582_v22 = vpack.c.bf16 %v424_v15, %v418_v14  ;;  %v411_v24 = vld [vmem:[%s3781_s10 + $0x390] sm:$0xff]  ;;  %v3867_v25 = vld [vmem:[%s3781_s10 + $0x68] sm:$0xff]  ;;  %v527_v33 = vpack.c.bf16 %v3861_v20, %v3858_v19 }
  0x24   : > { %1240 = vmatpush.bf16.msra.mxu3 %v594_v59  ;;  %v631_v26 = vld [vmem:[%s5770_s3 + $0x68] sm:$0xff]  ;;  %v3873_v27 = vld [vmem:[%s3781_s10 + $0x98] sm:$0xff]  ;;  %v630_v30 = vld [vmem:[%s5770_s3 + $0x60] sm:$0xff]  ;;  %v575_v34 = vpack.c.bf16 %v411_v24, %v405_v23 }
  0x25   : > { %974 = vmatpush.bf16.msra.mxu0 %v539_v4  ;;  %v406_v28 = vld [vmem:[%s3781_s10 + $0x368] sm:$0xff]  ;;  %v412_v29 = vld [vmem:[%s3781_s10 + $0x398] sm:$0xff]  ;;  %v3881_v31 = vld [vmem:[%s3781_s10] sm:$0xff]  ;;  %v528_v38 = vpack.c.bf16 %v3873_v27, %v3867_v25 }
  0x26   : > { %702 = vperm.xlu1 %3502, %v628_v2   ;;  %697 = vperm.xlu0 %3501, %v627_v3   ;;  %v3884_v32 = vld [vmem:[%s3781_s10 + $0x30] sm:$0xff]  ;;  %v393_v35 = vld [vmem:[%s3781_s10 + $0x300] sm:$0xff]  ;;  %v3891_v37 = vld [vmem:[%s3781_s10 + $0x8] sm:$0xff]  ;;  %v576_v39 = vpack.c.bf16 %v412_v29, %v406_v28 }
  0x27   : > { %1063 = vmatpush.bf16.msra.mxu1 %v587_v5  ;;  %1152 = vmatpush.bf16.msra.mxu2 %v540_v8  ;;  %v399_v36 = vld [vmem:[%s3781_s10 + $0x330] sm:$0xff]  ;;  %v3896_v40 = vld [vmem:[%s3781_s10 + $0x38] sm:$0xff]  ;;  %v394_v41 = vld [vmem:[%s3781_s10 + $0x308] sm:$0xff]  ;;  %v521_v49 = vpack.c.bf16 %v3884_v32, %v3881_v31 }
  0x28   : > { %1241 = vmatpush.bf16.msra.mxu3 %v588_v9  ;;  %707 = vperm.xlu2 %3503, %v629_v16   ;;  %v400_v42 = vld [vmem:[%s3781_s10 + $0x338] sm:$0xff]  ;;  %v632_v43 = vld [vmem:[%s5770_s3 + $0x70] sm:$0xff]  ;;  %v3314_v44 = vld [vmem:[%s5769_s2] sm:$0xf]  ;;  %v569_v50 = vpack.c.bf16 %v399_v36, %v393_v35  ;;  %v522_v54 = vpack.c.bf16 %v3896_v40, %v3891_v37 }
  0x29   : > { %975 = vmatpush.bf16.msra.mxu0 %v533_v17  ;;  %v384_v45 = vld [vmem:[%s3781_s10 + $0x2b8] sm:$0xff]  ;;  %v390_v46 = vld [vmem:[%s3781_s10 + $0x2e8] sm:$0xff]  ;;  %v3442_v52 = vld [vmem:[%s5769_s2 + $0x4] sm:$0xf]  ;;  %v570_v55 = vpack.c.bf16 %v400_v42, %v394_v41 }
  0x2a   : > { %v480_v47 = vld [vmem:[%s3781_s10 + $0x5b8] sm:$0xff]  ;;  %v486_v48 = vld [vmem:[%s3781_s10 + $0x5e8] sm:$0xff]  ;;  %v566_v56 = vpack.c.bf16 %v390_v46, %v384_v45  ;;  %v383_v60 = vld [vmem:[%s3781_s10 + $0x2b0] sm:$0xff] }
  0x2b   : > { %1064 = vmatpush.bf16.msra.mxu1 %v581_v18  ;;  %1153 = vmatpush.bf16.msra.mxu2 %v534_v21  ;;  %v3443_v51 = vld [vmem:[%s5769_s2 + $0x4] sm:$0xf0]  ;;  %v3316_v53 = vld [vmem:[%s5769_s2 + $0x8] sm:$0xf0]  ;;  %v614_v57 = vpack.c.bf16 %v486_v48, %v480_v47  ;;  %v389_v61 = vld [vmem:[%s3781_s10 + $0x2e0] sm:$0xff] }
  0x2c   : > { %1242 = vmatpush.bf16.msra.mxu3 %v582_v22  ;;  %v3923_v58 = vor.u32 %v3443_v51, %v3314_v44  ;;  %v3925_v59 = vor.u32 %v3442_v52, %v3316_v53  ;;  %v479_v62 = vld [vmem:[%s3781_s10 + $0x5b0] sm:$0xff]  ;;  %v485_v63 = vld [vmem:[%s3781_s10 + $0x5e0] sm:$0xff]  ;;  %v633_v1 = vld [vmem:[%s5770_s3 + $0x78] sm:$0xff]  ;;  %v565_v2 = vpack.c.bf16 %v389_v61, %v383_v60 }
  0x2d   : > { %976 = vmatpush.bf16.msra.mxu0 %v527_v33  ;;  %v634_v0 = vld [vmem:[%s5770_s3 + $0x80] sm:$0xff]  ;;  %v635_v3 = vld [vmem:[%s5770_s3 + $0x88] sm:$0xff]  ;;  %v613_v4 = vpack.c.bf16 %v485_v63, %v479_v62  ;;  %v372_v5 = vld [vmem:[%s3781_s10 + $0x258] sm:$0xff] }
  0x2e   : > { %717 = vperm.xlu1 %3502, %v631_v26   ;;  %712 = vperm.xlu0 %3501, %v630_v30   ;;  %5945 = vst [vmem:[#allocation2_spill] sm:$0xff] %v3923_v58  ;;  %v378_v7 = vld [vmem:[%s3781_s10 + $0x288] sm:$0xff]  ;;  %v468_v9 = vld [vmem:[%s3781_s10 + $0x558] sm:$0xff]  ;;  %v371_v13 = vld [vmem:[%s3781_s10 + $0x250] sm:$0xff] }
  0x2f   : > { %1065 = vmatpush.bf16.msra.mxu1 %v575_v34  ;;  %1154 = vmatpush.bf16.msra.mxu2 %v528_v38  ;;  %5946 = vst [vmem:[#allocation3_spill] sm:$0xff] %v3925_v59  ;;  %v560_v8 = vpack.c.bf16 %v378_v7, %v372_v5  ;;  %v474_v10 = vld [vmem:[%s3781_s10 + $0x588] sm:$0xff]  ;;  %v377_v14 = vld [vmem:[%s3781_s10 + $0x280] sm:$0xff]  ;;  %v467_v16 = vld [vmem:[%s3781_s10 + $0x550] sm:$0xff] }
  0x30   : > { %1243 = vmatpush.bf16.msra.mxu3 %v576_v39  ;;  %722 = vperm.xlu2 %3503, %v632_v43   ;;  %v608_v11 = vpack.c.bf16 %v474_v10, %v468_v9  ;;  %v559_v15 = vpack.c.bf16 %v377_v14, %v371_v13  ;;  %v473_v17 = vld [vmem:[%s3781_s10 + $0x580] sm:$0xff]  ;;  %v637_v21 = vld [vmem:[%s5770_s3 + $0x98] sm:$0xff]  ;;  %v636_v22 = vld [vmem:[%s5770_s3 + $0x90] sm:$0xff] }
  0x31   : > { %977 = vmatpush.bf16.msra.mxu0 %v521_v49  ;;  %v607_v18 = vpack.c.bf16 %v473_v17, %v467_v16  ;;  %v638_v23 = vld [vmem:[%s5770_s3 + $0xa0] sm:$0xff]  ;;  %v3322_v24 = vld [vmem:[%s5769_s2 + $0x10] sm:$0xf]  ;;  %v3445_v26 = vld [vmem:[%s5769_s2 + $0x14] sm:$0xf0] }
  0x32   : > { %v3444_v28 = vld [vmem:[%s5769_s2 + $0x14] sm:$0xf]  ;;  %v3324_v29 = vld [vmem:[%s5769_s2 + $0x18] sm:$0xf0]  ;;  %v3973_v30 = vor.u32 %v3445_v26, %v3322_v24  ;;  %v639_v35 = vld [vmem:[%s5770_s3 + $0xa8] sm:$0xff] }
  0x33   : > { %1066 = vmatpush.bf16.msra.mxu1 %v569_v50  ;;  %1155 = vmatpush.bf16.msra.mxu2 %v522_v54  ;;  %v3975_v33 = vor.u32 %v3444_v28, %v3324_v29  ;;  %v640_v34 = vld [vmem:[%s5770_s3 + $0xb0] sm:$0xff]  ;;  %v641_v36 = vld [vmem:[%s5770_s3 + $0xb8] sm:$0xff]  ;;  %v643_v38 = vld [vmem:[%s5770_s3 + $0xc8] sm:$0xff] }
  0x34   : > { %1244 = vmatpush.bf16.msra.mxu3 %v570_v55  ;;  %978 = vmatmul.bf16.vlgmr.msra.gmra.mxu0 %v3923_v58  ;;  %v642_v39 = vld [vmem:[%s5770_s3 + $0xc0] sm:$0xff]  ;;  %v644_v41 = vld [vmem:[%s5770_s3 + $0xd0] sm:$0xff]  ;;  %v3447_v43 = vld [vmem:[%s5769_s2 + $0x24] sm:$0xf0] }
  0x35   : > { %1326 = vmatpush.bf16.msrb.mxu0 %v565_v2  ;;  %v3330_v42 = vld [vmem:[%s5769_s2 + $0x20] sm:$0xf]  ;;  %v3446_v44 = vld [vmem:[%s5769_s2 + $0x24] sm:$0xf]  ;;  %v3332_v45 = vld [vmem:[%s5769_s2 + $0x28] sm:$0xf0] }
  0x36   : > { %1067 = vmatmul.bf16.vlgmr.msra.gmra.mxu1 %v3925_v59  ;;  %1156 = vmatmul.bf16.vlgmr.msra.gmra.mxu2 %v3923_v58  ;;  %v4011_v46 = vor.u32 %v3447_v43, %v3330_v42  ;;  %v4013_v47 = vor.u32 %v3446_v44, %v3332_v45  ;;  %v646_v48 = vld [vmem:[%s5770_s3 + $0xe0] sm:$0xff]  ;;  %v645_v49 = vld [vmem:[%s5770_s3 + $0xd8] sm:$0xff]  ;;  %v647_v50 = vld [vmem:[%s5770_s3 + $0xe8] sm:$0xff] }
  0x37   : > { %1504 = vmatpush.bf16.msrb.mxu2 %v566_v56  ;;  %1245 = vmatmul.bf16.vlgmr.msra.gmra.mxu3 %v3925_v59  ;;  %v360_v51 = vld [vmem:[%s3781_s10 + $0x1f8] sm:$0xff]  ;;  %v366_v52 = vld [vmem:[%s3781_s10 + $0x228] sm:$0xff]  ;;  %v359_v56 = vld [vmem:[%s3781_s10 + $0x1f0] sm:$0xff] }
  0x38   : > { %1593 = vmatpush.bf16.msrb.mxu3 %v614_v57  ;;  %732 = vperm.xlu1 %3502, %v634_v0   ;;  %5947 = vst [vmem:[#allocation4_spill] sm:$0xff] %v4011_v46  ;;  %v554_v53 = vpack.c.bf16 %v366_v52, %v360_v51  ;;  %v456_v54 = vld [vmem:[%s3781_s10 + $0x4f8] sm:$0xff]  ;;  %v462_v55 = vld [vmem:[%s3781_s10 + $0x528] sm:$0xff]  ;;  %v365_v60 = vld [vmem:[%s3781_s10 + $0x220] sm:$0xff] }
  0x39   : > { %727 = vperm.xlu0 %3501, %v633_v1   ;;  %737 = vperm.xlu2 %3503, %v635_v3   ;;  %5948 = vst [vmem:[#allocation5_spill] sm:$0xff] %v4013_v47  ;;  %v602_v57 = vpack.c.bf16 %v462_v55, %v456_v54  ;;  %v455_v61 = vld [vmem:[%s3781_s10 + $0x4f0] sm:$0xff]  ;;  %v461_v62 = vld [vmem:[%s3781_s10 + $0x520] sm:$0xff]  ;;  %v553_v63 = vpack.c.bf16 %v365_v60, %v359_v56  ;;  %v649_v1 = vld [vmem:[%s5770_s3 + $0xf8] sm:$0xff] }
  0x3a   : > { %1415 = vmatpush.bf16.msrb.mxu1 %v613_v4  ;;  %1327 = vmatpush.bf16.msrb.mxu0 %v559_v15  ;;  %v601_v0 = vpack.c.bf16 %v461_v62, %v455_v61  ;;  %v648_v2 = vld [vmem:[%s5770_s3 + $0xf0] sm:$0xff]  ;;  %v2243_v3 = vld [vmem:[%s5771_s4] sm:$0xff]  ;;  %v3449_v5 = vld [vmem:[%s5769_s2 + $0x34] sm:$0xf0] }
  0x3b   : > { %1505 = vmatpush.bf16.msrb.mxu2 %v560_v8  ;;  %v3338_v4 = vld [vmem:[%s5769_s2 + $0x30] sm:$0xf]  ;;  %v3448_v7 = vld [vmem:[%s5769_s2 + $0x34] sm:$0xf]  ;;  %v3340_v8 = vld [vmem:[%s5769_s2 + $0x38] sm:$0xf0] }
  0x3c   : > { %1594 = vmatpush.bf16.msrb.mxu3 %v608_v11  ;;  %v4057_v9 = vor.u32 %v3449_v5, %v3338_v4  ;;  %v4059_v10 = vor.u32 %v3448_v7, %v3340_v8  ;;  %v2245_v11 = vld [vmem:[%s5771_s4 + $0x10] sm:$0xff]  ;;  %v2244_v13 = vld [vmem:[%s5771_s4 + $0x8] sm:$0xff]  ;;  %v2246_v14 = vld [vmem:[%s5771_s4 + $0x18] sm:$0xff] }
  0x3d   : > { %v2248_v16 = vld [vmem:[%s5771_s4 + $0x28] sm:$0xff]  ;;  %v2247_v17 = vld [vmem:[%s5771_s4 + $0x20] sm:$0xff]  ;;  %v2249_v24 = vld [vmem:[%s5771_s4 + $0x30] sm:$0xff] }
  0x3e   : > { %1416 = vmatpush.bf16.msrb.mxu1 %v607_v18  ;;  %1328 = vmatpush.bf16.msrb.mxu0 %v553_v63  ;;  %5949 = vst [vmem:[#allocation6_spill] sm:$0xff] %v4057_v9  ;;  %v3346_v18 = vld [vmem:[%s5769_s2 + $0x40] sm:$0xf]  ;;  %v450_v42 = vld [vmem:[%s3781_s10 + $0x4c8] sm:$0xff]  ;;  %v347_v43 = vld [vmem:[%s3781_s10 + $0x190] sm:$0xff] }
  0x3f   : > { %1506 = vmatpush.bf16.msrb.mxu2 %v554_v53  ;;  %5950 = vst [vmem:[#allocation7_spill] sm:$0xff] %v4059_v10  ;;  %v353_v44 = vld [vmem:[%s3781_s10 + $0x1c0] sm:$0xff]  ;;  %v2253_v53 = vld [vmem:[%s5771_s4 + $0x50] sm:$0xff]  ;;  %v2254_v54 = vld [vmem:[%s5771_s4 + $0x58] sm:$0xff] }
  0x40   : > { %747 = vperm.xlu1 %3502, %v637_v21   ;;  %1595 = vmatpush.bf16.msrb.mxu3 %v602_v57  ;;  %v3451_v21 = vld [vmem:[%s5769_s2 + $0x44] sm:$0xf0]  ;;  %v3354_v55 = vld [vmem:[%s5769_s2 + $0x50] sm:$0xf]  ;;  %v3453_v56 = vld [vmem:[%s5769_s2 + $0x54] sm:$0xf0] }
  0x41   : > { %742 = vperm.xlu0 %3501, %v636_v22   ;;  %752 = vperm.xlu2 %3503, %v638_v23   ;;  %v3450_v22 = vld [vmem:[%s5769_s2 + $0x44] sm:$0xf]  ;;  %v3348_v23 = vld [vmem:[%s5769_s2 + $0x48] sm:$0xf0]  ;;  %v4097_v26 = vor.u32 %v3451_v21, %v3346_v18  ;;  %v3452_v57 = vld [vmem:[%s5769_s2 + $0x54] sm:$0xf]  ;;  %v4145_v63 = vor.u32 %v3453_v56, %v3354_v55 }
  0x42   : > { %1417 = vmatpush.bf16.msrb.mxu1 %v601_v0  ;;  %v4099_v28 = vor.u32 %v3450_v22, %v3348_v23  ;;  %v3356_v60 = vld [vmem:[%s5769_s2 + $0x58] sm:$0xf0]  ;;  %v2256_v7 = vld [vmem:[%s5771_s4 + $0x68] sm:$0xff]  ;;  %v3362_v8 = vld [vmem:[%s5769_s2 + $0x60] sm:$0xf] }
  0x43   : > { %5951 = vst [vmem:[#allocation8_spill] sm:$0xff] %v4097_v26  ;;  %v4147_v0 = vor.u32 %v3452_v57, %v3356_v60  ;;  %v431_v55 = vld [vmem:[%s3781_s10 + $0x430] sm:$0xff] }
  0x44   : > { %983 = vmatmul.bf16.gmra.mxu0 %v3973_v30  ;;  %5952 = vst [vmem:[#allocation9_spill] sm:$0xff] %v4099_v28 }
  0x45   : > { %5956 = vst [vmem:[#allocation13_spill] sm:$0xff] %v4145_v63 }
  0x46   : > { %1072 = vmatmul.bf16.gmra.mxu1 %v3975_v33  ;;  %1161 = vmatmul.bf16.gmra.mxu2 %v3973_v30  ;;  %5957 = vst [vmem:[#allocation14_spill] sm:$0xff] %v4147_v0 }
  0x47   : > { %1250 = vmatmul.bf16.gmra.mxu3 %v3975_v33 }
  0x48   : > { %762 = vperm.xlu1 %3502, %v640_v34   ;;  %v2250_v34 = vld [vmem:[%s5771_s4 + $0x38] sm:$0xff] }
  0x49   : > { %757 = vperm.xlu0 %3501, %v639_v35   ;;  %767 = vperm.xlu2 %3503, %v641_v36   ;;  %v2251_v35 = vld [vmem:[%s5771_s4 + $0x40] sm:$0xff]  ;;  %v348_v36 = vld [vmem:[%s3781_s10 + $0x198] sm:$0xff] }
  0x50   : > { %777 = vperm.xlu1 %3502, %v643_v38   ;;  %v354_v38 = vld [vmem:[%s3781_s10 + $0x1c8] sm:$0xff] }
  0x51   : > { %772 = vperm.xlu0 %3501, %v642_v39   ;;  %782 = vperm.xlu2 %3503, %v644_v41   ;;  %v444_v39 = vld [vmem:[%s3781_s10 + $0x498] sm:$0xff]  ;;  %v548_v41 = vpack.c.bf16 %v354_v38, %v348_v36 }
  0x52   : > { %v596_v45 = vpack.c.bf16 %v450_v42, %v444_v39  ;;  %v432_v36 = vld [vmem:[%s3781_s10 + $0x438] sm:$0xff]  ;;  %v438_v39 = vld [vmem:[%s3781_s10 + $0x468] sm:$0xff] }
  0x53   : > { %1507 = vmatpush.bf16.msrb.mxu2 %v548_v41  ;;  %v590_v41 = vpack.c.bf16 %v438_v39, %v432_v36  ;;  %v2259_v36 = vld [vmem:[%s5771_s4 + $0x80] sm:$0xff] }
  0x54   : > { %988 = vmatmul.bf16.gmra.mxu0 %v4011_v46  ;;  %1596 = vmatpush.bf16.msrb.mxu3 %v596_v45  ;;  %v3457_v45 = vld [vmem:[%s5769_s2 + $0x74] sm:$0xf0]  ;;  %v3458_v39 = vld [vmem:[%s5769_s2 + $0x84] sm:$0xf] }
  0x56   : > { %1077 = vmatmul.bf16.gmra.mxu1 %v4013_v47  ;;  %1166 = vmatmul.bf16.gmra.mxu2 %v4011_v46 }
  0x57   : > { %1255 = vmatmul.bf16.gmra.mxu3 %v4013_v47 }
  0x58   : > { %792 = vperm.xlu1 %3502, %v646_v48   ;;  %v547_v48 = vpack.c.bf16 %v353_v44, %v347_v43  ;;  %1597 = vmatpush.bf16.msrb.mxu3 %v590_v41  ;;  %v3370_v43 = vld [vmem:[%s5769_s2 + $0x70] sm:$0xf]  ;;  %v3380_v41 = vld [vmem:[%s5769_s2 + $0x88] sm:$0xf0] }
  0x59   : > { %787 = vperm.xlu0 %3501, %v645_v49   ;;  %797 = vperm.xlu2 %3503, %v647_v50   ;;  %v443_v49 = vld [vmem:[%s3781_s10 + $0x490] sm:$0xff]  ;;  %v449_v50 = vld [vmem:[%s3781_s10 + $0x4c0] sm:$0xff]  ;;  %v4225_v56 = vor.u32 %v3457_v45, %v3370_v43  ;;  %v2260_v43 = vld [vmem:[%s5771_s4 + $0x88] sm:$0xff] }
  0x5a   : > { %v595_v51 = vpack.c.bf16 %v449_v50, %v443_v49  ;;  %1329 = vmatpush.bf16.msrb.mxu0 %v547_v48  ;;  %v2257_v44 = vld [vmem:[%s5771_s4 + $0x70] sm:$0xff]  ;;  %v3372_v49 = vld [vmem:[%s5769_s2 + $0x78] sm:$0xf0] }
  0x5b   : > { %v3456_v48 = vld [vmem:[%s5769_s2 + $0x74] sm:$0xf]  ;;  %5965 = vst [vmem:[#allocation22_spill] sm:$0xff] %v4225_v56 }
  0x5c   : > { %1418 = vmatpush.bf16.msrb.mxu1 %v595_v51  ;;  %v4227_v57 = vor.u32 %v3456_v48, %v3372_v49  ;;  %v4275_v49 = vor.u32 %v3458_v39, %v3380_v41 }
  0x5e   : > { %5966 = vst [vmem:[#allocation23_spill] sm:$0xff] %v4227_v57 }
  0x5f   : > { %5971 = vst [vmem:[#allocation28_spill] sm:$0xff] %v4275_v49 }
  0x60   : > { %807 = vperm.xlu1 %3502, %v649_v1  }
  0x61   : > { %802 = vperm.xlu0 %3501, %v648_v2   ;;  %2277 = vperm.xlu2 %3503, %v2243_v3   ;;  %v2252_v2 = vld [vmem:[%s5771_s4 + $0x48] sm:$0xff] }
  0x64   : > { %993 = vmatmul.bf16.gmra.mxu0 %v4057_v9 }
  0x66   : > { %1082 = vmatmul.bf16.gmra.mxu1 %v4059_v10  ;;  %1171 = vmatmul.bf16.gmra.mxu2 %v4057_v9 }
  0x67   : > { %1260 = vmatmul.bf16.gmra.mxu3 %v4059_v10 }
  0x68   : > { %2287 = vperm.xlu1 %3502, %v2245_v11   ;;  %v3455_v11 = vld [vmem:[%s5769_s2 + $0x64] sm:$0xf0] }
  0x69   : > { %2282 = vperm.xlu0 %3501, %v2244_v13   ;;  %2292 = vperm.xlu2 %3503, %v2246_v14   ;;  %v3454_v13 = vld [vmem:[%s5769_s2 + $0x64] sm:$0xf]  ;;  %v3364_v14 = vld [vmem:[%s5769_s2 + $0x68] sm:$0xf0]  ;;  %v4183_v18 = vor.u32 %v3455_v11, %v3362_v8 }
  0x6a   : > { %v4074_v15 = vpop.permute.xlu2 %672  ;;  %v4185_v21 = vor.u32 %v3454_v13, %v3364_v14  ;;  %v2255_v11 = vld [vmem:[%s5771_s4 + $0x60] sm:$0xff] }
  0x6b   : > { %5960 = vst [vmem:[#allocation17_spill] sm:$0xff] %v4183_v18 }
  0x6c   : > { %5961 = vst [vmem:[#allocation18_spill] sm:$0xff] %v4185_v21 }
  0x70   : > { %2302 = vperm.xlu1 %3502, %v2248_v16  }
  0x71   : > { %2297 = vperm.xlu0 %3501, %v2247_v17   ;;  %2307 = vperm.xlu2 %3503, %v2249_v24  }
  0x72   : > { %v4101_v29 = vpop.permute.xlu2 %677 }
  0x74   : > { %998 = vmatmul.bf16.gmra.mxu0 %v4097_v26 }
  0x76   : > { %1087 = vmatmul.bf16.gmra.mxu1 %v4099_v28  ;;  %1176 = vmatmul.bf16.gmra.mxu2 %v4097_v26 }
  0x77   : > { %1265 = vmatmul.bf16.gmra.mxu3 %v4099_v28 }
  0x78   : > { %2317 = vperm.xlu1 %3502, %v2251_v35   ;;  %v342_v35 = vld [vmem:[%s3781_s10 + $0x168] sm:$0xff] }
  0x79   : > { %2312 = vperm.xlu0 %3501, %v2250_v34   ;;  %2322 = vperm.xlu2 %3503, %v2252_v2   ;;  %v336_v34 = vld [vmem:[%s3781_s10 + $0x138] sm:$0xff]  ;;  %v437_v2 = vld [vmem:[%s3781_s10 + $0x460] sm:$0xff] }
  0x7a   : > { %v4121_v52 = vpop.permute.xlu2 %692  ;;  %v542_v38 = vpack.c.bf16 %v342_v35, %v336_v34  ;;  %v589_v8 = vpack.c.bf16 %v437_v2, %v431_v55  ;;  %v3378_v35 = vld [vmem:[%s5769_s2 + $0x80] sm:$0xf] }
  0x7b   : > { %5953 = vst [vmem:[#allocation10_spill] sm:$0xff] %v4121_v52 }
  0x7c   : > { %1508 = vmatpush.bf16.msrb.mxu2 %v542_v38  ;;  %1419 = vmatpush.bf16.msrb.mxu1 %v589_v8  ;;  %v3459_v38 = vld [vmem:[%s5769_s2 + $0x84] sm:$0xf0] }
  0x7d   : > { %v4273_v48 = vor.u32 %v3459_v38, %v3378_v35  ;;  %v2258_v35 = vld [vmem:[%s5771_s4 + $0x78] sm:$0xff] }
  0x7f   : > { %5970 = vst [vmem:[#allocation27_spill] sm:$0xff] %v4273_v48 }
  0x80   : > { %v4141_v61 = vpop.permute.xlu1 %662  ;;  %v4143_v62 = vpop.permute.xlu0 %652  ;;  %2332 = vperm.xlu1 %3502, %v2254_v54   ;;  %v341_v54 = vld [vmem:[%s3781_s10 + $0x160] sm:$0xff] }
  0x81   : > { %5954 = vst [vmem:[#allocation11_spill] sm:$0xff] %v4141_v61  ;;  %2327 = vperm.xlu0 %3501, %v2253_v53   ;;  %v335_v53 = vld [vmem:[%s3781_s10 + $0x130] sm:$0xff]  ;;  %2337 = vperm.xlu2 %3503, %v2255_v11  }
  0x82   : > { %5955 = vst [vmem:[#allocation12_spill] sm:$0xff] %v4143_v62  ;;  %v4149_v1 = vpop.permute.xlu2 %707  ;;  %v541_v60 = vpack.c.bf16 %v341_v54, %v335_v53  ;;  %v617_v54 = vld [vmem:[%s4264_s24] sm:$0x3f] }
  0x83   : > { %5958 = vst [vmem:[#allocation15_spill] sm:$0xff] %v4149_v1  ;;  %v4281_v11 = vperm.slane %v617_v54, 0 }
  0x84   : > { %1003 = vmatmul.bf16.gmra.mxu0 %v4145_v63 }
  0x85   : > { %1330 = vmatpush.bf16.msrb.mxu0 %v541_v60 }
  0x86   : > { %1092 = vmatmul.bf16.gmra.mxu1 %v4147_v0  ;;  %1181 = vmatmul.bf16.gmra.mxu2 %v4145_v63 }
  0x87   : > { %1270 = vmatmul.bf16.gmra.mxu3 %v4147_v0  ;;  %v426_v0 = vld [vmem:[%s3781_s10 + $0x408] sm:$0xff] }
  0x88   : > { %v4158_v3 = vpop.permute.xlu1 %667  ;;  %v4160_v4 = vpop.permute.xlu0 %657  ;;  %2347 = vperm.xlu1 %3502, %v2257_v44  }
  0x89   : > { %5959 = vst [vmem:[#allocation16_spill] sm:$0xff] %v4160_v4  ;;  %2342 = vperm.xlu0 %3501, %v2256_v7   ;;  %2352 = vperm.xlu2 %3503, %v2258_v35  }
  0x8a   : > { %v4162_v5 = vpop.permute.xlu2 %722 }
  0x90   : > { %v4179_v16 = vpop.permute.xlu1 %687  ;;  %v4181_v17 = vpop.permute.xlu0 %682  ;;  %2362 = vperm.xlu1 %3502, %v2260_v43  }
  0x91   : > { %2357 = vperm.xlu0 %3501, %v2259_v36  }
  0x93   : > { %v4187_v22 = vpop.permute.xlu2 %737 }
  0x94   : > { %1008 = vmatmul.bf16.gmra.mxu0 %v4183_v18 }
  0x96   : > { %1097 = vmatmul.bf16.gmra.mxu1 %v4185_v21  ;;  %1186 = vmatmul.bf16.gmra.mxu2 %v4183_v18 }
  0x97   : > { %1275 = vmatmul.bf16.gmra.mxu3 %v4185_v21 }
  0x98   : > { %v4193_v23 = vpop.permute.xlu1 %702  ;;  %v4195_v24 = vpop.permute.xlu0 %697 }
  0x99   : > { %5962 = vst [vmem:[#allocation19_spill] sm:$0xff] %v4195_v24 }
  0x9b   : > { %v4201_v42 = vpop.permute.xlu2 %752 }
  0x9c   : > { %5963 = vst [vmem:[#allocation20_spill] sm:$0xff] %v4201_v42 }
  0xa0   : > { %v4218_v50 = vpop.permute.xlu1 %717  ;;  %v4220_v51 = vpop.permute.xlu0 %712 }
  0xa1   : > { %5964 = vst [vmem:[#allocation21_spill] sm:$0xff] %v4220_v51 }
  0xa3   : > { %v4230_v7 = vpop.permute.xlu2 %767 }
  0xa4   : > { %5967 = vst [vmem:[#allocation24_spill] sm:$0xff] %v4230_v7  ;;  %1013 = vmatmul.bf16.gmra.mxu0 %v4225_v56 }
  0xa6   : > { %1102 = vmatmul.bf16.gmra.mxu1 %v4227_v57  ;;  %1191 = vmatmul.bf16.gmra.mxu2 %v4225_v56  ;;  %v330_v56 = vld [vmem:[%s3781_s10 + $0x108] sm:$0xff] }
  0xa7   : > { %1280 = vmatmul.bf16.gmra.mxu3 %v4227_v57  ;;  %v3386_v57 = vld [vmem:[%s5769_s2 + $0x90] sm:$0xf] }
  0xaa   : > { %v4239_v13 = vpop.permute.xlu1 %732 }
  0xab   : > { %5968 = vst [vmem:[#allocation25_spill] sm:$0xff] %v4239_v13  ;;  %v4241_v14 = vpop.permute.xlu0 %727  ;;  %v4243_v34 = vpop.permute.xlu2 %782 }
  0xac   : > { %5969 = vst [vmem:[#allocation26_spill] sm:$0xff] %v4243_v34 }
  0xb1   : > { %v979_v53 = vpop.f32.mrf.mxu0 }
  0xb2   : > { %v4269_v44 = vpop.permute.xlu1 %747  ;;  %v980_v60 = vadd.f32 %v979_v53, %v4143_v62 }
  0xb3   : > { %v4271_v45 = vpop.permute.xlu0 %742  ;;  %v1068_v55 = vpop.f32.mrf.mxu1 }
  0xb4   : > { %v4279_v2 = vpop.permute.xlu2 %797  ;;  %v1069_v8 = vadd.f32 %v1068_v55, %v980_v60  ;;  %1018 = vmatmul.bf16.gmra.mxu0 %v4273_v48  ;;  %v4296_v55 = vperm.slane %v617_v54, 1  ;;  %v3460_v54 = vld [vmem:[%s5769_s2 + $0x94] sm:$0xf] }
  0xb5   : > { %5972 = vst [vmem:[#allocation29_spill] sm:$0xff] %v4279_v2  ;;  %v420_v2 = vld [vmem:[%s3781_s10 + $0x3d8] sm:$0xff] }
  0xb6   : > { %1107 = vmatmul.bf16.gmra.mxu1 %v4275_v49  ;;  %1196 = vmatmul.bf16.gmra.mxu2 %v4273_v48  ;;  %v2051_v36 = vmul.f32 %v4281_v11, %v1069_v8  ;;  %v584_v28 = vpack.c.bf16 %v426_v0, %v420_v2  ;;  %v425_v0 = vld [vmem:[%s3781_s10 + $0x400] sm:$0xff] }
  0xb7   : > { %1285 = vmatmul.bf16.gmra.mxu3 %v4275_v49 }
  0xb8   : > { %1598 = vmatpush.bf16.msrb.mxu3 %v584_v28 }
  0xb9   : > { %v1157_v41 = vpop.f32.mrf.mxu2  ;;  %v981_v60 = vpop.f32.mrf.mxu0 }
  0xba   : > { %v4291_v38 = vpop.permute.xlu1 %762  ;;  %v1246_v43 = vpop.f32.mrf.mxu3  ;;  %v1158_v53 = vadd.f32 %v1157_v41, %v4143_v62  ;;  %v3461_v41 = vld [vmem:[%s5769_s2 + $0x94] sm:$0xf0]  ;;  %v3388_v62 = vld [vmem:[%s5769_s2 + $0x98] sm:$0xf0] }
  0xbb   : > { %5973 = vst [vmem:[#allocation30_spill] sm:$0xff] %v4291_v38  ;;  %v4293_v39 = vpop.permute.xlu0 %757  ;;  %v4298_v49 = vpop.f32.mrf.mxu1  ;;  %v4327_v21 = vor.u32 %v3461_v41, %v3386_v57  ;;  %v4335_v34 = vor.u32 %v3460_v54, %v3388_v62  ;;  %v2262_v57 = vld [vmem:[%s5771_s4 + $0x98] sm:$0xff]  ;;  %v329_v62 = vld [vmem:[%s3781_s10 + $0x100] sm:$0xff]  ;;  %v419_v54 = vld [vmem:[%s3781_s10 + $0x3d0] sm:$0xff] }
  0xbc   : > { %5974 = vst [vmem:[#allocation31_spill] sm:$0xff] %v4293_v39  ;;  %v4300_v35 = vpop.permute.xlu2 %2277  ;;  %v1247_v8 = vadd.f32 %v1246_v43, %v1158_v53  ;;  %v324_v53 = vld [vmem:[%s3781_s10 + $0xd8] sm:$0xff]  ;;  %2372 = vperm.xlu0 %3501, %v2262_v57   ;;  %v583_v26 = vpack.c.bf16 %v425_v0, %v419_v54  ;;  %v3396_v54 = vld [vmem:[%s5769_s2 + $0xa8] sm:$0xf0]  ;;  %v982_v0 = vadd.f32 %v981_v60, %v4160_v4 }
  0xbd   : > { %5975 = vst [vmem:[#allocation32_spill] sm:$0xff] %v4300_v35  ;;  %v2435_v48 = vadd.f32 %v4300_v35, %v2051_v36  ;;  %v536_v18 = vpack.c.bf16 %v330_v56, %v324_v53 }
  0xbe   : > { %v2052_v43 = vmul.f32 %v4296_v55, %v1247_v8  ;;  %5976 = vst [vmem:[#allocation33_spill] sm:$0xff] %v4327_v21  ;;  %1420 = vmatpush.bf16.msrb.mxu1 %v583_v26  ;;  %v3462_v26 = vld [vmem:[%s5769_s2 + $0xa4] sm:$0xf] }
  0xbf   : > { %v2627_v36 = vadd.f32 %v2435_v48, %v3881_v31  ;;  %5979 = vst [vmem:[#allocation36_spill] sm:$0xff] %v4335_v34  ;;  %1509 = vmatpush.bf16.msrb.mxu2 %v536_v18 }
  0xc0   : > { %v2436_v63 = vadd.f32 %v4300_v35, %v2052_v43  ;;  %v323_v35 = vld [vmem:[%s3781_s10 + $0xd0] sm:$0xff] }
  0xc1   : > { %v2819_v8 = vmax.f32 %v2627_v36, 0.0  ;;  %v1159_v56 = vpop.f32.mrf.mxu2  ;;  %v984_v36 = vpop.f32.mrf.mxu0 }
  0xc2   : > { %v4331_v31 = vpop.permute.xlu1 %777  ;;  %v1248_v41 = vpop.f32.mrf.mxu3  ;;  %v2628_v43 = vadd.f32 %v2436_v63, %v3891_v37 }
  0xc3   : > { %5977 = vst [vmem:[#allocation34_spill] sm:$0xff] %v4331_v31  ;;  %v4333_v48 = vpop.permute.xlu0 %772  ;;  %v1073_v53 = vpop.f32.mrf.mxu1  ;;  %v535_v31 = vpack.c.bf16 %v329_v62, %v323_v35 }
  0xc4   : > { %5978 = vst [vmem:[#allocation35_spill] sm:$0xff] %v4333_v48  ;;  %v2820_v2 = vmax.f32 %v2628_v43, 0.0  ;;  %1023 = vmatmul.bf16.gmra.mxu0 %v4327_v21  ;;  %v3394_v43 = vld [vmem:[%s5769_s2 + $0xa0] sm:$0xf]  ;;  %v4384_v48 = vor.u32 %v3462_v26, %v3396_v54 }
  0xc5   : > { %3011 = vst [vmem:[%s4325_s16] sm:$0xff] %v2819_v8  ;;  %1331 = vmatpush.bf16.msrb.mxu0 %v535_v31  ;;  %v3463_v31 = vld [vmem:[%s5769_s2 + $0xa4] sm:$0xf0] }
  0xc6   : > { %1112 = vmatmul.bf16.gmra.mxu1 %v4335_v34  ;;  %1201 = vmatmul.bf16.gmra.mxu2 %v4327_v21  ;;  %3012 = vst [vmem:[%s4325_s16 + $0x8] sm:$0xff] %v2820_v2  ;;  %v4369_v2 = vpop.permute.xlu2 %2292  ;;  %v4382_v60 = vor.u32 %v3463_v31, %v3394_v43 }
  0xc7   : > { %1290 = vmatmul.bf16.gmra.mxu3 %v4335_v34 }
  0xc9   : > { %v1162_v63 = vpop.f32.mrf.mxu2  ;;  %v986_v35 = vpop.f32.mrf.mxu0 }
  0xca   : > { %v4351_v37 = vpop.permute.xlu1 %792  ;;  %v1251_v18 = vpop.f32.mrf.mxu3  ;;  %v987_v57 = vadd.f32 %v986_v35, %v4158_v3  ;;  %v2263_v35 = vld [vmem:[%s5771_s4 + $0xa0] sm:$0xff]  ;;  %v1163_v34 = vadd.f32 %v1162_v63, %v4141_v61 }
  0xcb   : > { %5980 = vst [vmem:[#allocation37_spill] sm:$0xff] %v4351_v37  ;;  %v4353_v28 = vpop.permute.xlu0 %787  ;;  %v1075_v8 = vpop.f32.mrf.mxu1  ;;  %2377 = vperm.xlu1 %3502, %v2263_v35  }
  0xcc   : > { %5981 = vst [vmem:[#allocation38_spill] sm:$0xff] %v4353_v28  ;;  %v1076_v62 = vadd.f32 %v1075_v8, %v987_v57  ;;  %v1160_v8 = vadd.f32 %v1159_v56, %v4160_v4  ;;  %v985_v57 = vadd.f32 %v984_v36, %v4141_v61  ;;  %v1071_v56 = vadd.f32 %v4298_v49, %v982_v0 }
  0xcd   : > { %v1252_v4 = vadd.f32 %v1251_v18, %v1163_v34 }
  0xce   : > { %v2069_v21 = vmul.f32 %v4281_v11, %v1076_v62  ;;  %v1249_v62 = vadd.f32 %v1248_v41, %v1160_v8  ;;  %v1074_v35 = vadd.f32 %v1073_v53, %v985_v57 }
  0xcf   : > { %v2064_v34 = vmul.f32 %v4296_v55, %v1252_v4 }
  0xd0   : > { %v2453_v7 = vadd.f32 %v4369_v2, %v2069_v21 }
  0xd1   : > { %v1164_v10 = vpop.f32.mrf.mxu2  ;;  %v989_v63 = vpop.f32.mrf.mxu0 }
  0xd2   : > { %v4378_v37 = vpop.permute.xlu1 %807  ;;  %v1253_v9 = vpop.f32.mrf.mxu3  ;;  %v1165_v36 = vadd.f32 %v1164_v10, %v4158_v3  ;;  %v2057_v10 = vmul.f32 %v4281_v11, %v1071_v56  ;;  %v990_v41 = vadd.f32 %v989_v63, %v4074_v15 }
  0xd3   : > { %5982 = vst [vmem:[#allocation39_spill] sm:$0xff] %v4378_v37  ;;  %v4380_v28 = vpop.permute.xlu0 %802  ;;  %v1078_v61 = vpop.f32.mrf.mxu1  ;;  %v2645_v37 = vadd.f32 %v2453_v7, %v3861_v20  ;;  %v2261_v20 = vld [vmem:[%s5771_s4 + $0x90] sm:$0xff]  ;;  %v2063_v7 = vmul.f32 %v4281_v11, %v1074_v35 }
  0xd4   : > { %5983 = vst [vmem:[#allocation40_spill] sm:$0xff] %v4380_v28  ;;  %v1254_v43 = vadd.f32 %v1253_v9, %v1165_v36  ;;  %1028 = vmatmul.bf16.gmra.mxu0 %v4382_v60  ;;  %v2058_v9 = vmul.f32 %v4296_v55, %v1249_v62  ;;  %2367 = vperm.xlu2 %3503, %v2261_v20  }
  0xd5   : > { %v2837_v21 = vmax.f32 %v2645_v37, 0.0  ;;  %v1079_v56 = vadd.f32 %v1078_v61, %v990_v41 }
  0xd6   : > { %1117 = vmatmul.bf16.gmra.mxu1 %v4384_v48  ;;  %1206 = vmatmul.bf16.gmra.mxu2 %v4382_v60  ;;  %v2070_v49 = vmul.f32 %v4296_v55, %v1254_v43 }
  0xd7   : > { %1295 = vmatmul.bf16.gmra.mxu3 %v4384_v48  ;;  %3029 = vst [vmem:[%s4325_s16 + $0x90] sm:$0xff] %v2837_v21 }
  0xd8   : > { %v2454_v53 = vadd.f32 %v4369_v2, %v2070_v49 }
  0xd9   : > { %v1167_v8 = vpop.f32.mrf.mxu2  ;;  %v991_v63 = vpop.f32.mrf.mxu0 }
  0xda   : > { %v4405_v37 = vpop.permute.xlu1 %2287  ;;  %v1256_v57 = vpop.f32.mrf.mxu3  ;;  %v2646_v4 = vadd.f32 %v2454_v53, %v3873_v27  ;;  %v1168_v36 = vadd.f32 %v1167_v8, %v4074_v15  ;;  %v3402_v27 = vld [vmem:[%s5769_s2 + $0xb0] sm:$0xf]  ;;  %v992_v41 = vadd.f32 %v991_v63, %v4101_v29  ;;  %v312_v53 = vld [vmem:[%s3781_s10 + $0x78] sm:$0xff]  ;;  %v317_v63 = vld [vmem:[%s3781_s10 + $0xa0] sm:$0xff] }
  0xdb   : > { %v4407_v18 = vpop.permute.xlu0 %2282  ;;  %v2447_v31 = vadd.f32 %v4405_v37, %v2063_v7  ;;  %v2448_v26 = vadd.f32 %v4405_v37, %v2064_v34  ;;  %v1080_v62 = vpop.f32.mrf.mxu1 }
  0xdc   : > { %5984 = vst [vmem:[#allocation41_spill] sm:$0xff] %v4407_v18  ;;  %v2441_v54 = vadd.f32 %v4407_v18, %v2057_v10  ;;  %v2442_v0 = vadd.f32 %v4407_v18, %v2058_v9  ;;  %v2838_v61 = vmax.f32 %v2646_v4, 0.0  ;;  %v1257_v49 = vadd.f32 %v1256_v57, %v1168_v36  ;;  %v3404_v9 = vld [vmem:[%s5769_s2 + $0xb8] sm:$0xf0]  ;;  %v414_v4 = vld [vmem:[%s3781_s10 + $0x3a8] sm:$0xff]  ;;  %v311_v36 = vld [vmem:[%s3781_s10 + $0x70] sm:$0xff] }
  0xdd   : > { %v2639_v35 = vadd.f32 %v2447_v31, %v3858_v19  ;;  %v2640_v43 = vadd.f32 %v2448_v26, %v3867_v25  ;;  %v3465_v19 = vld [vmem:[%s5769_s2 + $0xb4] sm:$0xf0]  ;;  %v3464_v25 = vld [vmem:[%s5769_s2 + $0xb4] sm:$0xf]  ;;  %v1081_v34 = vadd.f32 %v1080_v62, %v992_v41  ;;  %v318_v31 = vld [vmem:[%s3781_s10 + $0xa8] sm:$0xff] }
  0xde   : > { %v2633_v21 = vadd.f32 %v2441_v54, %v3884_v32  ;;  %v2634_v10 = vadd.f32 %v2442_v0, %v3896_v40  ;;  %3030 = vst [vmem:[%s4325_s16 + $0x98] sm:$0xff] %v2838_v61  ;;  %v408_v26 = vld [vmem:[%s3781_s10 + $0x378] sm:$0xff]  ;;  %v2075_v54 = vmul.f32 %v4281_v11, %v1079_v56  ;;  %v2076_v0 = vmul.f32 %v4296_v55, %v1257_v49  ;;  %v407_v61 = vld [vmem:[%s3781_s10 + $0x370] sm:$0xff]  ;;  %v413_v49 = vld [vmem:[%s3781_s10 + $0x3a0] sm:$0xff] }
  0xdf   : > { %v2831_v32 = vmax.f32 %v2639_v35, 0.0  ;;  %v2832_v40 = vmax.f32 %v2640_v43, 0.0  ;;  %v4439_v8 = vor.u32 %v3465_v19, %v3402_v27  ;;  %v530_v57 = vpack.c.bf16 %v318_v31, %v312_v53  ;;  %v2265_v27 = vld [vmem:[%s5771_s4 + $0xb0] sm:$0xff] }
  0xe0   : > { %v2825_v20 = vmax.f32 %v2633_v21, 0.0  ;;  %v2826_v7 = vmax.f32 %v2634_v10, 0.0  ;;  %v2081_v62 = vmul.f32 %v4281_v11, %v1081_v34  ;;  %v4450_v56 = vor.u32 %v3464_v25, %v3404_v9  ;;  %2387 = vperm.xlu0 %3501, %v2265_v27   ;;  %v2266_v9 = vld [vmem:[%s5771_s4 + $0xb8] sm:$0xff] }
  0xe1   : > { %3023 = vst [vmem:[%s4325_s16 + $0x60] sm:$0xff] %v2831_v32  ;;  %v578_v21 = vpack.c.bf16 %v414_v4, %v408_v26  ;;  %v529_v10 = vpack.c.bf16 %v317_v63, %v311_v36  ;;  %v1169_v32 = vpop.f32.mrf.mxu2  ;;  %1510 = vmatpush.bf16.msrb.mxu2 %v530_v57  ;;  %v577_v25 = vpack.c.bf16 %v413_v49, %v407_v61  ;;  %v3504_v57 = vld [vmem:[%s3781_s10 + $0xf0] sm:$0xff]  ;;  %v2264_v61 = vld [vmem:[%s5771_s4 + $0xa8] sm:$0xff] }
  0xe2   : > { %3024 = vst [vmem:[%s4325_s16 + $0x68] sm:$0xff] %v2832_v40  ;;  %v4446_v35 = vpop.permute.xlu1 %2302  ;;  %v1258_v40 = vpop.f32.mrf.mxu3  ;;  %v1170_v53 = vadd.f32 %v1169_v32, %v4101_v29  ;;  %2392 = vperm.xlu1 %3502, %v2266_v9   ;;  %2382 = vperm.xlu2 %3503, %v2264_v61   ;;  %v3505_v32 = vld [vmem:[%s3781_s10 + $0xf8] sm:$0xff] }
  0xe3   : > { %v4448_v43 = vpop.permute.xlu0 %2297  ;;  %3017 = vst [vmem:[%s4325_s16 + $0x30] sm:$0xff] %v2825_v20  ;;  %v2465_v34 = vadd.f32 %v4446_v35, %v2081_v62  ;;  %v994_v20 = vpop.f32.mrf.mxu0  ;;  %1599 = vmatpush.bf16.msrb.mxu3 %v578_v21  ;;  %1332 = vmatpush.bf16.msrb.mxu0 %v529_v10 }
  0xe4   : > { %v2459_v41 = vadd.f32 %v4448_v43, %v2075_v54  ;;  %v2460_v19 = vadd.f32 %v4448_v43, %v2076_v0  ;;  %3018 = vst [vmem:[%s4325_s16 + $0x38] sm:$0xff] %v2826_v7  ;;  %v1083_v31 = vpop.f32.mrf.mxu1  ;;  %v995_v0 = vadd.f32 %v994_v20, %v4181_v17  ;;  %1421 = vmatpush.bf16.msrb.mxu1 %v577_v25  ;;  %v4475_v21 = vpop.permute.xlu2 %2307  ;;  %v3506_v20 = vld [vmem:[%s3781_s10 + $0x120] sm:$0xff] }
  0xe5   : > { %v2657_v7 = vadd.f32 %v3504_v57, %v2465_v34  ;;  %v1259_v4 = vadd.f32 %v1258_v40, %v1170_v53  ;;  %1033 = vmatmul.bf16.gmra.mxu0 %v4439_v8  ;;  %v3467_v57 = vld [vmem:[%s5769_s2 + $0xc4] sm:$0xf0] }
  0xe6   : > { %v2651_v26 = vadd.f32 %v2459_v41, %v3842_v6  ;;  %v2652_v54 = vadd.f32 %v2460_v19, %v3848_v12  ;;  %1122 = vmatmul.bf16.gmra.mxu1 %v4450_v56  ;;  %v1084_v62 = vadd.f32 %v1083_v31, %v995_v0  ;;  %1211 = vmatmul.bf16.gmra.mxu2 %v4439_v8  ;;  %v3410_v0 = vld [vmem:[%s5769_s2 + $0xc0] sm:$0xf] }
  0xe7   : > { %1300 = vmatmul.bf16.gmra.mxu3 %v4450_v56  ;;  %v2849_v6 = vmax.f32 %v2657_v7, 0.0  ;;  %v2082_v12 = vmul.f32 %v4296_v55, %v1259_v4  ;;  %v4512_v61 = vor.u32 %v3467_v57, %v3410_v0 }
  0xe8   : > { %v2843_v36 = vmax.f32 %v2651_v26, 0.0  ;;  %v2844_v63 = vmax.f32 %v2652_v54, 0.0  ;;  %v2087_v10 = vmul.f32 %v4281_v11, %v1084_v62 }
  0xe9   : > { %3041 = vst [vmem:[%s4325_s16 + $0xf0] sm:$0xff] %v2849_v6  ;;  %v2466_v27 = vadd.f32 %v4446_v35, %v2082_v12  ;;  %v1172_v49 = vpop.f32.mrf.mxu2 }
  0xea   : > { %3035 = vst [vmem:[%s4325_s16 + $0xc0] sm:$0xff] %v2843_v36  ;;  %v1261_v41 = vpop.f32.mrf.mxu3  ;;  %v2471_v19 = vadd.f32 %v4475_v21, %v2087_v10  ;;  %v1173_v25 = vadd.f32 %v1172_v49, %v4181_v17  ;;  %v3466_v36 = vld [vmem:[%s5769_s2 + $0xc4] sm:$0xf]  ;;  %v2268_v10 = vld [vmem:[%s5771_s4 + $0xc8] sm:$0xff] }
  0xeb   : > { %3036 = vst [vmem:[%s4325_s16 + $0xc8] sm:$0xff] %v2844_v63  ;;  %v2658_v40 = vadd.f32 %v3505_v32, %v2466_v27  ;;  %v996_v9 = vpop.f32.mrf.mxu0  ;;  %v3412_v63 = vld [vmem:[%s5769_s2 + $0xc8] sm:$0xf0]  ;;  %v4504_v6 = vpop.permute.xlu0 %2312  ;;  %2402 = vperm.xlu0 %3501, %v2268_v10  }
  0xec   : > { %v1085_v34 = vpop.f32.mrf.mxu1  ;;  %v997_v53 = vadd.f32 %v996_v9, %v4179_v16  ;;  %v2663_v31 = vadd.f32 %v3506_v20, %v2471_v19  ;;  %v1262_v54 = vadd.f32 %v1261_v41, %v1173_v25  ;;  %5985 = vst [vmem:[#allocation42_spill] sm:$0xff] %v4504_v6  ;;  %v4514_v49 = vor.u32 %v3466_v36, %v3412_v63  ;;  %v3508_v20 = vld [vmem:[%s3781_s10 + $0x150] sm:$0xff]  ;;  %v4527_v36 = vpop.permute.xlu1 %2317 }
  0xed   : > { %v2850_v26 = vmax.f32 %v2658_v40, 0.0  ;;  %5986 = vst [vmem:[#allocation43_spill] sm:$0xff] %v4512_v61  ;;  %v3507_v40 = vld [vmem:[%s3781_s10 + $0x128] sm:$0xff] }
  0xee   : > { %v1086_v7 = vadd.f32 %v1085_v34, %v997_v53  ;;  %v2855_v4 = vmax.f32 %v2663_v31, 0.0  ;;  %v2088_v62 = vmul.f32 %v4296_v55, %v1262_v54  ;;  %5987 = vst [vmem:[#allocation44_spill] sm:$0xff] %v4514_v49 }
  0xef   : > { %3042 = vst [vmem:[%s4325_s16 + $0xf8] sm:$0xff] %v2850_v26 }
  0xf0   : > { %v2093_v12 = vmul.f32 %v4281_v11, %v1086_v7  ;;  %3047 = vst [vmem:[%s4325_s16 + $0x120] sm:$0xff] %v2855_v4  ;;  %v2472_v27 = vadd.f32 %v4475_v21, %v2088_v62 }
  0xf1   : > { %v1174_v19 = vpop.f32.mrf.mxu2  ;;  %5988 = vst [vmem:[#allocation45_spill] sm:$0xff] %v4527_v36 }
  0xf2   : > { %v2477_v41 = vadd.f32 %v4504_v6, %v2093_v12  ;;  %v1263_v32 = vpop.f32.mrf.mxu3  ;;  %v2664_v25 = vadd.f32 %v3507_v40, %v2472_v27  ;;  %v1175_v9 = vadd.f32 %v1174_v19, %v4179_v16 }
  0xf3   : > { %v999_v34 = vpop.f32.mrf.mxu0 }
  0xf4   : > { %v1088_v53 = vpop.f32.mrf.mxu1  ;;  %v2669_v31 = vadd.f32 %v3508_v20, %v2477_v41  ;;  %v1000_v26 = vadd.f32 %v999_v34, %v4121_v52  ;;  %v2856_v54 = vmax.f32 %v2664_v25, 0.0  ;;  %v1264_v0 = vadd.f32 %v1263_v32, %v1175_v9  ;;  %v3509_v41 = vld [vmem:[%s3781_s10 + $0x158] sm:$0xff]  ;;  %v3510_v34 = vld [vmem:[%s3781_s10 + $0x180] sm:$0xff] }
  0xf5   : > { %1038 = vmatmul.bf16.gmra.mxu0 %v4512_v61 }
  0xf6   : > { %1127 = vmatmul.bf16.gmra.mxu1 %v4514_v49  ;;  %v2861_v57 = vmax.f32 %v2669_v31, 0.0  ;;  %v1089_v7 = vadd.f32 %v1088_v53, %v1000_v26  ;;  %1216 = vmatmul.bf16.gmra.mxu2 %v4512_v61  ;;  %3048 = vst [vmem:[%s4325_s16 + $0x128] sm:$0xff] %v2856_v54  ;;  %v2094_v4 = vmul.f32 %v4296_v55, %v1264_v0  ;;  %v3418_v26 = vld [vmem:[%s5769_s2 + $0xd0] sm:$0xf]  ;;  %v3469_v54 = vld [vmem:[%s5769_s2 + $0xd4] sm:$0xf0] }
  0xf7   : > { %1305 = vmatmul.bf16.gmra.mxu3 %v4514_v49  ;;  %v2269_v49 = vld [vmem:[%s5771_s4 + $0xd0] sm:$0xff]  ;;  %v3511_v61 = vld [vmem:[%s3781_s10 + $0x188] sm:$0xff] }
  0xf8   : > { %3053 = vst [vmem:[%s4325_s16 + $0x150] sm:$0xff] %v2861_v57  ;;  %v2099_v63 = vmul.f32 %v4281_v11, %v1089_v7  ;;  %v2478_v62 = vadd.f32 %v4504_v6, %v2094_v4  ;;  %v3468_v7 = vld [vmem:[%s5769_s2 + $0xd4] sm:$0xf]  ;;  %v3420_v4 = vld [vmem:[%s5769_s2 + $0xd8] sm:$0xf0]  ;;  %2407 = vperm.xlu1 %3502, %v2269_v49  }
  0xf9   : > { %v1177_v12 = vpop.f32.mrf.mxu2 }
  0xfa   : > { %v1266_v10 = vpop.f32.mrf.mxu3  ;;  %v2483_v27 = vadd.f32 %v4527_v36, %v2099_v63  ;;  %v2670_v19 = vadd.f32 %v3509_v41, %v2478_v62  ;;  %v1178_v32 = vadd.f32 %v1177_v12, %v4121_v52  ;;  %v4551_v62 = vpop.permute.xlu2 %2322  ;;  %v300_v12 = vld [vmem:[%s3781_s10 + $0x18] sm:$0xff] }
  0xfb   : > { %v1001_v40 = vpop.f32.mrf.mxu0  ;;  %5989 = vst [vmem:[#allocation46_spill] sm:$0xff] %v4551_v62 }
  0xfc   : > { %v1090_v25 = vpop.f32.mrf.mxu1  ;;  %v1002_v9 = vadd.f32 %v1001_v40, %v4195_v24  ;;  %v2675_v53 = vadd.f32 %v3510_v34, %v2483_v27  ;;  %v2862_v20 = vmax.f32 %v2670_v19, 0.0  ;;  %v1267_v31 = vadd.f32 %v1266_v10, %v1178_v32  ;;  %v306_v10 = vld [vmem:[%s3781_s10 + $0x48] sm:$0xff]  ;;  %v396_v27 = vld [vmem:[%s3781_s10 + $0x318] sm:$0xff] }
  0xfd   : > { %v4558_v19 = vor.u32 %v3469_v54, %v3418_v26  ;;  %v524_v32 = vpack.c.bf16 %v306_v10, %v300_v12  ;;  %v402_v40 = vld [vmem:[%s3781_s10 + $0x348] sm:$0xff] }
  0xfe   : > { %v1091_v0 = vadd.f32 %v1090_v25, %v1002_v9  ;;  %v2867_v57 = vmax.f32 %v2675_v53, 0.0  ;;  %3054 = vst [vmem:[%s4325_s16 + $0x158] sm:$0xff] %v2862_v20  ;;  %v2100_v63 = vmul.f32 %v4296_v55, %v1267_v31  ;;  %v299_v25 = vld [vmem:[%s3781_s10 + $0x10] sm:$0xff]  ;;  %v305_v9 = vld [vmem:[%s3781_s10 + $0x40] sm:$0xff]  ;;  %v4564_v53 = vor.u32 %v3468_v7, %v3420_v4 }
  0xff   : > { %5990 = vst [vmem:[#allocation47_spill] sm:$0xff] %v4558_v19  ;;  %v572_v20 = vpack.c.bf16 %v402_v40, %v396_v27  ;;  %v523_v31 = vpack.c.bf16 %v305_v9, %v299_v25  ;;  %1511 = vmatpush.bf16.msrb.mxu2 %v524_v32  ;;  %v3512_v40 = vld [vmem:[%s3781_s10 + $0x1b0] sm:$0xff] }
 0x100   : > { %v2105_v41 = vmul.f32 %v4281_v11, %v1091_v0  ;;  %3059 = vst [vmem:[%s4325_s16 + $0x180] sm:$0xff] %v2867_v57  ;;  %v2484_v34 = vadd.f32 %v4527_v36, %v2100_v63  ;;  %v395_v0 = vld [vmem:[%s3781_s10 + $0x310] sm:$0xff]  ;;  %v401_v57 = vld [vmem:[%s3781_s10 + $0x340] sm:$0xff] }
 0x101   : > { %5991 = vst [vmem:[#allocation48_spill] sm:$0xff] %v4564_v53  ;;  %v1179_v54 = vpop.f32.mrf.mxu2  ;;  %v571_v10 = vpack.c.bf16 %v401_v57, %v395_v0  ;;  %1600 = vmatpush.bf16.msrb.mxu3 %v572_v20  ;;  %1333 = vmatpush.bf16.msrb.mxu0 %v523_v31  ;;  %v2267_v20 = vld [vmem:[%s5771_s4 + $0xc0] sm:$0xff] }
 0x102   : > { %v2489_v26 = vadd.f32 %v4551_v62, %v2105_v41  ;;  %v1268_v12 = vpop.f32.mrf.mxu3  ;;  %v2676_v63 = vadd.f32 %v3511_v61, %v2484_v34  ;;  %v1180_v7 = vadd.f32 %v1179_v54, %v4195_v24  ;;  %v4582_v34 = vpop.permute.xlu0 %2327  ;;  %2397 = vperm.xlu2 %3503, %v2267_v20   ;;  %v3470_v20 = vld [vmem:[%s5769_s2 + $0xe4] sm:$0xf] }
 0x103   : > { %v1004_v4 = vpop.f32.mrf.mxu0  ;;  %1422 = vmatpush.bf16.msrb.mxu1 %v571_v10  ;;  %5992 = vst [vmem:[#allocation49_spill] sm:$0xff] %v4582_v34 }
 0x104   : > { %v1093_v27 = vpop.f32.mrf.mxu1  ;;  %v2681_v25 = vadd.f32 %v3512_v40, %v2489_v26  ;;  %v1005_v9 = vadd.f32 %v1004_v4, %v4193_v23  ;;  %v2868_v41 = vmax.f32 %v2676_v63, 0.0  ;;  %v1269_v36 = vadd.f32 %v1268_v12, %v1180_v7  ;;  %v3513_v12 = vld [vmem:[%s3781_s10 + $0x1b8] sm:$0xff] }
 0x105   : > { %1043 = vmatmul.bf16.gmra.mxu0 %v4558_v19 }
 0x106   : > { %1132 = vmatmul.bf16.gmra.mxu1 %v4564_v53  ;;  %v2873_v61 = vmax.f32 %v2681_v25, 0.0  ;;  %v1094_v49 = vadd.f32 %v1093_v27, %v1005_v9  ;;  %1221 = vmatmul.bf16.gmra.mxu2 %v4558_v19  ;;  %3060 = vst [vmem:[%s4325_s16 + $0x188] sm:$0xff] %v2868_v41  ;;  %v2106_v32 = vmul.f32 %v4296_v55, %v1269_v36  ;;  %v3514_v27 = vld [vmem:[%s3781_s10 + $0x1e0] sm:$0xff] }
 0x107   : > { %1310 = vmatmul.bf16.gmra.mxu3 %v4564_v53  ;;  %v3426_v41 = vld [vmem:[%s5769_s2 + $0xe0] sm:$0xf] }
 0x108   : > { %3065 = vst [vmem:[%s4325_s16 + $0x1b0] sm:$0xff] %v2873_v61  ;;  %v2111_v31 = vmul.f32 %v4281_v11, %v1094_v49  ;;  %v2490_v0 = vadd.f32 %v4551_v62, %v2106_v32  ;;  %v3471_v61 = vld [vmem:[%s5769_s2 + $0xe4] sm:$0xf0] }
 0x109   : > { %v1182_v57 = vpop.f32.mrf.mxu2 }
 0x10a   : > { %v1271_v26 = vpop.f32.mrf.mxu3  ;;  %v2495_v54 = vadd.f32 %v4582_v34, %v2111_v31  ;;  %v2682_v36 = vadd.f32 %v3513_v12, %v2490_v0  ;;  %v1183_v10 = vadd.f32 %v1182_v57, %v4193_v23  ;;  %v3428_v31 = vld [vmem:[%s5769_s2 + $0xe8] sm:$0xf0]  ;;  %v4609_v57 = vpop.permute.xlu1 %2332 }
 0x10b   : > { %v1006_v63 = vpop.f32.mrf.mxu0  ;;  %5993 = vst [vmem:[#allocation50_spill] sm:$0xff] %v4609_v57  ;;  %v2272_v12 = vld [vmem:[%s5771_s4 + $0xe8] sm:$0xff] }
 0x10c   : > { %v1095_v7 = vpop.f32.mrf.mxu1  ;;  %v1007_v4 = vadd.f32 %v1006_v63, %v4149_v1  ;;  %v2687_v40 = vadd.f32 %v3514_v27, %v2495_v54  ;;  %v2874_v25 = vmax.f32 %v2682_v36, 0.0  ;;  %v1272_v9 = vadd.f32 %v1271_v26, %v1183_v10  ;;  %v2271_v26 = vld [vmem:[%s5771_s4 + $0xe0] sm:$0xff]  ;;  %2422 = vperm.xlu1 %3502, %v2272_v12   ;;  %v4635_v12 = vpop.permute.xlu2 %2337 }
 0x10d   : > { %2417 = vperm.xlu0 %3501, %v2271_v26   ;;  %v4620_v10 = vor.u32 %v3471_v61, %v3426_v41  ;;  %v4622_v63 = vor.u32 %v3470_v20, %v3428_v31  ;;  %v3516_v26 = vld [vmem:[%s3781_s10 + $0x210] sm:$0xff]  ;;  %5996 = vst [vmem:[#allocation53_spill] sm:$0xff] %v4635_v12 }
 0x10e   : > { %v1096_v49 = vadd.f32 %v1095_v7, %v1007_v4  ;;  %v2879_v32 = vmax.f32 %v2687_v40, 0.0  ;;  %3066 = vst [vmem:[%s4325_s16 + $0x1b8] sm:$0xff] %v2874_v25  ;;  %v2112_v0 = vmul.f32 %v4296_v55, %v1272_v9  ;;  %v3515_v40 = vld [vmem:[%s3781_s10 + $0x1e8] sm:$0xff] }
 0x10f   : > { %5994 = vst [vmem:[#allocation51_spill] sm:$0xff] %v4620_v10 }
 0x110   : > { %v2117_v54 = vmul.f32 %v4281_v11, %v1096_v49  ;;  %3071 = vst [vmem:[%s4325_s16 + $0x1e0] sm:$0xff] %v2879_v32  ;;  %v2496_v36 = vadd.f32 %v4582_v34, %v2112_v0  ;;  %v487_v34 = vld [vmem:[%s3781_s10 + $0x5f0] sm:$0xff] }
 0x111   : > { %5995 = vst [vmem:[#allocation52_spill] sm:$0xff] %v4622_v63  ;;  %v1184_v4 = vpop.f32.mrf.mxu2 }
 0x112   : > { %v2501_v7 = vadd.f32 %v4609_v57, %v2117_v54  ;;  %v1273_v27 = vpop.f32.mrf.mxu3  ;;  %v2688_v25 = vadd.f32 %v3515_v40, %v2496_v36  ;;  %v1185_v9 = vadd.f32 %v1184_v4, %v4149_v1  ;;  %v481_v1 = vld [vmem:[%s3781_s10 + $0x5c0] sm:$0xff] }
 0x113   : > { %v1009_v49 = vpop.f32.mrf.mxu0 }
 0x114   : > { %v1098_v32 = vpop.f32.mrf.mxu1  ;;  %v2693_v53 = vadd.f32 %v3516_v26, %v2501_v7  ;;  %v1010_v41 = vadd.f32 %v1009_v49, %v4220_v51  ;;  %v2880_v61 = vmax.f32 %v2688_v25, 0.0  ;;  %v1274_v20 = vadd.f32 %v1273_v27, %v1185_v9  ;;  %v3517_v25 = vld [vmem:[%s3781_s10 + $0x218] sm:$0xff] }
 0x115   : > { %1048 = vmatmul.bf16.gmra.mxu0 %v4620_v10 }
 0x116   : > { %1137 = vmatmul.bf16.gmra.mxu1 %v4622_v63  ;;  %v2885_v31 = vmax.f32 %v2693_v53, 0.0  ;;  %v1099_v0 = vadd.f32 %v1098_v32, %v1010_v41  ;;  %1226 = vmatmul.bf16.gmra.mxu2 %v4620_v10  ;;  %3072 = vst [vmem:[%s4325_s16 + $0x1e8] sm:$0xff] %v2880_v61  ;;  %v2118_v54 = vmul.f32 %v4296_v55, %v1274_v20  ;;  %v2270_v53 = vld [vmem:[%s5771_s4 + $0xd8] sm:$0xff]  ;;  %v3518_v61 = vld [vmem:[%s3781_s10 + $0x240] sm:$0xff]  ;;  %v391_v10 = vld [vmem:[%s3781_s10 + $0x2f0] sm:$0xff] }
 0x117   : > { %1315 = vmatmul.bf16.gmra.mxu3 %v4622_v63  ;;  %2412 = vperm.xlu2 %3503, %v2270_v53   ;;  %v385_v63 = vld [vmem:[%s3781_s10 + $0x2c0] sm:$0xff] }
 0x118   : > { %3077 = vst [vmem:[%s4325_s16 + $0x210] sm:$0xff] %v2885_v31  ;;  %v2123_v36 = vmul.f32 %v4281_v11, %v1099_v0  ;;  %v2502_v7 = vadd.f32 %v4609_v57, %v2118_v54  ;;  %v3434_v54 = vld [vmem:[%s5769_s2 + $0xf0] sm:$0xf]  ;;  %v567_v57 = vpack.c.bf16 %v391_v10, %v385_v63 }
 0x119   : > { %v1187_v4 = vpop.f32.mrf.mxu2  ;;  %v3520_v63 = vld [vmem:[%s3781_s10 + $0x270] sm:$0xff] }
 0x11a   : > { %v1276_v27 = vpop.f32.mrf.mxu3  ;;  %v2507_v40 = vadd.f32 %v4635_v12, %v2123_v36  ;;  %v2694_v9 = vadd.f32 %v3517_v25, %v2502_v7  ;;  %v1188_v49 = vadd.f32 %v1187_v4, %v4220_v51  ;;  %v3473_v36 = vld [vmem:[%s5769_s2 + $0xf4] sm:$0xf0]  ;;  %v3472_v4 = vld [vmem:[%s5769_s2 + $0xf4] sm:$0xf]  ;;  %v4662_v25 = vpop.permute.xlu0 %2342  ;;  %1682 = vmatpush.bf16.msra.mxu0 %v567_v57 }
 0x11b   : > { %v1011_v32 = vpop.f32.mrf.mxu0  ;;  %v4693_v57 = vpop.permute.xlu1 %2347 }
 0x11c   : > { %v1100_v26 = vpop.f32.mrf.mxu1  ;;  %v1012_v41 = vadd.f32 %v1011_v32, %v4218_v50  ;;  %v2699_v20 = vadd.f32 %v3518_v61, %v2507_v40  ;;  %v2886_v31 = vmax.f32 %v2694_v9, 0.0  ;;  %v1277_v0 = vadd.f32 %v1276_v27, %v1188_v49  ;;  %v3436_v27 = vld [vmem:[%s5769_s2 + $0xf8] sm:$0xf0]  ;;  %v386_v9 = vld [vmem:[%s3781_s10 + $0x2c8] sm:$0xff] }
 0x11d   : > { %v392_v49 = vld [vmem:[%s3781_s10 + $0x2f8] sm:$0xff]  ;;  %v482_v32 = vld [vmem:[%s3781_s10 + $0x5c8] sm:$0xff] }
 0x11e   : > { %v1101_v7 = vadd.f32 %v1100_v26, %v1012_v41  ;;  %v2891_v53 = vmax.f32 %v2699_v20, 0.0  ;;  %3078 = vst [vmem:[%s4325_s16 + $0x218] sm:$0xff] %v2886_v31  ;;  %v2124_v40 = vmul.f32 %v4296_v55, %v1277_v0  ;;  %v4669_v41 = vor.u32 %v3473_v36, %v3434_v54  ;;  %v488_v20 = vld [vmem:[%s3781_s10 + $0x5f8] sm:$0xff] }
 0x11f   : > { %v568_v61 = vpack.c.bf16 %v392_v49, %v386_v9  ;;  %v4675_v0 = vor.u32 %v3472_v4, %v3436_v27  ;;  %v616_v51 = vpack.c.bf16 %v488_v20, %v482_v32  ;;  %v615_v9 = vpack.c.bf16 %v487_v34, %v481_v1  ;;  %v3519_v49 = vld [vmem:[%s3781_s10 + $0x248] sm:$0xff] }
 0x120   : > { %v2129_v26 = vmul.f32 %v4281_v11, %v1101_v7  ;;  %3083 = vst [vmem:[%s4325_s16 + $0x240] sm:$0xff] %v2891_v53  ;;  %v2508_v31 = vadd.f32 %v4635_v12, %v2124_v40  ;;  %v2274_v7 = vld [vmem:[%s5771_s4 + $0xf8] sm:$0xff] }
 0x121   : > { %5997 = vst [vmem:[#allocation54_spill] sm:$0xff] %v4675_v0  ;;  %v1189_v36 = vpop.f32.mrf.mxu2  ;;  %1860 = vmatpush.bf16.msra.mxu2 %v568_v61  ;;  %2432 = vperm.xlu0 %3501, %v2274_v7  }
 0x122   : > { %v2513_v54 = vadd.f32 %v4662_v25, %v2129_v26  ;;  %v1278_v53 = vpop.f32.mrf.mxu3  ;;  %v2700_v40 = vadd.f32 %v3519_v49, %v2508_v31  ;;  %v1190_v4 = vadd.f32 %v1189_v36, %v4218_v50  ;;  %1949 = vmatpush.bf16.msra.mxu3 %v616_v51  ;;  %1771 = vmatpush.bf16.msra.mxu1 %v615_v9 }
 0x123   : > { %v1014_v27 = vpop.f32.mrf.mxu0 }
 0x124   : > { %v1103_v10 = vpop.f32.mrf.mxu1  ;;  %v2705_v32 = vadd.f32 %v3520_v63, %v2513_v54  ;;  %v1015_v20 = vadd.f32 %v1014_v27, %v4162_v5  ;;  %v2892_v26 = vmax.f32 %v2700_v40, 0.0  ;;  %v1279_v12 = vadd.f32 %v1278_v53, %v1190_v4  ;;  %v3521_v53 = vld [vmem:[%s3781_s10 + $0x278] sm:$0xff]  ;;  %v3522_v27 = vld [vmem:[%s3781_s10 + $0x2a0] sm:$0xff] }
 0x125   : > { %1053 = vmatmul.bf16.gmra.mxu0 %v4669_v41 }
 0x126   : > { %1142 = vmatmul.bf16.gmra.mxu1 %v4675_v0  ;;  %v2897_v1 = vmax.f32 %v2705_v32, 0.0  ;;  %v1104_v34 = vadd.f32 %v1103_v10, %v1015_v20  ;;  %1231 = vmatmul.bf16.gmra.mxu2 %v4669_v41  ;;  %3084 = vst [vmem:[%s4325_s16 + $0x248] sm:$0xff] %v2892_v26  ;;  %v2130_v51 = vmul.f32 %v4296_v55, %v1279_v12 }
 0x127   : > { %1320 = vmatmul.bf16.gmra.mxu3 %v4675_v0 }
 0x128   : > { %3089 = vst [vmem:[%s4325_s16 + $0x270] sm:$0xff] %v2897_v1  ;;  %v2135_v61 = vmul.f32 %v4281_v11, %v1104_v34  ;;  %v2514_v31 = vadd.f32 %v4662_v25, %v2130_v51  ;;  %v4705_v34 = vpop.permute.xlu2 %2352 }
 0x129   : > { %v1192_v7 = vpop.f32.mrf.mxu2  ;;  %5998 = vst [vmem:[#allocation55_spill] sm:$0xff] %v4705_v34 }
 0x12a   : > { %v1281_v54 = vpop.f32.mrf.mxu3  ;;  %v2519_v36 = vadd.f32 %v4693_v57, %v2135_v61  ;;  %v2706_v9 = vadd.f32 %v3521_v53, %v2514_v31  ;;  %v1193_v49 = vadd.f32 %v1192_v7, %v4162_v5 }
 0x12b   : > { %v1016_v40 = vpop.f32.mrf.mxu0 }
 0x12c   : > { %v1105_v4 = vpop.f32.mrf.mxu1  ;;  %v1017_v12 = vadd.f32 %v1016_v40, %v4241_v14  ;;  %v2711_v10 = vadd.f32 %v3522_v27, %v2519_v36  ;;  %v2898_v63 = vmax.f32 %v2706_v9, 0.0  ;;  %v1282_v32 = vadd.f32 %v1281_v54, %v1193_v49  ;;  %v3523_v36 = vld [vmem:[%s3781_s10 + $0x2a8] sm:$0xff] }
 0x12e   : > { %v1106_v20 = vadd.f32 %v1105_v4, %v1017_v12  ;;  %v2903_v26 = vmax.f32 %v2711_v10, 0.0  ;;  %3090 = vst [vmem:[%s4325_s16 + $0x278] sm:$0xff] %v2898_v63  ;;  %v2136_v1 = vmul.f32 %v4296_v55, %v1282_v32  ;;  %v3524_v4 = vld [vmem:[%s3781_s10 + $0x2d0] sm:$0xff] }
 0x130   : > { %v2141_v51 = vmul.f32 %v4281_v11, %v1106_v20  ;;  %3095 = vst [vmem:[%s4325_s16 + $0x2a0] sm:$0xff] %v2903_v26  ;;  %v2520_v61 = vadd.f32 %v4693_v57, %v2136_v1  ;;  %v4721_v1 = vpop.permute.xlu0 %2357 }
 0x131   : > { %v1194_v7 = vpop.f32.mrf.mxu2 }
 0x132   : > { %v2525_v31 = vadd.f32 %v4705_v34, %v2141_v51  ;;  %v1283_v53 = vpop.f32.mrf.mxu3  ;;  %v2712_v54 = vadd.f32 %v3523_v36, %v2520_v61  ;;  %v1195_v9 = vadd.f32 %v1194_v7, %v4241_v14  ;;  %v2273_v51 = vld [vmem:[%s5771_s4 + $0xf0] sm:$0xff] }
 0x133   : > { %v1019_v49 = vpop.f32.mrf.mxu0  ;;  %2427 = vperm.xlu2 %3503, %v2273_v51  }
 0x134   : > { %v1108_v40 = vpop.f32.mrf.mxu1  ;;  %v2717_v12 = vadd.f32 %v3524_v4, %v2525_v31  ;;  %v1020_v27 = vadd.f32 %v1019_v49, %v4239_v13  ;;  %v2904_v10 = vmax.f32 %v2712_v54, 0.0  ;;  %v1284_v63 = vadd.f32 %v1283_v53, %v1195_v9  ;;  %v3525_v54 = vld [vmem:[%s3781_s10 + $0x2d8] sm:$0xff] }
 0x135   : > { %1334 = vmatmul.bf16.vlgmr.msrb.gmra.mxu0 %v3923_v58 }
 0x136   : > { %1423 = vmatmul.bf16.vlgmr.msrb.gmra.mxu1 %v3925_v59  ;;  %v2909_v32 = vmax.f32 %v2717_v12, 0.0  ;;  %v1109_v20 = vadd.f32 %v1108_v40, %v1020_v27  ;;  %1512 = vmatmul.bf16.vlgmr.msrb.gmra.mxu2 %v3923_v58  ;;  %3096 = vst [vmem:[%s4325_s16 + $0x2a8] sm:$0xff] %v2904_v10  ;;  %v2142_v26 = vmul.f32 %v4296_v55, %v1284_v63  ;;  %v3526_v27 = vld [vmem:[%s3781_s10 + $0x300] sm:$0xff] }
 0x137   : > { %1601 = vmatmul.bf16.vlgmr.msrb.gmra.mxu3 %v3925_v59 }
 0x138   : > { %3101 = vst [vmem:[%s4325_s16 + $0x2d0] sm:$0xff] %v2909_v32  ;;  %v2147_v61 = vmul.f32 %v4281_v11, %v1109_v20  ;;  %v2526_v31 = vadd.f32 %v4705_v34, %v2142_v26 }
 0x139   : > { %v1197_v7 = vpop.f32.mrf.mxu2 }
 0x13a   : > { %v1286_v53 = vpop.f32.mrf.mxu3  ;;  %v2531_v36 = vadd.f32 %v4721_v1, %v2147_v61  ;;  %v2718_v9 = vadd.f32 %v3525_v54, %v2526_v31  ;;  %v1198_v49 = vadd.f32 %v1197_v7, %v4239_v13  ;;  %v4736_v61 = vpop.permute.xlu1 %2362  ;;  %v374_v31 = vld [vmem:[%s3781_s10 + $0x268] sm:$0xff]  ;;  %v380_v7 = vld [vmem:[%s3781_s10 + $0x298] sm:$0xff] }
 0x13b   : > { %v1021_v40 = vpop.f32.mrf.mxu0  ;;  %v470_v54 = vld [vmem:[%s3781_s10 + $0x568] sm:$0xff] }
 0x13c   : > { %v1110_v4 = vpop.f32.mrf.mxu1  ;;  %v1022_v12 = vadd.f32 %v1021_v40, %v4187_v22  ;;  %v2723_v10 = vadd.f32 %v3526_v27, %v2531_v36  ;;  %v2910_v63 = vmax.f32 %v2718_v9, 0.0  ;;  %v1287_v32 = vadd.f32 %v1286_v53, %v1198_v49  ;;  %v476_v27 = vld [vmem:[%s3781_s10 + $0x598] sm:$0xff]  ;;  %v373_v9 = vld [vmem:[%s3781_s10 + $0x260] sm:$0xff]  ;;  %v379_v53 = vld [vmem:[%s3781_s10 + $0x290] sm:$0xff] }
 0x13d   : > { %v562_v36 = vpack.c.bf16 %v380_v7, %v374_v31 }
 0x13e   : > { %v1111_v20 = vadd.f32 %v1110_v4, %v1022_v12  ;;  %v2915_v26 = vmax.f32 %v2723_v10, 0.0  ;;  %3102 = vst [vmem:[%s4325_s16 + $0x2d8] sm:$0xff] %v2910_v63  ;;  %v2148_v51 = vmul.f32 %v4296_v55, %v1287_v32  ;;  %v610_v4 = vpack.c.bf16 %v476_v27, %v470_v54  ;;  %v469_v10 = vld [vmem:[%s3781_s10 + $0x560] sm:$0xff]  ;;  %v475_v63 = vld [vmem:[%s3781_s10 + $0x590] sm:$0xff] }
 0x13f   : > { %v561_v12 = vpack.c.bf16 %v379_v53, %v373_v9  ;;  %1861 = vmatpush.bf16.msra.mxu2 %v562_v36  ;;  %v609_v13 = vpack.c.bf16 %v475_v63, %v469_v10  ;;  %v3529_v10 = vld [vmem:[%s3781_s10 + $0x338] sm:$0xff] }
 0x140   : > { %v2153_v40 = vmul.f32 %v4281_v11, %v1111_v20  ;;  %3107 = vst [vmem:[%s4325_s16 + $0x300] sm:$0xff] %v2915_v26  ;;  %v2532_v49 = vadd.f32 %v4721_v1, %v2148_v51  ;;  %v3527_v20 = vld [vmem:[%s3781_s10 + $0x308] sm:$0xff]  ;;  %1950 = vmatpush.bf16.msra.mxu3 %v610_v4  ;;  %v3528_v51 = vld [vmem:[%s3781_s10 + $0x330] sm:$0xff] }
 0x141   : > { %v1199_v59 = vpop.f32.mrf.mxu2  ;;  %1683 = vmatpush.bf16.msra.mxu0 %v561_v12  ;;  %1772 = vmatpush.bf16.msra.mxu1 %v609_v13 }
 0x142   : > { %v2537_v32 = vadd.f32 %v4736_v61, %v2153_v40  ;;  %v1288_v58 = vpop.f32.mrf.mxu3  ;;  %v2724_v34 = vadd.f32 %v3527_v20, %v2532_v49  ;;  %v1200_v26 = vadd.f32 %v1199_v59, %v4187_v22  ;;  %v4760_v49 = vpop.permute.xlu2 %2367 }
 0x143   : > { %v1024_v31 = vpop.f32.mrf.mxu0 }
 0x144   : > { %v1113_v7 = vpop.f32.mrf.mxu1  ;;  %v2729_v54 = vadd.f32 %v3528_v51, %v2537_v32  ;;  %v1025_v27 = vadd.f32 %v1024_v31, %v4271_v45  ;;  %v2916_v40 = vmax.f32 %v2724_v34, 0.0  ;;  %v1289_v9 = vadd.f32 %v1288_v58, %v1200_v26 }
 0x145   : > { %1339 = vmatmul.bf16.gmra.mxu0 %v3973_v30 }
 0x146   : > { %1428 = vmatmul.bf16.gmra.mxu1 %v3975_v33  ;;  %v2921_v36 = vmax.f32 %v2729_v54, 0.0  ;;  %v1114_v59 = vadd.f32 %v1113_v7, %v1025_v27  ;;  %1517 = vmatmul.bf16.gmra.mxu2 %v3973_v30  ;;  %3108 = vst [vmem:[%s4325_s16 + $0x308] sm:$0xff] %v2916_v40  ;;  %v2154_v53 = vmul.f32 %v4296_v55, %v1289_v9  ;;  %v3530_v7 = vld [vmem:[%s3781_s10 + $0x360] sm:$0xff] }
 0x147   : > { %1606 = vmatmul.bf16.gmra.mxu3 %v3975_v33 }
 0x148   : > { %3113 = vst [vmem:[%s4325_s16 + $0x330] sm:$0xff] %v2921_v36  ;;  %v2159_v58 = vmul.f32 %v4281_v11, %v1114_v59  ;;  %v2538_v13 = vadd.f32 %v4736_v61, %v2154_v53  ;;  %v4772_v59 = vpop.permute.xlu0 %2372 }
 0x149   : > { %v1202_v34 = vpop.f32.mrf.mxu2  ;;  %5999 = vst [vmem:[#allocation56_spill] sm:$0xff] %v4772_v59 }
 0x14a   : > { %v1291_v4 = vpop.f32.mrf.mxu3  ;;  %v2543_v12 = vadd.f32 %v4760_v49, %v2159_v58  ;;  %v2730_v63 = vadd.f32 %v3529_v10, %v2538_v13  ;;  %v1203_v32 = vadd.f32 %v1202_v34, %v4271_v45 }
 0x14b   : > { %v1026_v20 = vpop.f32.mrf.mxu0 }
 0x14c   : > { %v1115_v26 = vpop.f32.mrf.mxu1  ;;  %v1027_v31 = vadd.f32 %v1026_v20, %v4269_v44  ;;  %v2735_v51 = vadd.f32 %v3530_v7, %v2543_v12  ;;  %v2922_v54 = vmax.f32 %v2730_v63, 0.0  ;;  %v1292_v27 = vadd.f32 %v1291_v4, %v1203_v32  ;;  %v3531_v12 = vld [vmem:[%s3781_s10 + $0x368] sm:$0xff] }
 0x14e   : > { %v1116_v40 = vadd.f32 %v1115_v26, %v1027_v31  ;;  %v2927_v9 = vmax.f32 %v2735_v51, 0.0  ;;  %3114 = vst [vmem:[%s4325_s16 + $0x338] sm:$0xff] %v2922_v54  ;;  %v2160_v36 = vmul.f32 %v4296_v55, %v1292_v27  ;;  %v3532_v26 = vld [vmem:[%s3781_s10 + $0x390] sm:$0xff] }
 0x150   : > { %v2165_v53 = vmul.f32 %v4281_v11, %v1116_v40  ;;  %3119 = vst [vmem:[%s4325_s16 + $0x360] sm:$0xff] %v2927_v9  ;;  %v2544_v58 = vadd.f32 %v4760_v49, %v2160_v36  ;;  %v4788_v36 = vpop.permute.xlu1 %2377 }
 0x151   : > { %v1204_v34 = vpop.f32.mrf.mxu2  ;;  %6000 = vst [vmem:[#allocation57_spill] sm:$0xff] %v4788_v36 }
 0x152   : > { %v2549_v13 = vadd.f32 %v4772_v59, %v2165_v53  ;;  %v1293_v10 = vpop.f32.mrf.mxu3  ;;  %v2736_v4 = vadd.f32 %v3531_v12, %v2544_v58  ;;  %v1205_v63 = vadd.f32 %v1204_v34, %v4269_v44  ;;  %v3533_v12 = vld [vmem:[%s3781_s10 + $0x398] sm:$0xff] }
 0x153   : > { %v1029_v32 = vpop.f32.mrf.mxu0 }
 0x154   : > { %v1118_v20 = vpop.f32.mrf.mxu1  ;;  %v2741_v31 = vadd.f32 %v3532_v26, %v2549_v13  ;;  %v1030_v7 = vadd.f32 %v1029_v32, %v4201_v42  ;;  %v2928_v51 = vmax.f32 %v2736_v4, 0.0  ;;  %v1294_v54 = vadd.f32 %v1293_v10, %v1205_v63 }
 0x155   : > { %1344 = vmatmul.bf16.gmra.mxu0 %v4011_v46 }
 0x156   : > { %1433 = vmatmul.bf16.gmra.mxu1 %v4013_v47  ;;  %v2933_v27 = vmax.f32 %v2741_v31, 0.0  ;;  %v1119_v40 = vadd.f32 %v1118_v20, %v1030_v7  ;;  %1522 = vmatmul.bf16.gmra.mxu2 %v4011_v46  ;;  %3120 = vst [vmem:[%s4325_s16 + $0x368] sm:$0xff] %v2928_v51  ;;  %v2166_v9 = vmul.f32 %v4296_v55, %v1294_v54  ;;  %v3534_v31 = vld [vmem:[%s3781_s10 + $0x3c0] sm:$0xff] }
 0x157   : > { %1611 = vmatmul.bf16.gmra.mxu3 %v4013_v47 }
 0x158   : > { %3125 = vst [vmem:[%s4325_s16 + $0x390] sm:$0xff] %v2933_v27  ;;  %v2171_v53 = vmul.f32 %v4281_v11, %v1119_v40  ;;  %v2550_v58 = vadd.f32 %v4772_v59, %v2166_v9 }
 0x159   : > { %v1207_v13 = vpop.f32.mrf.mxu2 }
 0x15a   : > { %v1296_v34 = vpop.f32.mrf.mxu3  ;;  %v2555_v10 = vadd.f32 %v4788_v36, %v2171_v53  ;;  %v2742_v4 = vadd.f32 %v3533_v12, %v2550_v58  ;;  %v1208_v63 = vadd.f32 %v1207_v13, %v4201_v42  ;;  %v4800_v53 = vpop.permute.xlu2 %2382  ;;  %v362_v58 = vld [vmem:[%s3781_s10 + $0x208] sm:$0xff]  ;;  %v368_v13 = vld [vmem:[%s3781_s10 + $0x238] sm:$0xff] }
 0x15b   : > { %v1031_v32 = vpop.f32.mrf.mxu0  ;;  %6001 = vst [vmem:[#allocation58_spill] sm:$0xff] %v4800_v53  ;;  %v458_v12 = vld [vmem:[%s3781_s10 + $0x508] sm:$0xff] }
 0x15c   : > { %v1120_v20 = vpop.f32.mrf.mxu1  ;;  %v1032_v26 = vadd.f32 %v1031_v32, %v4293_v39  ;;  %v2747_v7 = vadd.f32 %v3534_v31, %v2555_v10  ;;  %v2934_v51 = vmax.f32 %v2742_v4, 0.0  ;;  %v1297_v54 = vadd.f32 %v1296_v34, %v1208_v63  ;;  %v464_v31 = vld [vmem:[%s3781_s10 + $0x538] sm:$0xff]  ;;  %v361_v4 = vld [vmem:[%s3781_s10 + $0x200] sm:$0xff]  ;;  %v367_v34 = vld [vmem:[%s3781_s10 + $0x230] sm:$0xff] }
 0x15d   : > { %v556_v10 = vpack.c.bf16 %v368_v13, %v362_v58 }
 0x15e   : > { %v1121_v27 = vadd.f32 %v1120_v20, %v1032_v26  ;;  %v2939_v40 = vmax.f32 %v2747_v7, 0.0  ;;  %3126 = vst [vmem:[%s4325_s16 + $0x398] sm:$0xff] %v2934_v51  ;;  %v2172_v9 = vmul.f32 %v4296_v55, %v1297_v54  ;;  %v604_v20 = vpack.c.bf16 %v464_v31, %v458_v12  ;;  %v457_v7 = vld [vmem:[%s3781_s10 + $0x500] sm:$0xff]  ;;  %v463_v51 = vld [vmem:[%s3781_s10 + $0x530] sm:$0xff] }
 0x15f   : > { %v555_v26 = vpack.c.bf16 %v367_v34, %v361_v4  ;;  %1862 = vmatpush.bf16.msra.mxu2 %v556_v10  ;;  %v603_v42 = vpack.c.bf16 %v463_v51, %v457_v7  ;;  %v6002_v34 = vld [vmem:[#allocation6_spill] sm:$0xff]  ;;  %v6003_v10 = vld [vmem:[#allocation7_spill] sm:$0xff] }
 0x160   : > { %v2177_v32 = vmul.f32 %v4281_v11, %v1121_v27  ;;  %3131 = vst [vmem:[%s4325_s16 + $0x3c0] sm:$0xff] %v2939_v40  ;;  %v2556_v63 = vadd.f32 %v4788_v36, %v2172_v9  ;;  %v3535_v27 = vld [vmem:[%s3781_s10 + $0x3c8] sm:$0xff]  ;;  %1951 = vmatpush.bf16.msra.mxu3 %v604_v20  ;;  %v3536_v9 = vld [vmem:[%s3781_s10 + $0x3f0] sm:$0xff] }
 0x161   : > { %v1209_v47 = vpop.f32.mrf.mxu2  ;;  %1684 = vmatpush.bf16.msra.mxu0 %v555_v26  ;;  %1773 = vmatpush.bf16.msra.mxu1 %v603_v42  ;;  %v4824_v26 = vpop.permute.xlu0 %2387 }
 0x162   : > { %v2561_v54 = vadd.f32 %v4800_v53, %v2177_v32  ;;  %v1298_v46 = vpop.f32.mrf.mxu3  ;;  %v2748_v59 = vadd.f32 %v3535_v27, %v2556_v63  ;;  %v1210_v40 = vadd.f32 %v1209_v47, %v4293_v39  ;;  %6004 = vst [vmem:[#allocation59_spill] sm:$0xff] %v4824_v26 }
 0x163   : > { %v1034_v58 = vpop.f32.mrf.mxu0 }
 0x164   : > { %v1123_v13 = vpop.f32.mrf.mxu1  ;;  %v2753_v12 = vadd.f32 %v3536_v9, %v2561_v54  ;;  %v1035_v31 = vadd.f32 %v1034_v58, %v4291_v38  ;;  %v2940_v32 = vmax.f32 %v2748_v59, 0.0  ;;  %v1299_v4 = vadd.f32 %v1298_v46, %v1210_v40  ;;  %v3537_v54 = vld [vmem:[%s3781_s10 + $0x3f8] sm:$0xff]  ;;  %v6005_v9 = vld [vmem:[#allocation24_spill] sm:$0xff] }
 0x165   : > { %1349 = vmatmul.bf16.gmra.mxu0 %v6002_v34 }
 0x166   : > { %1438 = vmatmul.bf16.gmra.mxu1 %v6003_v10  ;;  %v2945_v63 = vmax.f32 %v2753_v12, 0.0  ;;  %v1124_v47 = vadd.f32 %v1123_v13, %v1035_v31  ;;  %1527 = vmatmul.bf16.gmra.mxu2 %v6002_v34  ;;  %3132 = vst [vmem:[%s4325_s16 + $0x3c8] sm:$0xff] %v2940_v32  ;;  %v2178_v20 = vmul.f32 %v4296_v55, %v1299_v4  ;;  %v3538_v31 = vld [vmem:[%s3781_s10 + $0x420] sm:$0xff] }
 0x167   : > { %1616 = vmatmul.bf16.gmra.mxu3 %v6003_v10  ;;  %v4836_v10 = vpop.permute.xlu1 %2392 }
 0x168   : > { %3137 = vst [vmem:[%s4325_s16 + $0x3f0] sm:$0xff] %v2945_v63  ;;  %v2183_v46 = vmul.f32 %v4281_v11, %v1124_v47  ;;  %v2562_v42 = vadd.f32 %v4800_v53, %v2178_v20 }
 0x169   : > { %v1212_v59 = vpop.f32.mrf.mxu2  ;;  %6006 = vst [vmem:[#allocation60_spill] sm:$0xff] %v4836_v10 }
 0x16a   : > { %v1301_v7 = vpop.f32.mrf.mxu3  ;;  %v2567_v51 = vadd.f32 %v4824_v26, %v2183_v46  ;;  %v2754_v27 = vadd.f32 %v3537_v54, %v2562_v42  ;;  %v1213_v40 = vadd.f32 %v1212_v59, %v4291_v38 }
 0x16b   : > { %v1036_v58 = vpop.f32.mrf.mxu0 }
 0x16c   : > { %v1125_v13 = vpop.f32.mrf.mxu1  ;;  %v1037_v12 = vadd.f32 %v1036_v58, %v6005_v9  ;;  %v2759_v32 = vadd.f32 %v3538_v31, %v2567_v51  ;;  %v2946_v4 = vmax.f32 %v2754_v27, 0.0  ;;  %v1302_v63 = vadd.f32 %v1301_v7, %v1213_v40  ;;  %v3539_v51 = vld [vmem:[%s3781_s10 + $0x428] sm:$0xff] }
 0x16e   : > { %v1126_v47 = vadd.f32 %v1125_v13, %v1037_v12  ;;  %v2951_v20 = vmax.f32 %v2759_v32, 0.0  ;;  %3138 = vst [vmem:[%s4325_s16 + $0x3f8] sm:$0xff] %v2946_v4  ;;  %v2184_v46 = vmul.f32 %v4296_v55, %v1302_v63  ;;  %v3540_v12 = vld [vmem:[%s3781_s10 + $0x450] sm:$0xff]  ;;  %v6007_v32 = vld [vmem:[#allocation35_spill] sm:$0xff] }
 0x170   : > { %v2189_v42 = vmul.f32 %v4281_v11, %v1126_v47  ;;  %3143 = vst [vmem:[%s4325_s16 + $0x420] sm:$0xff] %v2951_v20  ;;  %v2568_v59 = vadd.f32 %v4824_v26, %v2184_v46  ;;  %v6008_v20 = vld [vmem:[#allocation8_spill] sm:$0xff]  ;;  %v6009_v46 = vld [vmem:[#allocation9_spill] sm:$0xff] }
 0x171   : > { %v1214_v58 = vpop.f32.mrf.mxu2 }
 0x172   : > { %v2573_v54 = vadd.f32 %v4836_v10, %v2189_v42  ;;  %v1303_v34 = vpop.f32.mrf.mxu3  ;;  %v2760_v7 = vadd.f32 %v3539_v51, %v2568_v59  ;;  %v1215_v27 = vadd.f32 %v1214_v58, %v6005_v9 }
 0x173   : > { %v1039_v40 = vpop.f32.mrf.mxu0 }
 0x174   : > { %v1128_v13 = vpop.f32.mrf.mxu1  ;;  %v2765_v31 = vadd.f32 %v3540_v12, %v2573_v54  ;;  %v1040_v4 = vadd.f32 %v1039_v40, %v6007_v32  ;;  %v2952_v63 = vmax.f32 %v2760_v7, 0.0  ;;  %v1304_v47 = vadd.f32 %v1303_v34, %v1215_v27  ;;  %v4852_v54 = vpop.permute.xlu2 %2397  ;;  %v3541_v40 = vld [vmem:[%s3781_s10 + $0x458] sm:$0xff] }
 0x175   : > { %1354 = vmatmul.bf16.gmra.mxu0 %v6008_v20  ;;  %6010 = vst [vmem:[#allocation61_spill] sm:$0xff] %v4852_v54 }
 0x176   : > { %1443 = vmatmul.bf16.gmra.mxu1 %v6009_v46  ;;  %v2957_v42 = vmax.f32 %v2765_v31, 0.0  ;;  %v1129_v26 = vadd.f32 %v1128_v13, %v1040_v4  ;;  %1532 = vmatmul.bf16.gmra.mxu2 %v6008_v20  ;;  %3144 = vst [vmem:[%s4325_s16 + $0x428] sm:$0xff] %v2952_v63  ;;  %v2190_v59 = vmul.f32 %v4296_v55, %v1304_v47  ;;  %v6011_v63 = vld [vmem:[#allocation34_spill] sm:$0xff] }
 0x177   : > { %1621 = vmatmul.bf16.gmra.mxu3 %v6009_v46 }
 0x178   : > { %3149 = vst [vmem:[%s4325_s16 + $0x450] sm:$0xff] %v2957_v42  ;;  %v2195_v34 = vmul.f32 %v4281_v11, %v1129_v26  ;;  %v2574_v58 = vadd.f32 %v4836_v10, %v2190_v59  ;;  %v3542_v26 = vld [vmem:[%s3781_s10 + $0x480] sm:$0xff]  ;;  %v446_v10 = vld [vmem:[%s3781_s10 + $0x4a8] sm:$0xff] }
 0x179   : > { %v1217_v51 = vpop.f32.mrf.mxu2 }
 0x17a   : > { %v1306_v7 = vpop.f32.mrf.mxu3  ;;  %v2579_v27 = vadd.f32 %v4852_v54, %v2195_v34  ;;  %v2766_v13 = vadd.f32 %v3541_v40, %v2574_v58  ;;  %v1218_v12 = vadd.f32 %v1217_v51, %v6007_v32  ;;  %v4864_v51 = vpop.permute.xlu0 %2402  ;;  %v350_v40 = vld [vmem:[%s3781_s10 + $0x1a8] sm:$0xff]  ;;  %v356_v32 = vld [vmem:[%s3781_s10 + $0x1d8] sm:$0xff] }
 0x17b   : > { %v1041_v31 = vpop.f32.mrf.mxu0  ;;  %6012 = vst [vmem:[#allocation62_spill] sm:$0xff] %v4864_v51 }
 0x17c   : > { %v1130_v4 = vpop.f32.mrf.mxu1  ;;  %v1042_v47 = vadd.f32 %v1041_v31, %v6011_v63  ;;  %v2771_v42 = vadd.f32 %v3542_v26, %v2579_v27  ;;  %v2958_v59 = vmax.f32 %v2766_v13, 0.0  ;;  %v1307_v46 = vadd.f32 %v1306_v7, %v1218_v12  ;;  %v452_v26 = vld [vmem:[%s3781_s10 + $0x4d8] sm:$0xff]  ;;  %v349_v13 = vld [vmem:[%s3781_s10 + $0x1a0] sm:$0xff]  ;;  %v355_v7 = vld [vmem:[%s3781_s10 + $0x1d0] sm:$0xff] }
 0x17d   : > { %v550_v27 = vpack.c.bf16 %v356_v32, %v350_v40 }
 0x17e   : > { %v1131_v34 = vadd.f32 %v1130_v4, %v1042_v47  ;;  %v2963_v20 = vmax.f32 %v2771_v42, 0.0  ;;  %3150 = vst [vmem:[%s4325_s16 + $0x458] sm:$0xff] %v2958_v59  ;;  %v2196_v58 = vmul.f32 %v4296_v55, %v1307_v46  ;;  %v598_v4 = vpack.c.bf16 %v452_v26, %v446_v10  ;;  %v445_v42 = vld [vmem:[%s3781_s10 + $0x4a0] sm:$0xff]  ;;  %v451_v46 = vld [vmem:[%s3781_s10 + $0x4d0] sm:$0xff] }
 0x17f   : > { %v549_v47 = vpack.c.bf16 %v355_v7, %v349_v13  ;;  %1863 = vmatpush.bf16.msra.mxu2 %v550_v27  ;;  %v597_v53 = vpack.c.bf16 %v451_v46, %v445_v42  ;;  %v3544_v10 = vld [vmem:[%s3781_s10 + $0x4b0] sm:$0xff]  ;;  %v6013_v26 = vld [vmem:[#allocation26_spill] sm:$0xff] }
 0x180   : > { %v2201_v31 = vmul.f32 %v4281_v11, %v1131_v34  ;;  %3155 = vst [vmem:[%s4325_s16 + $0x480] sm:$0xff] %v2963_v20  ;;  %v2580_v12 = vadd.f32 %v4852_v54, %v2196_v58  ;;  %v3543_v34 = vld [vmem:[%s3781_s10 + $0x488] sm:$0xff]  ;;  %1952 = vmatpush.bf16.msra.mxu3 %v598_v4  ;;  %v6014_v54 = vld [vmem:[#allocation13_spill] sm:$0xff]  ;;  %v6015_v27 = vld [vmem:[#allocation14_spill] sm:$0xff] }
 0x181   : > { %v1219_v9 = vpop.f32.mrf.mxu2  ;;  %1685 = vmatpush.bf16.msra.mxu0 %v549_v47  ;;  %1774 = vmatpush.bf16.msra.mxu1 %v597_v53  ;;  %v4888_v47 = vpop.permute.xlu1 %2407 }
 0x182   : > { %v2585_v59 = vadd.f32 %v4864_v51, %v2201_v31  ;;  %v1308_v38 = vpop.f32.mrf.mxu3  ;;  %v2772_v39 = vadd.f32 %v3543_v34, %v2580_v12  ;;  %v1220_v32 = vadd.f32 %v1219_v9, %v6011_v63  ;;  %6016 = vst [vmem:[#allocation63_spill] sm:$0xff] %v4888_v47 }
 0x183   : > { %v1044_v20 = vpop.f32.mrf.mxu0 }
 0x184   : > { %v1133_v40 = vpop.f32.mrf.mxu1  ;;  %v2777_v58 = vadd.f32 %v3544_v10, %v2585_v59  ;;  %v1045_v13 = vadd.f32 %v1044_v20, %v6013_v26  ;;  %v2964_v31 = vmax.f32 %v2772_v39, 0.0  ;;  %v1309_v7 = vadd.f32 %v1308_v38, %v1220_v32  ;;  %v3545_v59 = vld [vmem:[%s3781_s10 + $0x4b8] sm:$0xff]  ;;  %v6017_v10 = vld [vmem:[#allocation38_spill] sm:$0xff] }
 0x185   : > { %1359 = vmatmul.bf16.gmra.mxu0 %v6014_v54 }
 0x186   : > { %1448 = vmatmul.bf16.gmra.mxu1 %v6015_v27  ;;  %v2969_v12 = vmax.f32 %v2777_v58, 0.0  ;;  %v1134_v9 = vadd.f32 %v1133_v40, %v1045_v13  ;;  %1537 = vmatmul.bf16.gmra.mxu2 %v6014_v54  ;;  %3156 = vst [vmem:[%s4325_s16 + $0x488] sm:$0xff] %v2964_v31  ;;  %v2202_v4 = vmul.f32 %v4296_v55, %v1309_v7  ;;  %v3546_v13 = vld [vmem:[%s3781_s10 + $0x4e0] sm:$0xff] }
 0x187   : > { %1626 = vmatmul.bf16.gmra.mxu3 %v6015_v27  ;;  %v4900_v27 = vpop.permute.xlu2 %2412 }
 0x188   : > { %3161 = vst [vmem:[%s4325_s16 + $0x4b0] sm:$0xff] %v2969_v12  ;;  %v2207_v38 = vmul.f32 %v4281_v11, %v1134_v9  ;;  %v2586_v39 = vadd.f32 %v4864_v51, %v2202_v4 }
 0x189   : > { %v1222_v53 = vpop.f32.mrf.mxu2  ;;  %6018 = vst [vmem:[#allocation64_spill] sm:$0xff] %v4900_v27 }
 0x18a   : > { %v1311_v42 = vpop.f32.mrf.mxu3  ;;  %v2591_v46 = vadd.f32 %v4888_v47, %v2207_v38  ;;  %v2778_v34 = vadd.f32 %v3545_v59, %v2586_v39  ;;  %v1223_v32 = vadd.f32 %v1222_v53, %v6013_v26 }
 0x18b   : > { %v1046_v20 = vpop.f32.mrf.mxu0 }
 0x18c   : > { %v1135_v40 = vpop.f32.mrf.mxu1  ;;  %v1047_v58 = vadd.f32 %v1046_v20, %v6017_v10  ;;  %v2783_v31 = vadd.f32 %v3546_v13, %v2591_v46  ;;  %v2970_v7 = vmax.f32 %v2778_v34, 0.0  ;;  %v1312_v12 = vadd.f32 %v1311_v42, %v1223_v32  ;;  %v3547_v46 = vld [vmem:[%s3781_s10 + $0x4e8] sm:$0xff] }
 0x18e   : > { %v1136_v9 = vadd.f32 %v1135_v40, %v1047_v58  ;;  %v2975_v4 = vmax.f32 %v2783_v31, 0.0  ;;  %3162 = vst [vmem:[%s4325_s16 + $0x4b8] sm:$0xff] %v2970_v7  ;;  %v2208_v38 = vmul.f32 %v4296_v55, %v1312_v12  ;;  %v3548_v58 = vld [vmem:[%s3781_s10 + $0x510] sm:$0xff]  ;;  %v6019_v31 = vld [vmem:[#allocation37_spill] sm:$0xff] }
 0x190   : > { %v2213_v39 = vmul.f32 %v4281_v11, %v1136_v9  ;;  %3167 = vst [vmem:[%s4325_s16 + $0x4e0] sm:$0xff] %v2975_v4  ;;  %v2592_v53 = vadd.f32 %v4888_v47, %v2208_v38  ;;  %v6020_v4 = vld [vmem:[#allocation17_spill] sm:$0xff]  ;;  %v6021_v38 = vld [vmem:[#allocation18_spill] sm:$0xff] }
 0x191   : > { %v1224_v20 = vpop.f32.mrf.mxu2 }
 0x192   : > { %v2597_v59 = vadd.f32 %v4900_v27, %v2213_v39  ;;  %v1313_v54 = vpop.f32.mrf.mxu3  ;;  %v2784_v42 = vadd.f32 %v3547_v46, %v2592_v53  ;;  %v1225_v34 = vadd.f32 %v1224_v20, %v6017_v10 }
 0x193   : > { %v1049_v32 = vpop.f32.mrf.mxu0 }
 0x194   : > { %v1138_v40 = vpop.f32.mrf.mxu1  ;;  %v2789_v13 = vadd.f32 %v3548_v58, %v2597_v59  ;;  %v1050_v7 = vadd.f32 %v1049_v32, %v6019_v31  ;;  %v2976_v12 = vmax.f32 %v2784_v42, 0.0  ;;  %v1314_v9 = vadd.f32 %v1313_v54, %v1225_v34  ;;  %v4916_v59 = vpop.permute.xlu0 %2417  ;;  %v3549_v32 = vld [vmem:[%s3781_s10 + $0x518] sm:$0xff] }
 0x195   : > { %1364 = vmatmul.bf16.gmra.mxu0 %v6020_v4  ;;  %6022 = vst [vmem:[#allocation65_spill] sm:$0xff] %v4916_v59 }
 0x196   : > { %1453 = vmatmul.bf16.gmra.mxu1 %v6021_v38  ;;  %v2981_v39 = vmax.f32 %v2789_v13, 0.0  ;;  %v1139_v47 = vadd.f32 %v1138_v40, %v1050_v7  ;;  %1542 = vmatmul.bf16.gmra.mxu2 %v6020_v4  ;;  %3168 = vst [vmem:[%s4325_s16 + $0x4e8] sm:$0xff] %v2976_v12  ;;  %v2214_v53 = vmul.f32 %v4296_v55, %v1314_v9  ;;  %v6023_v12 = vld [vmem:[#allocation29_spill] sm:$0xff] }
 0x197   : > { %1631 = vmatmul.bf16.gmra.mxu3 %v6021_v38 }
 0x198   : > { %3173 = vst [vmem:[%s4325_s16 + $0x510] sm:$0xff] %v2981_v39  ;;  %v2219_v54 = vmul.f32 %v4281_v11, %v1139_v47  ;;  %v2598_v20 = vadd.f32 %v4900_v27, %v2214_v53  ;;  %v3550_v47 = vld [vmem:[%s3781_s10 + $0x540] sm:$0xff] }
 0x199   : > { %v1227_v46 = vpop.f32.mrf.mxu2 }
 0x19a   : > { %v1316_v42 = vpop.f32.mrf.mxu3  ;;  %v2603_v34 = vadd.f32 %v4916_v59, %v2219_v54  ;;  %v2790_v40 = vadd.f32 %v3549_v32, %v2598_v20  ;;  %v1228_v58 = vadd.f32 %v1227_v46, %v6019_v31  ;;  %v4928_v20 = vpop.permute.xlu1 %2422  ;;  %v338_v32 = vld [vmem:[%s3781_s10 + $0x148] sm:$0xff]  ;;  %v344_v31 = vld [vmem:[%s3781_s10 + $0x178] sm:$0xff] }
 0x19b   : > { %v1051_v13 = vpop.f32.mrf.mxu0  ;;  %6024 = vst [vmem:[#allocation66_spill] sm:$0xff] %v4928_v20 }
 0x19c   : > { %v1140_v7 = vpop.f32.mrf.mxu1  ;;  %v1052_v9 = vadd.f32 %v1051_v13, %v6023_v12  ;;  %v2795_v39 = vadd.f32 %v3550_v47, %v2603_v34  ;;  %v2982_v53 = vmax.f32 %v2790_v40, 0.0  ;;  %v1317_v38 = vadd.f32 %v1316_v42, %v1228_v58  ;;  %v434_v13 = vld [vmem:[%s3781_s10 + $0x448] sm:$0xff]  ;;  %v440_v40 = vld [vmem:[%s3781_s10 + $0x478] sm:$0xff] }
 0x19d   : > { %v544_v34 = vpack.c.bf16 %v344_v31, %v338_v32  ;;  %v3551_v47 = vld [vmem:[%s3781_s10 + $0x548] sm:$0xff]  ;;  %v6025_v32 = vld [vmem:[#allocation22_spill] sm:$0xff] }
 0x19e   : > { %v1141_v4 = vadd.f32 %v1140_v7, %v1052_v9  ;;  %v2987_v27 = vmax.f32 %v2795_v39, 0.0  ;;  %3174 = vst [vmem:[%s4325_s16 + $0x518] sm:$0xff] %v2982_v53  ;;  %v2220_v54 = vmul.f32 %v4296_v55, %v1317_v38  ;;  %v592_v9 = vpack.c.bf16 %v440_v40, %v434_v13  ;;  %v3552_v53 = vld [vmem:[%s3781_s10 + $0x570] sm:$0xff] }
 0x19f   : > { %1864 = vmatpush.bf16.msra.mxu2 %v544_v34 }
 0x1a0   : > { %v2225_v46 = vmul.f32 %v4281_v11, %v1141_v4  ;;  %3179 = vst [vmem:[%s4325_s16 + $0x540] sm:$0xff] %v2987_v27  ;;  %v2604_v10 = vadd.f32 %v4916_v59, %v2220_v54  ;;  %1953 = vmatpush.bf16.msra.mxu3 %v592_v9  ;;  %v343_v9 = vld [vmem:[%s3781_s10 + $0x170] sm:$0xff]  ;;  %v3554_v59 = vld [vmem:[%s3781_s10 + $0x5a0] sm:$0xff] }
 0x1a1   : > { %v1229_v58 = vpop.f32.mrf.mxu2 }
 0x1a2   : > { %v2609_v42 = vadd.f32 %v4928_v20, %v2225_v46  ;;  %v1318_v7 = vpop.f32.mrf.mxu3  ;;  %v2796_v38 = vadd.f32 %v3551_v47, %v2604_v10  ;;  %v1230_v39 = vadd.f32 %v1229_v58, %v6023_v12  ;;  %v6026_v10 = vld [vmem:[#allocation23_spill] sm:$0xff]  ;;  %v433_v47 = vld [vmem:[%s3781_s10 + $0x440] sm:$0xff] }
 0x1a3   : > { %v1054_v4 = vpop.f32.mrf.mxu0 }
 0x1a4   : > { %v1143_v27 = vpop.f32.mrf.mxu1  ;;  %v2801_v26 = vadd.f32 %v3552_v53, %v2609_v42  ;;  %v1055_v31 = vadd.f32 %v1054_v4, %v4380_v28  ;;  %v2988_v54 = vmax.f32 %v2796_v38, 0.0  ;;  %v1319_v46 = vadd.f32 %v1318_v7, %v1230_v39  ;;  %v4948_v42 = vpop.permute.xlu2 %2427  ;;  %v337_v7 = vld [vmem:[%s3781_s10 + $0x140] sm:$0xff]  ;;  %v439_v39 = vld [vmem:[%s3781_s10 + $0x470] sm:$0xff] }
 0x1a5   : > { %1369 = vmatmul.bf16.gmra.mxu0 %v6025_v32  ;;  %v543_v38 = vpack.c.bf16 %v343_v9, %v337_v7 }
 0x1a6   : > { %1458 = vmatmul.bf16.gmra.mxu1 %v6026_v10  ;;  %v2993_v13 = vmax.f32 %v2801_v26, 0.0  ;;  %v1144_v40 = vadd.f32 %v1143_v27, %v1055_v31  ;;  %1547 = vmatmul.bf16.gmra.mxu2 %v6025_v32  ;;  %3180 = vst [vmem:[%s4325_s16 + $0x548] sm:$0xff] %v2988_v54  ;;  %v2226_v34 = vmul.f32 %v4296_v55, %v1319_v46  ;;  %v3553_v54 = vld [vmem:[%s3781_s10 + $0x578] sm:$0xff]  ;;  %v6027_v32 = vld [vmem:[#allocation39_spill] sm:$0xff] }
 0x1a7   : > { %1636 = vmatmul.bf16.gmra.mxu3 %v6026_v10  ;;  %v591_v31 = vpack.c.bf16 %v439_v39, %v433_v47  ;;  %1686 = vmatpush.bf16.msra.mxu0 %v543_v38 }
 0x1a8   : > { %3185 = vst [vmem:[%s4325_s16 + $0x570] sm:$0xff] %v2993_v13  ;;  %v2231_v58 = vmul.f32 %v4281_v11, %v1144_v40  ;;  %v2610_v26 = vadd.f32 %v4928_v20, %v2226_v34 }
 0x1a9   : > { %v1232_v4 = vpop.f32.mrf.mxu2  ;;  %1775 = vmatpush.bf16.msra.mxu1 %v591_v31  ;;  %v3555_v31 = vld [vmem:[%s3781_s10 + $0x5a8] sm:$0xff] }
 0x1aa   : > { %v1321_v27 = vpop.f32.mrf.mxu3  ;;  %v2615_v53 = vadd.f32 %v4948_v42, %v2231_v58  ;;  %v2802_v46 = vadd.f32 %v3553_v54, %v2610_v26  ;;  %v1233_v13 = vadd.f32 %v1232_v4, %v4380_v28  ;;  %v4964_v26 = vpop.permute.xlu0 %2432 }
 0x1ab   : > { %v1056_v40 = vpop.f32.mrf.mxu0  ;;  %6028 = vst [vmem:[#allocation67_spill] sm:$0xff] %v4964_v26 }
 0x1ac   : > { %v1145_v10 = vpop.f32.mrf.mxu1  ;;  %v1057_v12 = vadd.f32 %v1056_v40, %v6027_v32  ;;  %v2807_v34 = vadd.f32 %v3554_v59, %v2615_v53  ;;  %v2994_v7 = vmax.f32 %v2802_v46, 0.0  ;;  %v1322_v9 = vadd.f32 %v1321_v27, %v1233_v13  ;;  %v3556_v46 = vld [vmem:[%s3781_s10 + $0x5d0] sm:$0xff] }
 0x1ad   : > { %v6029_v40 = vld [vmem:[#allocation12_spill] sm:$0xff] }
 0x1ae   : > { %v1146_v20 = vadd.f32 %v1145_v10, %v1057_v12  ;;  %v2999_v58 = vmax.f32 %v2807_v34, 0.0  ;;  %3186 = vst [vmem:[%s4325_s16 + $0x578] sm:$0xff] %v2994_v7  ;;  %v2232_v47 = vmul.f32 %v4296_v55, %v1322_v9 }
 0x1b0   : > { %v2237_v39 = vmul.f32 %v4281_v11, %v1146_v20  ;;  %3191 = vst [vmem:[%s4325_s16 + $0x5a0] sm:$0xff] %v2999_v58  ;;  %v2616_v38 = vadd.f32 %v4948_v42, %v2232_v47  ;;  %v3557_v11 = vld [vmem:[%s4264_s24] sm:$0x3f]  ;;  %v6030_v58 = vld [vmem:[#allocation27_spill] sm:$0xff]  ;;  %v6031_v47 = vld [vmem:[#allocation28_spill] sm:$0xff] }
 0x1b1   : > { %v1234_v59 = vpop.f32.mrf.mxu2  ;;  %v4975_v20 = vperm.slane %v3557_v11, 2 }
 0x1b2   : > { %v2621_v4 = vadd.f32 %v4964_v26, %v2237_v39  ;;  %v1323_v53 = vpop.f32.mrf.mxu3  ;;  %v2808_v27 = vadd.f32 %v3555_v31, %v2616_v38  ;;  %v1235_v12 = vadd.f32 %v1234_v59, %v6027_v32 }
 0x1b3   : > { %v1335_v10 = vpop.f32.mrf.mxu0 }
 0x1b4   : > { %v1424_v54 = vpop.f32.mrf.mxu1  ;;  %v2813_v13 = vadd.f32 %v3556_v46, %v2621_v4  ;;  %v1336_v34 = vadd.f32 %v1335_v10, %v6029_v40  ;;  %v3000_v7 = vmax.f32 %v2808_v27, 0.0  ;;  %v1324_v9 = vadd.f32 %v1323_v53, %v1235_v12  ;;  %v6032_v53 = vld [vmem:[#allocation32_spill] sm:$0xff] }
 0x1b5   : > { %1374 = vmatmul.bf16.gmra.mxu0 %v6030_v58 }
 0x1b6   : > { %1463 = vmatmul.bf16.gmra.mxu1 %v6031_v47  ;;  %v3005_v39 = vmax.f32 %v2813_v13, 0.0  ;;  %v1425_v38 = vadd.f32 %v1424_v54, %v1336_v34  ;;  %1552 = vmatmul.bf16.gmra.mxu2 %v6030_v58  ;;  %3192 = vst [vmem:[%s4325_s16 + $0x5a8] sm:$0xff] %v3000_v7  ;;  %v2238_v4 = vmul.f32 %v4296_v55, %v1324_v9  ;;  %v3558_v54 = vld [vmem:[%s3781_s10 + $0x5d8] sm:$0xff]  ;;  %v4989_v34 = vperm.slane %v3557_v11, 3  ;;  %v3559_v9 = vld [vmem:[%s3781_s10 + $0x10] sm:$0xff] }
 0x1b7   : > { %1641 = vmatmul.bf16.gmra.mxu3 %v6031_v47 }
 0x1b8   : > { %3197 = vst [vmem:[%s4325_s16 + $0x5d0] sm:$0xff] %v3005_v39  ;;  %v2053_v59 = vmul.f32 %v4975_v20, %v1425_v38  ;;  %v2622_v31 = vadd.f32 %v4964_v26, %v2238_v4  ;;  %v6033_v38 = vld [vmem:[#allocation16_spill] sm:$0xff] }
 0x1b9   : > { %v1513_v12 = vpop.f32.mrf.mxu2 }
 0x1ba   : > { %v2437_v27 = vadd.f32 %v6032_v53, %v2053_v59  ;;  %v1602_v10 = vpop.f32.mrf.mxu3  ;;  %v2814_v46 = vadd.f32 %v3558_v54, %v2622_v31  ;;  %v1514_v13 = vadd.f32 %v1513_v12, %v6029_v40  ;;  %v326_v12 = vld [vmem:[%s3781_s10 + $0xe8] sm:$0xff]  ;;  %v332_v54 = vld [vmem:[%s3781_s10 + $0x118] sm:$0xff] }
 0x1bb   : > { %v1337_v55 = vpop.f32.mrf.mxu0  ;;  %v422_v40 = vld [vmem:[%s3781_s10 + $0x3e8] sm:$0xff] }
 0x1bc   : > { %v1426_v7 = vpop.f32.mrf.mxu1  ;;  %v2629_v39 = vadd.f32 %v3559_v9, %v2437_v27  ;;  %v1338_v4 = vadd.f32 %v1337_v55, %v6033_v38  ;;  %v3006_v59 = vmax.f32 %v2814_v46, 0.0  ;;  %v1603_v47 = vadd.f32 %v1602_v10, %v1514_v13  ;;  %v428_v9 = vld [vmem:[%s3781_s10 + $0x418] sm:$0xff] }
 0x1bd   : > { %v538_v27 = vpack.c.bf16 %v332_v54, %v326_v12  ;;  %v586_v55 = vpack.c.bf16 %v428_v9, %v422_v40  ;;  %v6035_v40 = vld [vmem:[#allocation33_spill] sm:$0xff] }
 0x1be   : > { %v2821_v58 = vmax.f32 %v2629_v39, 0.0  ;;  %v1427_v26 = vadd.f32 %v1426_v7, %v1338_v4  ;;  %3198 = vst [vmem:[%s4325_s16 + $0x5d8] sm:$0xff] %v3006_v59  ;;  %v2054_v31 = vmul.f32 %v4989_v34, %v1603_v47  ;;  %v3560_v7 = vld [vmem:[%s3781_s10 + $0x18] sm:$0xff]  ;;  %v3561_v4 = vld [vmem:[%s3781_s10 + $0x40] sm:$0xff] }
 0x1bf   : > { %1865 = vmatpush.bf16.msra.mxu2 %v538_v27  ;;  %1954 = vmatpush.bf16.msra.mxu3 %v586_v55  ;;  %v325_v55 = vld [vmem:[%s3781_s10 + $0xe0] sm:$0xff] }
 0x1c0   : > { %3013 = vst [vmem:[%s4325_s16 + $0x10] sm:$0xff] %v2821_v58  ;;  %v2059_v11 = vmul.f32 %v4975_v20, %v1427_v26  ;;  %v2438_v32 = vadd.f32 %v6032_v53, %v2054_v31  ;;  %v6034_v31 = vld [vmem:[#allocation11_spill] sm:$0xff] }
 0x1c1   : > { %v1515_v10 = vpop.f32.mrf.mxu2 }
 0x1c2   : > { %v2443_v46 = vadd.f32 %v4407_v18, %v2059_v11  ;;  %v1604_v13 = vpop.f32.mrf.mxu3  ;;  %v2630_v39 = vadd.f32 %v3560_v7, %v2438_v32  ;;  %v1516_v47 = vadd.f32 %v1515_v10, %v6033_v38  ;;  %v6036_v32 = vld [vmem:[#allocation36_spill] sm:$0xff]  ;;  %v421_v7 = vld [vmem:[%s3781_s10 + $0x3e0] sm:$0xff] }
 0x1c3   : > { %v1340_v58 = vpop.f32.mrf.mxu0 }
 0x1c4   : > { %v1429_v26 = vpop.f32.mrf.mxu1  ;;  %v2635_v59 = vadd.f32 %v3561_v4, %v2443_v46  ;;  %v1341_v12 = vadd.f32 %v1340_v58, %v6034_v31  ;;  %v2822_v11 = vmax.f32 %v2630_v39, 0.0  ;;  %v1605_v54 = vadd.f32 %v1604_v13, %v1516_v47  ;;  %v331_v13 = vld [vmem:[%s3781_s10 + $0x110] sm:$0xff] }
 0x1c5   : > { %1379 = vmatmul.bf16.gmra.mxu0 %v6035_v40  ;;  %v537_v47 = vpack.c.bf16 %v331_v13, %v325_v55  ;;  %v427_v58 = vld [vmem:[%s3781_s10 + $0x410] sm:$0xff] }
 0x1c6   : > { %1468 = vmatmul.bf16.gmra.mxu1 %v6036_v32  ;;  %v2827_v9 = vmax.f32 %v2635_v59, 0.0  ;;  %v1430_v10 = vadd.f32 %v1429_v26, %v1341_v12  ;;  %1557 = vmatmul.bf16.gmra.mxu2 %v6035_v40  ;;  %3014 = vst [vmem:[%s4325_s16 + $0x18] sm:$0xff] %v2822_v11  ;;  %v2060_v27 = vmul.f32 %v4989_v34, %v1605_v54  ;;  %v3562_v11 = vld [vmem:[%s3781_s10 + $0x48] sm:$0xff]  ;;  %v3563_v40 = vld [vmem:[%s3781_s10 + $0x70] sm:$0xff] }
 0x1c7   : > { %1646 = vmatmul.bf16.gmra.mxu3 %v6036_v32  ;;  %v585_v12 = vpack.c.bf16 %v427_v58, %v421_v7  ;;  %1687 = vmatpush.bf16.msra.mxu0 %v537_v47 }
 0x1c8   : > { %3019 = vst [vmem:[%s4325_s16 + $0x40] sm:$0xff] %v2827_v9  ;;  %v2065_v46 = vmul.f32 %v4975_v20, %v1430_v10  ;;  %v2444_v39 = vadd.f32 %v4407_v18, %v2060_v27 }
 0x1c9   : > { %v1518_v4 = vpop.f32.mrf.mxu2  ;;  %1776 = vmatpush.bf16.msra.mxu1 %v585_v12 }
 0x1ca   : > { %v2449_v26 = vadd.f32 %v4405_v37, %v2065_v46  ;;  %v1607_v59 = vpop.f32.mrf.mxu3  ;;  %v2636_v54 = vadd.f32 %v3562_v11, %v2444_v39  ;;  %v1519_v9 = vadd.f32 %v1518_v4, %v6034_v31  ;;  %v3565_v11 = vld [vmem:[%s3781_s10 + $0xa0] sm:$0xff] }
 0x1cb   : > { %v1342_v10 = vpop.f32.mrf.mxu0 }
 0x1cc   : > { %v1431_v32 = vpop.f32.mrf.mxu1  ;;  %v2641_v38 = vadd.f32 %v3563_v40, %v2449_v26  ;;  %v1343_v27 = vadd.f32 %v1342_v10, %v4158_v3  ;;  %v2828_v55 = vmax.f32 %v2636_v54, 0.0  ;;  %v1608_v46 = vadd.f32 %v1607_v59, %v1519_v9  ;;  %v3564_v26 = vld [vmem:[%s3781_s10 + $0x78] sm:$0xff] }
 0x1ce   : > { %v2833_v13 = vmax.f32 %v2641_v38, 0.0  ;;  %v1432_v18 = vadd.f32 %v1431_v32, %v1343_v27  ;;  %3020 = vst [vmem:[%s4325_s16 + $0x48] sm:$0xff] %v2828_v55  ;;  %v2066_v7 = vmul.f32 %v4989_v34, %v1608_v46 }
 0x1d0   : > { %3025 = vst [vmem:[%s4325_s16 + $0x70] sm:$0xff] %v2833_v13  ;;  %v2071_v39 = vmul.f32 %v4975_v20, %v1432_v18  ;;  %v2450_v58 = vadd.f32 %v4405_v37, %v2066_v7 }
 0x1d1   : > { %v1520_v4 = vpop.f32.mrf.mxu2 }
 0x1d2   : > { %v2455_v47 = vadd.f32 %v4369_v2, %v2071_v39  ;;  %v1609_v40 = vpop.f32.mrf.mxu3  ;;  %v2642_v12 = vadd.f32 %v3564_v26, %v2450_v58  ;;  %v1521_v59 = vadd.f32 %v1520_v4, %v4158_v3  ;;  %v3566_v4 = vld [vmem:[%s3781_s10 + $0xa8] sm:$0xff] }
 0x1d3   : > { %v1345_v38 = vpop.f32.mrf.mxu0 }
 0x1d4   : > { %v1434_v32 = vpop.f32.mrf.mxu1  ;;  %v2647_v54 = vadd.f32 %v3565_v11, %v2455_v47  ;;  %v1346_v9 = vadd.f32 %v1345_v38, %v4074_v15  ;;  %v2834_v10 = vmax.f32 %v2642_v12, 0.0  ;;  %v1610_v18 = vadd.f32 %v1609_v40, %v1521_v59  ;;  %v3567_v38 = vld [vmem:[%s3781_s10 + $0xd0] sm:$0xff] }
 0x1d5   : > { %1384 = vmatmul.bf16.gmra.mxu0 %v4382_v60 }
 0x1d6   : > { %1473 = vmatmul.bf16.gmra.mxu1 %v4384_v48  ;;  %v2839_v27 = vmax.f32 %v2647_v54, 0.0  ;;  %v1435_v55 = vadd.f32 %v1434_v32, %v1346_v9  ;;  %1562 = vmatmul.bf16.gmra.mxu2 %v4382_v60  ;;  %3026 = vst [vmem:[%s4325_s16 + $0x78] sm:$0xff] %v2834_v10  ;;  %v2072_v46 = vmul.f32 %v4989_v34, %v1610_v18 }
 0x1d7   : > { %1651 = vmatmul.bf16.gmra.mxu3 %v4384_v48 }
 0x1d8   : > { %3031 = vst [vmem:[%s4325_s16 + $0xa0] sm:$0xff] %v2839_v27  ;;  %v2077_v13 = vmul.f32 %v4975_v20, %v1435_v55  ;;  %v2456_v7 = vadd.f32 %v4369_v2, %v2072_v46  ;;  %v314_v46 = vld [vmem:[%s3781_s10 + $0x88] sm:$0xff] }
 0x1d9   : > { %v1523_v58 = vpop.f32.mrf.mxu2 }
 0x1da   : > { %v2461_v39 = vadd.f32 %v4448_v43, %v2077_v13  ;;  %v1612_v47 = vpop.f32.mrf.mxu3  ;;  %v2648_v40 = vadd.f32 %v3566_v4, %v2456_v7  ;;  %v1524_v26 = vadd.f32 %v1523_v58, %v4074_v15  ;;  %v320_v13 = vld [vmem:[%s3781_s10 + $0xb8] sm:$0xff]  ;;  %v410_v7 = vld [vmem:[%s3781_s10 + $0x388] sm:$0xff] }
 0x1db   : > { %v1347_v12 = vpop.f32.mrf.mxu0  ;;  %v416_v4 = vld [vmem:[%s3781_s10 + $0x3b8] sm:$0xff] }
 0x1dc   : > { %v1436_v59 = vpop.f32.mrf.mxu1  ;;  %v2653_v32 = vadd.f32 %v3567_v38, %v2461_v39  ;;  %v1348_v11 = vadd.f32 %v1347_v12, %v4101_v29  ;;  %v2840_v54 = vmax.f32 %v2648_v40, 0.0  ;;  %v1613_v9 = vadd.f32 %v1612_v47, %v1524_v26 }
 0x1dd   : > { %v532_v39 = vpack.c.bf16 %v320_v13, %v314_v46  ;;  %v580_v12 = vpack.c.bf16 %v416_v4, %v410_v7  ;;  %v319_v4 = vld [vmem:[%s3781_s10 + $0xb0] sm:$0xff] }
 0x1de   : > { %v2845_v10 = vmax.f32 %v2653_v32, 0.0  ;;  %v1437_v18 = vadd.f32 %v1436_v59, %v1348_v11  ;;  %3032 = vst [vmem:[%s4325_s16 + $0xa8] sm:$0xff] %v2840_v54  ;;  %v2078_v27 = vmul.f32 %v4989_v34, %v1613_v9  ;;  %v3568_v59 = vld [vmem:[%s3781_s10 + $0xd8] sm:$0xff]  ;;  %v3569_v9 = vld [vmem:[%s3781_s10 + $0x100] sm:$0xff] }
 0x1df   : > { %1866 = vmatpush.bf16.msra.mxu2 %v532_v39  ;;  %1955 = vmatpush.bf16.msra.mxu3 %v580_v12  ;;  %v313_v39 = vld [vmem:[%s3781_s10 + $0x80] sm:$0xff]  ;;  %v415_v12 = vld [vmem:[%s3781_s10 + $0x3b0] sm:$0xff] }
 0x1e0   : > { %3037 = vst [vmem:[%s4325_s16 + $0xd0] sm:$0xff] %v2845_v10  ;;  %v2083_v55 = vmul.f32 %v4975_v20, %v1437_v18  ;;  %v2462_v58 = vadd.f32 %v4448_v43, %v2078_v27 }
 0x1e1   : > { %v1525_v47 = vpop.f32.mrf.mxu2 }
 0x1e2   : > { %v2467_v40 = vadd.f32 %v4446_v35, %v2083_v55  ;;  %v1614_v26 = vpop.f32.mrf.mxu3  ;;  %v2654_v38 = vadd.f32 %v3568_v59, %v2462_v58  ;;  %v1526_v32 = vadd.f32 %v1525_v47, %v4101_v29 }
 0x1e3   : > { %v1350_v11 = vpop.f32.mrf.mxu0 }
 0x1e4   : > { %v1439_v54 = vpop.f32.mrf.mxu1  ;;  %v2659_v10 = vadd.f32 %v3569_v9, %v2467_v40  ;;  %v1351_v18 = vadd.f32 %v1350_v11, %v4181_v17  ;;  %v2846_v27 = vmax.f32 %v2654_v38, 0.0  ;;  %v1615_v55 = vadd.f32 %v1614_v26, %v1526_v32  ;;  %v409_v40 = vld [vmem:[%s3781_s10 + $0x380] sm:$0xff] }
 0x1e5   : > { %1389 = vmatmul.bf16.gmra.mxu0 %v4439_v8  ;;  %v531_v26 = vpack.c.bf16 %v319_v4, %v313_v39  ;;  %v579_v11 = vpack.c.bf16 %v415_v12, %v409_v40 }
 0x1e6   : > { %1478 = vmatmul.bf16.gmra.mxu1 %v4450_v56  ;;  %v2851_v46 = vmax.f32 %v2659_v10, 0.0  ;;  %v1440_v13 = vadd.f32 %v1439_v54, %v1351_v18  ;;  %1567 = vmatmul.bf16.gmra.mxu2 %v4439_v8  ;;  %3038 = vst [vmem:[%s4325_s16 + $0xd8] sm:$0xff] %v2846_v27  ;;  %v2084_v7 = vmul.f32 %v4989_v34, %v1615_v55  ;;  %v3570_v54 = vld [vmem:[%s3781_s10 + $0x108] sm:$0xff]  ;;  %v3571_v55 = vld [vmem:[%s3781_s10 + $0x130] sm:$0xff] }
 0x1e7   : > { %1656 = vmatmul.bf16.gmra.mxu3 %v4450_v56  ;;  %1688 = vmatpush.bf16.msra.mxu0 %v531_v26 }
 0x1e8   : > { %3043 = vst [vmem:[%s4325_s16 + $0x100] sm:$0xff] %v2851_v46  ;;  %v2089_v58 = vmul.f32 %v4975_v20, %v1440_v13  ;;  %v2468_v47 = vadd.f32 %v4446_v35, %v2084_v7  ;;  %1777 = vmatpush.bf16.msra.mxu1 %v579_v11 }
 0x1e9   : > { %v1528_v38 = vpop.f32.mrf.mxu2 }
 0x1ea   : > { %v2473_v59 = vadd.f32 %v4475_v21, %v2089_v58  ;;  %v1617_v32 = vpop.f32.mrf.mxu3  ;;  %v2660_v9 = vadd.f32 %v3570_v54, %v2468_v47  ;;  %v1529_v10 = vadd.f32 %v1528_v38, %v4181_v17  ;;  %v3572_v54 = vld [vmem:[%s3781_s10 + $0x138] sm:$0xff] }
 0x1eb   : > { %v1352_v18 = vpop.f32.mrf.mxu0 }
 0x1ec   : > { %v1441_v27 = vpop.f32.mrf.mxu1  ;;  %v2665_v46 = vadd.f32 %v3571_v55, %v2473_v59  ;;  %v1353_v13 = vadd.f32 %v1352_v18, %v4179_v16  ;;  %v2852_v7 = vmax.f32 %v2660_v9, 0.0  ;;  %v1618_v58 = vadd.f32 %v1617_v32, %v1529_v10  ;;  %v3573_v18 = vld [vmem:[%s3781_s10 + $0x160] sm:$0xff] }
 0x1ee   : > { %v2857_v39 = vmax.f32 %v2665_v46, 0.0  ;;  %v1442_v4 = vadd.f32 %v1441_v27, %v1353_v13  ;;  %3044 = vst [vmem:[%s4325_s16 + $0x108] sm:$0xff] %v2852_v7  ;;  %v2090_v40 = vmul.f32 %v4989_v34, %v1618_v58  ;;  %v6037_v7 = vld [vmem:[#allocation43_spill] sm:$0xff]  ;;  %v6038_v58 = vld [vmem:[#allocation44_spill] sm:$0xff] }
 0x1f0   : > { %3049 = vst [vmem:[%s4325_s16 + $0x130] sm:$0xff] %v2857_v39  ;;  %v2095_v47 = vmul.f32 %v4975_v20, %v1442_v4  ;;  %v2474_v12 = vadd.f32 %v4475_v21, %v2090_v40 }
 0x1f1   : > { %v1530_v38 = vpop.f32.mrf.mxu2 }
 0x1f2   : > { %v2479_v26 = vadd.f32 %v4504_v6, %v2095_v47  ;;  %v1619_v59 = vpop.f32.mrf.mxu3  ;;  %v2666_v11 = vadd.f32 %v3572_v54, %v2474_v12  ;;  %v1531_v32 = vadd.f32 %v1530_v38, %v4179_v16 }
 0x1f3   : > { %v1355_v9 = vpop.f32.mrf.mxu0 }
 0x1f4   : > { %v1444_v10 = vpop.f32.mrf.mxu1  ;;  %v2671_v27 = vadd.f32 %v3573_v18, %v2479_v26  ;;  %v1356_v55 = vadd.f32 %v1355_v9, %v4121_v52  ;;  %v2858_v46 = vmax.f32 %v2666_v11, 0.0  ;;  %v1620_v13 = vadd.f32 %v1619_v59, %v1531_v32  ;;  %v6039_v26 = vld [vmem:[#allocation45_spill] sm:$0xff]  ;;  %v3574_v11 = vld [vmem:[%s3781_s10 + $0x168] sm:$0xff] }
 0x1f5   : > { %1394 = vmatmul.bf16.gmra.mxu0 %v6037_v7 }
 0x1f6   : > { %1483 = vmatmul.bf16.gmra.mxu1 %v6038_v58  ;;  %v2863_v39 = vmax.f32 %v2671_v27, 0.0  ;;  %v1445_v4 = vadd.f32 %v1444_v10, %v1356_v55  ;;  %1572 = vmatmul.bf16.gmra.mxu2 %v6037_v7  ;;  %3050 = vst [vmem:[%s4325_s16 + $0x138] sm:$0xff] %v2858_v46  ;;  %v2096_v40 = vmul.f32 %v4989_v34, %v1620_v13  ;;  %v3575_v27 = vld [vmem:[%s3781_s10 + $0x190] sm:$0xff] }
 0x1f7   : > { %1661 = vmatmul.bf16.gmra.mxu3 %v6038_v58  ;;  %v398_v58 = vld [vmem:[%s3781_s10 + $0x328] sm:$0xff] }
 0x1f8   : > { %3055 = vst [vmem:[%s4325_s16 + $0x160] sm:$0xff] %v2863_v39  ;;  %v2101_v47 = vmul.f32 %v4975_v20, %v1445_v4  ;;  %v2480_v12 = vadd.f32 %v4504_v6, %v2096_v40 }
 0x1f9   : > { %v1533_v59 = vpop.f32.mrf.mxu2 }
 0x1fa   : > { %v2485_v38 = vadd.f32 %v6039_v26, %v2101_v47  ;;  %v1622_v54 = vpop.f32.mrf.mxu3  ;;  %v2672_v32 = vadd.f32 %v3574_v11, %v2480_v12  ;;  %v1534_v9 = vadd.f32 %v1533_v59, %v4121_v52  ;;  %v5110_v59 = vld [vmem:[%s3781_s10 + $0x28] sm:$0xff]  ;;  %v308_v11 = vld [vmem:[%s3781_s10 + $0x58] sm:$0xff] }
 0x1fb   : > { %v1357_v10 = vpop.f32.mrf.mxu0 }
 0x1fc   : > { %v1446_v18 = vpop.f32.mrf.mxu1  ;;  %v2677_v55 = vadd.f32 %v3575_v27, %v2485_v38  ;;  %v1358_v46 = vadd.f32 %v1357_v10, %v4195_v24  ;;  %v2864_v13 = vmax.f32 %v2672_v32, 0.0  ;;  %v1623_v39 = vadd.f32 %v1622_v54, %v1534_v9  ;;  %v404_v32 = vld [vmem:[%s3781_s10 + $0x358] sm:$0xff] }
 0x1fd   : > { %v526_v10 = vpack.c.bf16 %v308_v11, %v5110_v59  ;;  %v574_v27 = vpack.c.bf16 %v404_v32, %v398_v58  ;;  %v6040_v58 = vld [vmem:[#allocation48_spill] sm:$0xff] }
 0x1fe   : > { %v2869_v4 = vmax.f32 %v2677_v55, 0.0  ;;  %v1447_v40 = vadd.f32 %v1446_v18, %v1358_v46  ;;  %3056 = vst [vmem:[%s4325_s16 + $0x168] sm:$0xff] %v2864_v13  ;;  %v2102_v47 = vmul.f32 %v4989_v34, %v1623_v39  ;;  %v3576_v55 = vld [vmem:[%s3781_s10 + $0x198] sm:$0xff] }
 0x1ff   : > { %1867 = vmatpush.bf16.msra.mxu2 %v526_v10  ;;  %1956 = vmatpush.bf16.msra.mxu3 %v574_v27  ;;  %v397_v27 = vld [vmem:[%s3781_s10 + $0x320] sm:$0xff] }
 0x200   : > { %3061 = vst [vmem:[%s4325_s16 + $0x190] sm:$0xff] %v2869_v4  ;;  %v2107_v12 = vmul.f32 %v4975_v20, %v1447_v40  ;;  %v2486_v38 = vadd.f32 %v6039_v26, %v2102_v47  ;;  %v3577_v40 = vld [vmem:[%s3781_s10 + $0x1c0] sm:$0xff] }
 0x201   : > { %v1535_v9 = vpop.f32.mrf.mxu2 }
 0x202   : > { %v2491_v54 = vadd.f32 %v4551_v62, %v2107_v12  ;;  %v1624_v18 = vpop.f32.mrf.mxu3  ;;  %v2678_v46 = vadd.f32 %v3576_v55, %v2486_v38  ;;  %v1536_v13 = vadd.f32 %v1535_v9, %v4195_v24  ;;  %v5131_v9 = vld [vmem:[%s3781_s10 + $0x20] sm:$0xff] }
 0x203   : > { %v1360_v39 = vpop.f32.mrf.mxu0 }
 0x204   : > { %v1449_v4 = vpop.f32.mrf.mxu1  ;;  %v2683_v47 = vadd.f32 %v3577_v40, %v2491_v54  ;;  %v1361_v11 = vadd.f32 %v1360_v39, %v4193_v23  ;;  %v2870_v12 = vmax.f32 %v2678_v46, 0.0  ;;  %v1625_v26 = vadd.f32 %v1624_v18, %v1536_v13  ;;  %v5134_v18 = vld [vmem:[%s3781_s10 + $0x50] sm:$0xff]  ;;  %v6041_v39 = vld [vmem:[#allocation49_spill] sm:$0xff] }
 0x205   : > { %1399 = vmatmul.bf16.gmra.mxu0 %v4558_v19  ;;  %v525_v46 = vpack.c.bf16 %v5134_v18, %v5131_v9  ;;  %v403_v13 = vld [vmem:[%s3781_s10 + $0x350] sm:$0xff] }
 0x206   : > { %1488 = vmatmul.bf16.gmra.mxu1 %v6040_v58  ;;  %v2875_v38 = vmax.f32 %v2683_v47, 0.0  ;;  %v1450_v32 = vadd.f32 %v1449_v4, %v1361_v11  ;;  %1577 = vmatmul.bf16.gmra.mxu2 %v4558_v19  ;;  %3062 = vst [vmem:[%s4325_s16 + $0x198] sm:$0xff] %v2870_v12  ;;  %v2108_v10 = vmul.f32 %v4989_v34, %v1625_v26  ;;  %v3578_v11 = vld [vmem:[%s3781_s10 + $0x1c8] sm:$0xff]  ;;  %v3579_v19 = vld [vmem:[%s3781_s10 + $0x1f0] sm:$0xff] }
 0x207   : > { %1666 = vmatmul.bf16.gmra.mxu3 %v6040_v58  ;;  %v573_v26 = vpack.c.bf16 %v403_v13, %v397_v27  ;;  %1689 = vmatpush.bf16.msra.mxu0 %v525_v46  ;;  %v6043_v46 = vld [vmem:[#allocation50_spill] sm:$0xff] }
 0x208   : > { %3067 = vst [vmem:[%s4325_s16 + $0x1c0] sm:$0xff] %v2875_v38  ;;  %v2113_v54 = vmul.f32 %v4975_v20, %v1450_v32  ;;  %v2492_v55 = vadd.f32 %v4551_v62, %v2108_v10  ;;  %v6042_v62 = vld [vmem:[#allocation15_spill] sm:$0xff] }
 0x209   : > { %v1538_v40 = vpop.f32.mrf.mxu2  ;;  %1778 = vmatpush.bf16.msra.mxu1 %v573_v26 }
 0x20a   : > { %v2497_v4 = vadd.f32 %v6041_v39, %v2113_v54  ;;  %v1627_v47 = vpop.f32.mrf.mxu3  ;;  %v2684_v12 = vadd.f32 %v3578_v11, %v2492_v55  ;;  %v1539_v38 = vadd.f32 %v1538_v40, %v4193_v23 }
 0x20b   : > { %v1362_v32 = vpop.f32.mrf.mxu0 }
 0x20c   : > { %v1451_v58 = vpop.f32.mrf.mxu1  ;;  %v2689_v10 = vadd.f32 %v3579_v19, %v2497_v4  ;;  %v1363_v24 = vadd.f32 %v1362_v32, %v6042_v62  ;;  %v2876_v7 = vmax.f32 %v2684_v12, 0.0  ;;  %v1628_v54 = vadd.f32 %v1627_v47, %v1539_v38  ;;  %v3580_v4 = vld [vmem:[%s3781_s10 + $0x1f8] sm:$0xff] }
 0x20d   : > { %v6044_v38 = vld [vmem:[#allocation21_spill] sm:$0xff] }
 0x20e   : > { %v2881_v52 = vmax.f32 %v2689_v10, 0.0  ;;  %v1452_v6 = vadd.f32 %v1451_v58, %v1363_v24  ;;  %3068 = vst [vmem:[%s4325_s16 + $0x1c8] sm:$0xff] %v2876_v7  ;;  %v2114_v27 = vmul.f32 %v4989_v34, %v1628_v54  ;;  %v3581_v7 = vld [vmem:[%s3781_s10 + $0x220] sm:$0xff]  ;;  %v6045_v10 = vld [vmem:[#allocation51_spill] sm:$0xff]  ;;  %v6046_v54 = vld [vmem:[#allocation52_spill] sm:$0xff] }
 0x210   : > { %3073 = vst [vmem:[%s4325_s16 + $0x1f0] sm:$0xff] %v2881_v52  ;;  %v2119_v55 = vmul.f32 %v4975_v20, %v1452_v6  ;;  %v2498_v13 = vadd.f32 %v6041_v39, %v2114_v27 }
 0x211   : > { %v1540_v11 = vpop.f32.mrf.mxu2 }
 0x212   : > { %v2503_v40 = vadd.f32 %v6043_v46, %v2119_v55  ;;  %v1629_v19 = vpop.f32.mrf.mxu3  ;;  %v2690_v26 = vadd.f32 %v3580_v4, %v2498_v13  ;;  %v1541_v47 = vadd.f32 %v1540_v11, %v6042_v62 }
 0x213   : > { %v1365_v12 = vpop.f32.mrf.mxu0 }
 0x214   : > { %v1454_v24 = vpop.f32.mrf.mxu1  ;;  %v2695_v58 = vadd.f32 %v3581_v7, %v2503_v40  ;;  %v1366_v52 = vadd.f32 %v1365_v12, %v6044_v38  ;;  %v2882_v32 = vmax.f32 %v2690_v26, 0.0  ;;  %v1630_v6 = vadd.f32 %v1629_v19, %v1541_v47  ;;  %v6047_v19 = vld [vmem:[#allocation53_spill] sm:$0xff]  ;;  %v3582_v12 = vld [vmem:[%s3781_s10 + $0x228] sm:$0xff] }
 0x215   : > { %1404 = vmatmul.bf16.gmra.mxu0 %v6045_v10 }
 0x216   : > { %1493 = vmatmul.bf16.gmra.mxu1 %v6046_v54  ;;  %v2887_v27 = vmax.f32 %v2695_v58, 0.0  ;;  %v1455_v55 = vadd.f32 %v1454_v24, %v1366_v52  ;;  %1582 = vmatmul.bf16.gmra.mxu2 %v6045_v10  ;;  %3074 = vst [vmem:[%s4325_s16 + $0x1f8] sm:$0xff] %v2882_v32  ;;  %v2120_v13 = vmul.f32 %v4989_v34, %v1630_v6  ;;  %v3583_v32 = vld [vmem:[%s3781_s10 + $0x250] sm:$0xff] }
 0x217   : > { %1671 = vmatmul.bf16.gmra.mxu3 %v6046_v54 }
 0x218   : > { %3079 = vst [vmem:[%s4325_s16 + $0x220] sm:$0xff] %v2887_v27  ;;  %v2125_v40 = vmul.f32 %v4975_v20, %v1455_v55  ;;  %v2504_v11 = vadd.f32 %v6043_v46, %v2120_v13 }
 0x219   : > { %v1543_v26 = vpop.f32.mrf.mxu2 }
 0x21a   : > { %v2509_v4 = vadd.f32 %v6047_v19, %v2125_v40  ;;  %v1632_v47 = vpop.f32.mrf.mxu3  ;;  %v2696_v24 = vadd.f32 %v3582_v12, %v2504_v11  ;;  %v1544_v7 = vadd.f32 %v1543_v26, %v6044_v38 }
 0x21b   : > { %v1367_v58 = vpop.f32.mrf.mxu0 }
 0x21c   : > { %v1456_v52 = vpop.f32.mrf.mxu1  ;;  %v2701_v6 = vadd.f32 %v3583_v32, %v2509_v4  ;;  %v1368_v27 = vadd.f32 %v1367_v58, %v4218_v50  ;;  %v2888_v55 = vmax.f32 %v2696_v24, 0.0  ;;  %v1633_v54 = vadd.f32 %v1632_v47, %v1544_v7  ;;  %v3584_v4 = vld [vmem:[%s3781_s10 + $0x258] sm:$0xff] }
 0x21e   : > { %v2893_v13 = vmax.f32 %v2701_v6, 0.0  ;;  %v1457_v10 = vadd.f32 %v1456_v52, %v1368_v27  ;;  %3080 = vst [vmem:[%s4325_s16 + $0x228] sm:$0xff] %v2888_v55  ;;  %v2126_v40 = vmul.f32 %v4989_v34, %v1633_v54  ;;  %v3585_v52 = vld [vmem:[%s3781_s10 + $0x280] sm:$0xff] }
 0x220   : > { %3085 = vst [vmem:[%s4325_s16 + $0x250] sm:$0xff] %v2893_v13  ;;  %v2131_v11 = vmul.f32 %v4975_v20, %v1457_v10  ;;  %v2510_v26 = vadd.f32 %v6047_v19, %v2126_v40 }
 0x221   : > { %v1545_v38 = vpop.f32.mrf.mxu2 }
 0x222   : > { %v2515_v12 = vadd.f32 %v4662_v25, %v2131_v11  ;;  %v1634_v46 = vpop.f32.mrf.mxu3  ;;  %v2702_v58 = vadd.f32 %v3584_v4, %v2510_v26  ;;  %v1546_v47 = vadd.f32 %v1545_v38, %v4218_v50 }
 0x223   : > { %v1370_v24 = vpop.f32.mrf.mxu0 }
 0x224   : > { %v1459_v7 = vpop.f32.mrf.mxu1  ;;  %v2707_v32 = vadd.f32 %v3585_v52, %v2515_v12  ;;  %v1371_v54 = vadd.f32 %v1370_v24, %v4162_v5  ;;  %v2894_v6 = vmax.f32 %v2702_v58, 0.0  ;;  %v1635_v10 = vadd.f32 %v1634_v46, %v1546_v47  ;;  %v3586_v12 = vld [vmem:[%s3781_s10 + $0x288] sm:$0xff] }
 0x225   : > { %1409 = vmatmul.bf16.gmra.mxu0 %v4669_v41 }
 0x226   : > { %1498 = vmatmul.bf16.gmra.mxu1 %v4675_v0  ;;  %v2899_v27 = vmax.f32 %v2707_v32, 0.0  ;;  %v1460_v55 = vadd.f32 %v1459_v7, %v1371_v54  ;;  %1587 = vmatmul.bf16.gmra.mxu2 %v4669_v41  ;;  %3086 = vst [vmem:[%s4325_s16 + $0x258] sm:$0xff] %v2894_v6  ;;  %v2132_v38 = vmul.f32 %v4989_v34, %v1635_v10  ;;  %v3587_v7 = vld [vmem:[%s3781_s10 + $0x2b0] sm:$0xff] }
 0x227   : > { %1676 = vmatmul.bf16.gmra.mxu3 %v4675_v0 }
 0x228   : > { %3091 = vst [vmem:[%s4325_s16 + $0x280] sm:$0xff] %v2899_v27  ;;  %v2137_v13 = vmul.f32 %v4975_v20, %v1460_v55  ;;  %v2516_v40 = vadd.f32 %v4662_v25, %v2132_v38 }
 0x229   : > { %v1548_v11 = vpop.f32.mrf.mxu2 }
 0x22a   : > { %v2521_v46 = vadd.f32 %v4693_v57, %v2137_v13  ;;  %v1637_v26 = vpop.f32.mrf.mxu3  ;;  %v2708_v4 = vadd.f32 %v3586_v12, %v2516_v40  ;;  %v1549_v58 = vadd.f32 %v1548_v11, %v4162_v5  ;;  %v6048_v40 = vld [vmem:[#allocation55_spill] sm:$0xff] }
 0x22b   : > { %v1372_v47 = vpop.f32.mrf.mxu0 }
 0x22c   : > { %v1461_v24 = vpop.f32.mrf.mxu1  ;;  %v2713_v52 = vadd.f32 %v3587_v7, %v2521_v46  ;;  %v1373_v32 = vadd.f32 %v1372_v47, %v4241_v14  ;;  %v2900_v54 = vmax.f32 %v2708_v4, 0.0  ;;  %v1638_v6 = vadd.f32 %v1637_v26, %v1549_v58  ;;  %v3588_v46 = vld [vmem:[%s3781_s10 + $0x2b8] sm:$0xff] }
 0x22e   : > { %v2905_v10 = vmax.f32 %v2713_v52, 0.0  ;;  %v1462_v27 = vadd.f32 %v1461_v24, %v1373_v32  ;;  %3092 = vst [vmem:[%s4325_s16 + $0x288] sm:$0xff] %v2900_v54  ;;  %v2138_v55 = vmul.f32 %v4989_v34, %v1638_v6  ;;  %v3589_v24 = vld [vmem:[%s3781_s10 + $0x2e0] sm:$0xff]  ;;  %v6049_v52 = vld [vmem:[#allocation25_spill] sm:$0xff] }
 0x230   : > { %3097 = vst [vmem:[%s4325_s16 + $0x2b0] sm:$0xff] %v2905_v10  ;;  %v2143_v38 = vmul.f32 %v4975_v20, %v1462_v27  ;;  %v2522_v13 = vadd.f32 %v4693_v57, %v2138_v55  ;;  %v6050_v10 = vld [vmem:[#allocation2_spill] sm:$0xff]  ;;  %v6051_v27 = vld [vmem:[#allocation3_spill] sm:$0xff] }
 0x231   : > { %v1550_v12 = vpop.f32.mrf.mxu2 }
 0x232   : > { %v2527_v11 = vadd.f32 %v6048_v40, %v2143_v38  ;;  %v1639_v0 = vpop.f32.mrf.mxu3  ;;  %v2714_v47 = vadd.f32 %v3588_v46, %v2522_v13  ;;  %v1551_v26 = vadd.f32 %v1550_v12, %v4241_v14 }
 0x233   : > { %v1375_v4 = vpop.f32.mrf.mxu0 }
 0x234   : > { %v1464_v58 = vpop.f32.mrf.mxu1  ;;  %v2719_v7 = vadd.f32 %v3589_v24, %v2527_v11  ;;  %v1376_v32 = vadd.f32 %v1375_v4, %v6049_v52  ;;  %v2906_v54 = vmax.f32 %v2714_v47, 0.0  ;;  %v1640_v6 = vadd.f32 %v1639_v0, %v1551_v26  ;;  %v3590_v26 = vld [vmem:[%s3781_s10 + $0x2e8] sm:$0xff] }
 0x235   : > { %1690 = vmatmul.bf16.vlgmr.msra.gmra.mxu0 %v6050_v10 }
 0x236   : > { %1779 = vmatmul.bf16.vlgmr.msra.gmra.mxu1 %v6051_v27  ;;  %v2911_v55 = vmax.f32 %v2719_v7, 0.0  ;;  %v1465_v38 = vadd.f32 %v1464_v58, %v1376_v32  ;;  %1868 = vmatmul.bf16.vlgmr.msra.gmra.mxu2 %v6050_v10  ;;  %3098 = vst [vmem:[%s4325_s16 + $0x2b8] sm:$0xff] %v2906_v54  ;;  %v2144_v13 = vmul.f32 %v4989_v34, %v1640_v6  ;;  %v3591_v32 = vld [vmem:[%s3781_s10 + $0x310] sm:$0xff] }
 0x237   : > { %1957 = vmatmul.bf16.vlgmr.msra.gmra.mxu3 %v6051_v27 }
 0x238   : > { %3103 = vst [vmem:[%s4325_s16 + $0x2e0] sm:$0xff] %v2911_v55  ;;  %v2149_v11 = vmul.f32 %v4975_v20, %v1465_v38  ;;  %v2528_v12 = vadd.f32 %v6048_v40, %v2144_v13 }
 0x239   : > { %v1553_v46 = vpop.f32.mrf.mxu2 }
 0x23a   : > { %v2533_v0 = vadd.f32 %v4721_v1, %v2149_v11  ;;  %v1642_v47 = vpop.f32.mrf.mxu3  ;;  %v2720_v4 = vadd.f32 %v3590_v26, %v2528_v12  ;;  %v1554_v58 = vadd.f32 %v1553_v46, %v6049_v52 }
 0x23b   : > { %v1377_v24 = vpop.f32.mrf.mxu0 }
 0x23c   : > { %v1466_v7 = vpop.f32.mrf.mxu1  ;;  %v2725_v54 = vadd.f32 %v3591_v32, %v2533_v0  ;;  %v1378_v6 = vadd.f32 %v1377_v24, %v4187_v22  ;;  %v2912_v10 = vmax.f32 %v2720_v4, 0.0  ;;  %v1643_v27 = vadd.f32 %v1642_v47, %v1554_v58  ;;  %v3592_v0 = vld [vmem:[%s3781_s10 + $0x318] sm:$0xff] }
 0x23e   : > { %v2917_v55 = vmax.f32 %v2725_v54, 0.0  ;;  %v1467_v38 = vadd.f32 %v1466_v7, %v1378_v6  ;;  %3104 = vst [vmem:[%s4325_s16 + $0x2e8] sm:$0xff] %v2912_v10  ;;  %v2150_v13 = vmul.f32 %v4989_v34, %v1643_v27  ;;  %v3593_v7 = vld [vmem:[%s3781_s10 + $0x340] sm:$0xff] }
 0x240   : > { %3109 = vst [vmem:[%s4325_s16 + $0x310] sm:$0xff] %v2917_v55  ;;  %v2155_v11 = vmul.f32 %v4975_v20, %v1467_v38  ;;  %v2534_v12 = vadd.f32 %v4721_v1, %v2150_v13 }
 0x241   : > { %v1555_v26 = vpop.f32.mrf.mxu2 }
 0x242   : > { %v2539_v46 = vadd.f32 %v4736_v61, %v2155_v11  ;;  %v1644_v52 = vpop.f32.mrf.mxu3  ;;  %v2726_v24 = vadd.f32 %v3592_v0, %v2534_v12  ;;  %v1556_v47 = vadd.f32 %v1555_v26, %v4187_v22  ;;  %v3594_v26 = vld [vmem:[%s3781_s10 + $0x348] sm:$0xff] }
 0x243   : > { %v1380_v4 = vpop.f32.mrf.mxu0 }
 0x244   : > { %v1469_v58 = vpop.f32.mrf.mxu1  ;;  %v2731_v32 = vadd.f32 %v3593_v7, %v2539_v46  ;;  %v1381_v54 = vadd.f32 %v1380_v4, %v4271_v45  ;;  %v2918_v6 = vmax.f32 %v2726_v24, 0.0  ;;  %v1645_v10 = vadd.f32 %v1644_v52, %v1556_v47  ;;  %v3595_v47 = vld [vmem:[%s3781_s10 + $0x370] sm:$0xff] }
 0x245   : > { %1695 = vmatmul.bf16.gmra.mxu0 %v3973_v30 }
 0x246   : > { %1784 = vmatmul.bf16.gmra.mxu1 %v3975_v33  ;;  %v2923_v27 = vmax.f32 %v2731_v32, 0.0  ;;  %v1470_v55 = vadd.f32 %v1469_v58, %v1381_v54  ;;  %1873 = vmatmul.bf16.gmra.mxu2 %v3973_v30  ;;  %3110 = vst [vmem:[%s4325_s16 + $0x318] sm:$0xff] %v2918_v6  ;;  %v2156_v38 = vmul.f32 %v4989_v34, %v1645_v10 }
 0x247   : > { %1962 = vmatmul.bf16.gmra.mxu3 %v3975_v33 }
 0x248   : > { %3115 = vst [vmem:[%s4325_s16 + $0x340] sm:$0xff] %v2923_v27  ;;  %v2161_v13 = vmul.f32 %v4975_v20, %v1470_v55  ;;  %v2540_v11 = vadd.f32 %v4736_v61, %v2156_v38  ;;  %v6052_v38 = vld [vmem:[#allocation56_spill] sm:$0xff] }
 0x249   : > { %v1558_v12 = vpop.f32.mrf.mxu2 }
 0x24a   : > { %v2545_v52 = vadd.f32 %v4760_v49, %v2161_v13  ;;  %v1647_v46 = vpop.f32.mrf.mxu3  ;;  %v2732_v0 = vadd.f32 %v3594_v26, %v2540_v11  ;;  %v1559_v30 = vadd.f32 %v1558_v12, %v4271_v45 }
 0x24b   : > { %v1382_v24 = vpop.f32.mrf.mxu0 }
 0x24c   : > { %v1471_v33 = vpop.f32.mrf.mxu1  ;;  %v2737_v4 = vadd.f32 %v3595_v47, %v2545_v52  ;;  %v1383_v58 = vadd.f32 %v1382_v24, %v4269_v44  ;;  %v2924_v7 = vmax.f32 %v2732_v0, 0.0  ;;  %v1648_v32 = vadd.f32 %v1647_v46, %v1559_v30  ;;  %v3596_v52 = vld [vmem:[%s3781_s10 + $0x378] sm:$0xff]  ;;  %v3597_v24 = vld [vmem:[%s3781_s10 + $0x3a0] sm:$0xff]  ;;  %v6053_v47 = vld [vmem:[#allocation20_spill] sm:$0xff] }
 0x24e   : > { %v2929_v54 = vmax.f32 %v2737_v4, 0.0  ;;  %v1472_v6 = vadd.f32 %v1471_v33, %v1383_v58  ;;  %3116 = vst [vmem:[%s4325_s16 + $0x348] sm:$0xff] %v2924_v7  ;;  %v2162_v10 = vmul.f32 %v4989_v34, %v1648_v32  ;;  %v6054_v32 = vld [vmem:[#allocation4_spill] sm:$0xff] }
 0x250   : > { %3121 = vst [vmem:[%s4325_s16 + $0x370] sm:$0xff] %v2929_v54  ;;  %v2167_v27 = vmul.f32 %v4975_v20, %v1472_v6  ;;  %v2546_v55 = vadd.f32 %v4760_v49, %v2162_v10  ;;  %v6055_v54 = vld [vmem:[#allocation5_spill] sm:$0xff] }
 0x251   : > { %v1560_v11 = vpop.f32.mrf.mxu2 }
 0x252   : > { %v2551_v13 = vadd.f32 %v6052_v38, %v2167_v27  ;;  %v1649_v12 = vpop.f32.mrf.mxu3  ;;  %v2738_v26 = vadd.f32 %v3596_v52, %v2546_v55  ;;  %v1561_v46 = vadd.f32 %v1560_v11, %v4269_v44 }
 0x253   : > { %v1385_v0 = vpop.f32.mrf.mxu0 }
 0x254   : > { %v1474_v30 = vpop.f32.mrf.mxu1  ;;  %v2743_v33 = vadd.f32 %v3597_v24, %v2551_v13  ;;  %v1386_v4 = vadd.f32 %v1385_v0, %v6053_v47  ;;  %v2930_v58 = vmax.f32 %v2738_v26, 0.0  ;;  %v1650_v7 = vadd.f32 %v1649_v12, %v1561_v46  ;;  %v3598_v26 = vld [vmem:[%s3781_s10 + $0x3a8] sm:$0xff] }
 0x255   : > { %1700 = vmatmul.bf16.gmra.mxu0 %v6054_v32 }
 0x256   : > { %1789 = vmatmul.bf16.gmra.mxu1 %v6055_v54  ;;  %v2935_v6 = vmax.f32 %v2743_v33, 0.0  ;;  %v1475_v10 = vadd.f32 %v1474_v30, %v1386_v4  ;;  %1878 = vmatmul.bf16.gmra.mxu2 %v6054_v32  ;;  %3122 = vst [vmem:[%s4325_s16 + $0x378] sm:$0xff] %v2930_v58  ;;  %v2168_v27 = vmul.f32 %v4989_v34, %v1650_v7  ;;  %v3599_v33 = vld [vmem:[%s3781_s10 + $0x3d0] sm:$0xff]  ;;  %v6056_v58 = vld [vmem:[#allocation31_spill] sm:$0xff] }
 0x257   : > { %1967 = vmatmul.bf16.gmra.mxu3 %v6055_v54 }
 0x258   : > { %3127 = vst [vmem:[%s4325_s16 + $0x3a0] sm:$0xff] %v2935_v6  ;;  %v2173_v55 = vmul.f32 %v4975_v20, %v1475_v10  ;;  %v2552_v13 = vadd.f32 %v6052_v38, %v2168_v27 }
 0x259   : > { %v1563_v12 = vpop.f32.mrf.mxu2 }
 0x25a   : > { %v2557_v11 = vadd.f32 %v4788_v36, %v2173_v55  ;;  %v1652_v52 = vpop.f32.mrf.mxu3  ;;  %v2744_v46 = vadd.f32 %v3598_v26, %v2552_v13  ;;  %v1564_v0 = vadd.f32 %v1563_v12, %v6053_v47  ;;  %v6057_v12 = vld [vmem:[#allocation58_spill] sm:$0xff] }
 0x25b   : > { %v1387_v30 = vpop.f32.mrf.mxu0 }
 0x25c   : > { %v1476_v24 = vpop.f32.mrf.mxu1  ;;  %v2749_v4 = vadd.f32 %v3599_v33, %v2557_v11  ;;  %v1388_v7 = vadd.f32 %v1387_v30, %v6056_v58  ;;  %v2936_v32 = vmax.f32 %v2744_v46, 0.0  ;;  %v1653_v54 = vadd.f32 %v1652_v52, %v1564_v0  ;;  %v3600_v11 = vld [vmem:[%s3781_s10 + $0x3d8] sm:$0xff] }
 0x25e   : > { %v2941_v6 = vmax.f32 %v2749_v4, 0.0  ;;  %v1477_v10 = vadd.f32 %v1476_v24, %v1388_v7  ;;  %3128 = vst [vmem:[%s4325_s16 + $0x3a8] sm:$0xff] %v2936_v32  ;;  %v2174_v27 = vmul.f32 %v4989_v34, %v1653_v54  ;;  %v3601_v24 = vld [vmem:[%s3781_s10 + $0x400] sm:$0xff] }
 0x25f   : > { %v6058_v4 = vld [vmem:[#allocation30_spill] sm:$0xff] }
 0x260   : > { %3133 = vst [vmem:[%s4325_s16 + $0x3d0] sm:$0xff] %v2941_v6  ;;  %v2179_v55 = vmul.f32 %v4975_v20, %v1477_v10  ;;  %v2558_v13 = vadd.f32 %v4788_v36, %v2174_v27  ;;  %v6059_v6 = vld [vmem:[#allocation6_spill] sm:$0xff]  ;;  %v6060_v10 = vld [vmem:[#allocation7_spill] sm:$0xff] }
 0x261   : > { %v1565_v47 = vpop.f32.mrf.mxu2 }
 0x262   : > { %v2563_v26 = vadd.f32 %v6057_v12, %v2179_v55  ;;  %v1654_v38 = vpop.f32.mrf.mxu3  ;;  %v2750_v30 = vadd.f32 %v3600_v11, %v2558_v13  ;;  %v1566_v52 = vadd.f32 %v1565_v47, %v6056_v58 }
 0x263   : > { %v1390_v46 = vpop.f32.mrf.mxu0 }
 0x264   : > { %v1479_v0 = vpop.f32.mrf.mxu1  ;;  %v2755_v33 = vadd.f32 %v3601_v24, %v2563_v26  ;;  %v1391_v7 = vadd.f32 %v1390_v46, %v6058_v4  ;;  %v2942_v32 = vmax.f32 %v2750_v30, 0.0  ;;  %v1655_v54 = vadd.f32 %v1654_v38, %v1566_v52  ;;  %v6061_v38 = vld [vmem:[#allocation59_spill] sm:$0xff] }
 0x265   : > { %1705 = vmatmul.bf16.gmra.mxu0 %v6059_v6  ;;  %v3602_v46 = vld [vmem:[%s3781_s10 + $0x408] sm:$0xff] }
 0x266   : > { %1794 = vmatmul.bf16.gmra.mxu1 %v6060_v10  ;;  %v2947_v27 = vmax.f32 %v2755_v33, 0.0  ;;  %v1480_v55 = vadd.f32 %v1479_v0, %v1391_v7  ;;  %1883 = vmatmul.bf16.gmra.mxu2 %v6059_v6  ;;  %3134 = vst [vmem:[%s4325_s16 + $0x3d8] sm:$0xff] %v2942_v32  ;;  %v2180_v47 = vmul.f32 %v4989_v34, %v1655_v54  ;;  %v3603_v32 = vld [vmem:[%s3781_s10 + $0x430] sm:$0xff] }
 0x267   : > { %1972 = vmatmul.bf16.gmra.mxu3 %v6060_v10  ;;  %v6062_v6 = vld [vmem:[#allocation24_spill] sm:$0xff] }
 0x268   : > { %3139 = vst [vmem:[%s4325_s16 + $0x400] sm:$0xff] %v2947_v27  ;;  %v2185_v13 = vmul.f32 %v4975_v20, %v1480_v55  ;;  %v2564_v26 = vadd.f32 %v6057_v12, %v2180_v47 }
 0x269   : > { %v1568_v30 = vpop.f32.mrf.mxu2 }
 0x26a   : > { %v2569_v11 = vadd.f32 %v6061_v38, %v2185_v13  ;;  %v1657_v52 = vpop.f32.mrf.mxu3  ;;  %v2756_v0 = vadd.f32 %v3602_v46, %v2564_v26  ;;  %v1569_v24 = vadd.f32 %v1568_v30, %v6058_v4  ;;  %v6063_v46 = vld [vmem:[#allocation60_spill] sm:$0xff] }
 0x26b   : > { %v1392_v33 = vpop.f32.mrf.mxu0 }
 0x26c   : > { %v1481_v7 = vpop.f32.mrf.mxu1  ;;  %v2761_v54 = vadd.f32 %v3603_v32, %v2569_v11  ;;  %v1393_v10 = vadd.f32 %v1392_v33, %v6062_v6  ;;  %v2948_v27 = vmax.f32 %v2756_v0, 0.0  ;;  %v1658_v55 = vadd.f32 %v1657_v52, %v1569_v24  ;;  %v3604_v11 = vld [vmem:[%s3781_s10 + $0x438] sm:$0xff] }
 0x26e   : > { %v2953_v47 = vmax.f32 %v2761_v54, 0.0  ;;  %v1482_v12 = vadd.f32 %v1481_v7, %v1393_v10  ;;  %3140 = vst [vmem:[%s4325_s16 + $0x408] sm:$0xff] %v2948_v27  ;;  %v2186_v13 = vmul.f32 %v4989_v34, %v1658_v55  ;;  %v3605_v7 = vld [vmem:[%s3781_s10 + $0x460] sm:$0xff]  ;;  %v6064_v54 = vld [vmem:[#allocation35_spill] sm:$0xff]  ;;  %v6065_v55 = vld [vmem:[#allocation8_spill] sm:$0xff] }
 0x270   : > { %3145 = vst [vmem:[%s4325_s16 + $0x430] sm:$0xff] %v2953_v47  ;;  %v2191_v26 = vmul.f32 %v4975_v20, %v1482_v12  ;;  %v2570_v30 = vadd.f32 %v6061_v38, %v2186_v13  ;;  %v6066_v47 = vld [vmem:[#allocation9_spill] sm:$0xff] }
 0x271   : > { %v1570_v58 = vpop.f32.mrf.mxu2 }
 0x272   : > { %v2575_v4 = vadd.f32 %v6063_v46, %v2191_v26  ;;  %v1659_v36 = vpop.f32.mrf.mxu3  ;;  %v2762_v33 = vadd.f32 %v3604_v11, %v2570_v30  ;;  %v1571_v52 = vadd.f32 %v1570_v58, %v6062_v6 }
 0x273   : > { %v1395_v0 = vpop.f32.mrf.mxu0 }
 0x274   : > { %v1484_v24 = vpop.f32.mrf.mxu1  ;;  %v2767_v32 = vadd.f32 %v3605_v7, %v2575_v4  ;;  %v1396_v10 = vadd.f32 %v1395_v0, %v6064_v54  ;;  %v2954_v27 = vmax.f32 %v2762_v33, 0.0  ;;  %v1660_v12 = vadd.f32 %v1659_v36, %v1571_v52  ;;  %v6067_v36 = vld [vmem:[#allocation61_spill] sm:$0xff]  ;;  %v3606_v0 = vld [vmem:[%s3781_s10 + $0x468] sm:$0xff] }
 0x275   : > { %1710 = vmatmul.bf16.gmra.mxu0 %v6065_v55 }
 0x276   : > { %1799 = vmatmul.bf16.gmra.mxu1 %v6066_v47  ;;  %v2959_v13 = vmax.f32 %v2767_v32, 0.0  ;;  %v1485_v26 = vadd.f32 %v1484_v24, %v1396_v10  ;;  %1888 = vmatmul.bf16.gmra.mxu2 %v6065_v55  ;;  %3146 = vst [vmem:[%s4325_s16 + $0x438] sm:$0xff] %v2954_v27  ;;  %v2192_v58 = vmul.f32 %v4989_v34, %v1660_v12  ;;  %v3607_v27 = vld [vmem:[%s3781_s10 + $0x490] sm:$0xff] }
 0x277   : > { %1977 = vmatmul.bf16.gmra.mxu3 %v6066_v47 }
 0x278   : > { %3151 = vst [vmem:[%s4325_s16 + $0x460] sm:$0xff] %v2959_v13  ;;  %v2197_v4 = vmul.f32 %v4975_v20, %v1485_v26  ;;  %v2576_v30 = vadd.f32 %v6063_v46, %v2192_v58 }
 0x279   : > { %v1573_v33 = vpop.f32.mrf.mxu2 }
 0x27a   : > { %v2581_v11 = vadd.f32 %v6067_v36, %v2197_v4  ;;  %v1662_v52 = vpop.f32.mrf.mxu3  ;;  %v2768_v24 = vadd.f32 %v3606_v0, %v2576_v30  ;;  %v1574_v7 = vadd.f32 %v1573_v33, %v6064_v54 }
 0x27b   : > { %v1397_v32 = vpop.f32.mrf.mxu0 }
 0x27c   : > { %v1486_v10 = vpop.f32.mrf.mxu1  ;;  %v2773_v12 = vadd.f32 %v3607_v27, %v2581_v11  ;;  %v1398_v55 = vadd.f32 %v1397_v32, %v6011_v63  ;;  %v2960_v47 = vmax.f32 %v2768_v24, 0.0  ;;  %v1663_v13 = vadd.f32 %v1662_v52, %v1574_v7  ;;  %v3608_v11 = vld [vmem:[%s3781_s10 + $0x498] sm:$0xff] }
 0x27e   : > { %v2965_v26 = vmax.f32 %v2773_v12, 0.0  ;;  %v1487_v58 = vadd.f32 %v1486_v10, %v1398_v55  ;;  %3152 = vst [vmem:[%s4325_s16 + $0x468] sm:$0xff] %v2960_v47  ;;  %v2198_v4 = vmul.f32 %v4989_v34, %v1663_v13  ;;  %v3609_v10 = vld [vmem:[%s3781_s10 + $0x4c0] sm:$0xff] }
 0x27f   : > { %v6068_v12 = vld [vmem:[#allocation26_spill] sm:$0xff] }
 0x280   : > { %3157 = vst [vmem:[%s4325_s16 + $0x490] sm:$0xff] %v2965_v26  ;;  %v2203_v30 = vmul.f32 %v4975_v20, %v1487_v58  ;;  %v2582_v33 = vadd.f32 %v6067_v36, %v2198_v4  ;;  %v6069_v26 = vld [vmem:[#allocation13_spill] sm:$0xff]  ;;  %v6070_v58 = vld [vmem:[#allocation14_spill] sm:$0xff] }
 0x281   : > { %v1575_v54 = vpop.f32.mrf.mxu2 }
 0x282   : > { %v2587_v0 = vadd.f32 %v4864_v51, %v2203_v30  ;;  %v1664_v46 = vpop.f32.mrf.mxu3  ;;  %v2774_v32 = vadd.f32 %v3608_v11, %v2582_v33  ;;  %v1576_v52 = vadd.f32 %v1575_v54, %v6011_v63 }
 0x283   : > { %v1400_v24 = vpop.f32.mrf.mxu0 }
 0x284   : > { %v1489_v7 = vpop.f32.mrf.mxu1  ;;  %v2779_v27 = vadd.f32 %v3609_v10, %v2587_v0  ;;  %v1401_v55 = vadd.f32 %v1400_v24, %v6068_v12  ;;  %v2966_v47 = vmax.f32 %v2774_v32, 0.0  ;;  %v1665_v13 = vadd.f32 %v1664_v46, %v1576_v52  ;;  %v6071_v46 = vld [vmem:[#allocation63_spill] sm:$0xff] }
 0x285   : > { %1715 = vmatmul.bf16.gmra.mxu0 %v6069_v26  ;;  %v3610_v24 = vld [vmem:[%s3781_s10 + $0x4c8] sm:$0xff] }
 0x286   : > { %1804 = vmatmul.bf16.gmra.mxu1 %v6070_v58  ;;  %v2971_v4 = vmax.f32 %v2779_v27, 0.0  ;;  %v1490_v30 = vadd.f32 %v1489_v7, %v1401_v55  ;;  %1893 = vmatmul.bf16.gmra.mxu2 %v6069_v26  ;;  %3158 = vst [vmem:[%s4325_s16 + $0x498] sm:$0xff] %v2966_v47  ;;  %v2204_v54 = vmul.f32 %v4989_v34, %v1665_v13  ;;  %v3611_v47 = vld [vmem:[%s3781_s10 + $0x4f0] sm:$0xff]  ;;  %v6072_v26 = vld [vmem:[#allocation38_spill] sm:$0xff] }
 0x287   : > { %1982 = vmatmul.bf16.gmra.mxu3 %v6070_v58 }
 0x288   : > { %3163 = vst [vmem:[%s4325_s16 + $0x4c0] sm:$0xff] %v2971_v4  ;;  %v2209_v33 = vmul.f32 %v4975_v20, %v1490_v30  ;;  %v2588_v0 = vadd.f32 %v4864_v51, %v2204_v54 }
 0x289   : > { %v1578_v32 = vpop.f32.mrf.mxu2 }
 0x28a   : > { %v2593_v11 = vadd.f32 %v6071_v46, %v2209_v33  ;;  %v1667_v52 = vpop.f32.mrf.mxu3  ;;  %v2780_v7 = vadd.f32 %v3610_v24, %v2588_v0  ;;  %v1579_v10 = vadd.f32 %v1578_v32, %v6068_v12  ;;  %v6073_v24 = vld [vmem:[#allocation64_spill] sm:$0xff] }
 0x28b   : > { %v1402_v27 = vpop.f32.mrf.mxu0 }
 0x28c   : > { %v1491_v55 = vpop.f32.mrf.mxu1  ;;  %v2785_v13 = vadd.f32 %v3611_v47, %v2593_v11  ;;  %v1403_v58 = vadd.f32 %v1402_v27, %v6072_v26  ;;  %v2972_v4 = vmax.f32 %v2780_v7, 0.0  ;;  %v1668_v30 = vadd.f32 %v1667_v52, %v1579_v10  ;;  %v3612_v11 = vld [vmem:[%s3781_s10 + $0x4f8] sm:$0xff] }
 0x28e   : > { %v2977_v54 = vmax.f32 %v2785_v13, 0.0  ;;  %v1492_v51 = vadd.f32 %v1491_v55, %v1403_v58  ;;  %3164 = vst [vmem:[%s4325_s16 + $0x4c8] sm:$0xff] %v2972_v4  ;;  %v2210_v33 = vmul.f32 %v4989_v34, %v1668_v30  ;;  %v3613_v55 = vld [vmem:[%s3781_s10 + $0x520] sm:$0xff]  ;;  %v6074_v13 = vld [vmem:[#allocation37_spill] sm:$0xff] }
 0x28f   : > { %v6075_v30 = vld [vmem:[#allocation17_spill] sm:$0xff] }
 0x290   : > { %3169 = vst [vmem:[%s4325_s16 + $0x4f0] sm:$0xff] %v2977_v54  ;;  %v2215_v0 = vmul.f32 %v4975_v20, %v1492_v51  ;;  %v2594_v32 = vadd.f32 %v6071_v46, %v2210_v33  ;;  %v6076_v54 = vld [vmem:[#allocation18_spill] sm:$0xff] }
 0x291   : > { %v1580_v63 = vpop.f32.mrf.mxu2 }
 0x292   : > { %v2599_v12 = vadd.f32 %v6073_v24, %v2215_v0  ;;  %v1669_v36 = vpop.f32.mrf.mxu3  ;;  %v2786_v27 = vadd.f32 %v3612_v11, %v2594_v32  ;;  %v1581_v52 = vadd.f32 %v1580_v63, %v6072_v26 }
 0x293   : > { %v1405_v7 = vpop.f32.mrf.mxu0 }
 0x294   : > { %v1494_v10 = vpop.f32.mrf.mxu1  ;;  %v2791_v47 = vadd.f32 %v3613_v55, %v2599_v12  ;;  %v1406_v58 = vadd.f32 %v1405_v7, %v6074_v13  ;;  %v2978_v4 = vmax.f32 %v2786_v27, 0.0  ;;  %v1670_v51 = vadd.f32 %v1669_v36, %v1581_v52  ;;  %v6077_v36 = vld [vmem:[#allocation65_spill] sm:$0xff]  ;;  %v3614_v7 = vld [vmem:[%s3781_s10 + $0x528] sm:$0xff] }
 0x295   : > { %1720 = vmatmul.bf16.gmra.mxu0 %v6075_v30 }
 0x296   : > { %1809 = vmatmul.bf16.gmra.mxu1 %v6076_v54  ;;  %v2983_v33 = vmax.f32 %v2791_v47, 0.0  ;;  %v1495_v0 = vadd.f32 %v1494_v10, %v1406_v58  ;;  %1898 = vmatmul.bf16.gmra.mxu2 %v6075_v30  ;;  %3170 = vst [vmem:[%s4325_s16 + $0x4f8] sm:$0xff] %v2978_v4  ;;  %v2216_v63 = vmul.f32 %v4989_v34, %v1670_v51  ;;  %v3615_v4 = vld [vmem:[%s3781_s10 + $0x550] sm:$0xff]  ;;  %v6078_v30 = vld [vmem:[#allocation29_spill] sm:$0xff] }
 0x297   : > { %1987 = vmatmul.bf16.gmra.mxu3 %v6076_v54 }
 0x298   : > { %3175 = vst [vmem:[%s4325_s16 + $0x520] sm:$0xff] %v2983_v33  ;;  %v2221_v12 = vmul.f32 %v4975_v20, %v1495_v0  ;;  %v2600_v32 = vadd.f32 %v6073_v24, %v2216_v63 }
 0x299   : > { %v1583_v27 = vpop.f32.mrf.mxu2 }
 0x29a   : > { %v2605_v11 = vadd.f32 %v6077_v36, %v2221_v12  ;;  %v1672_v52 = vpop.f32.mrf.mxu3  ;;  %v2792_v10 = vadd.f32 %v3614_v7, %v2600_v32  ;;  %v1584_v55 = vadd.f32 %v1583_v27, %v6074_v13  ;;  %v6079_v7 = vld [vmem:[#allocation66_spill] sm:$0xff] }
 0x29b   : > { %v1407_v47 = vpop.f32.mrf.mxu0 }
 0x29c   : > { %v1496_v58 = vpop.f32.mrf.mxu1  ;;  %v2797_v51 = vadd.f32 %v3615_v4, %v2605_v11  ;;  %v1408_v54 = vadd.f32 %v1407_v47, %v6078_v30  ;;  %v2984_v33 = vmax.f32 %v2792_v10, 0.0  ;;  %v1673_v0 = vadd.f32 %v1672_v52, %v1584_v55  ;;  %v3616_v11 = vld [vmem:[%s3781_s10 + $0x558] sm:$0xff] }
 0x29e   : > { %v2989_v63 = vmax.f32 %v2797_v51, 0.0  ;;  %v1497_v24 = vadd.f32 %v1496_v58, %v1408_v54  ;;  %3176 = vst [vmem:[%s4325_s16 + $0x528] sm:$0xff] %v2984_v33  ;;  %v2222_v12 = vmul.f32 %v4989_v34, %v1673_v0  ;;  %v3617_v58 = vld [vmem:[%s3781_s10 + $0x580] sm:$0xff]  ;;  %v6081_v0 = vld [vmem:[#allocation23_spill] sm:$0xff] }
 0x29f   : > { %v6080_v33 = vld [vmem:[#allocation22_spill] sm:$0xff] }
 0x2a0   : > { %3181 = vst [vmem:[%s4325_s16 + $0x550] sm:$0xff] %v2989_v63  ;;  %v2227_v32 = vmul.f32 %v4975_v20, %v1497_v24  ;;  %v2606_v27 = vadd.f32 %v6077_v36, %v2222_v12 }
 0x2a1   : > { %v1585_v26 = vpop.f32.mrf.mxu2 }
 0x2a2   : > { %v2611_v13 = vadd.f32 %v6079_v7, %v2227_v32  ;;  %v1674_v46 = vpop.f32.mrf.mxu3  ;;  %v2798_v47 = vadd.f32 %v3616_v11, %v2606_v27  ;;  %v1586_v52 = vadd.f32 %v1585_v26, %v6078_v30 }
 0x2a3   : > { %v1410_v10 = vpop.f32.mrf.mxu0 }
 0x2a4   : > { %v1499_v55 = vpop.f32.mrf.mxu1  ;;  %v2803_v4 = vadd.f32 %v3617_v58, %v2611_v13  ;;  %v1411_v51 = vadd.f32 %v1410_v10, %v4380_v28  ;;  %v2990_v54 = vmax.f32 %v2798_v47, 0.0  ;;  %v1675_v24 = vadd.f32 %v1674_v46, %v1586_v52  ;;  %v3618_v47 = vld [vmem:[%s3781_s10 + $0x588] sm:$0xff] }
 0x2a5   : > { %1725 = vmatmul.bf16.gmra.mxu0 %v6080_v33 }
 0x2a6   : > { %1814 = vmatmul.bf16.gmra.mxu1 %v6081_v0  ;;  %v2995_v63 = vmax.f32 %v2803_v4, 0.0  ;;  %v1500_v12 = vadd.f32 %v1499_v55, %v1411_v51  ;;  %1903 = vmatmul.bf16.gmra.mxu2 %v6080_v33  ;;  %3182 = vst [vmem:[%s4325_s16 + $0x558] sm:$0xff] %v2990_v54  ;;  %v2228_v26 = vmul.f32 %v4989_v34, %v1675_v24  ;;  %v3619_v4 = vld [vmem:[%s3781_s10 + $0x5b0] sm:$0xff]  ;;  %v6082_v54 = vld [vmem:[#allocation39_spill] sm:$0xff] }
 0x2a7   : > { %1992 = vmatmul.bf16.gmra.mxu3 %v6081_v0 }
 0x2a8   : > { %3187 = vst [vmem:[%s4325_s16 + $0x580] sm:$0xff] %v2995_v63  ;;  %v2233_v13 = vmul.f32 %v4975_v20, %v1500_v12  ;;  %v2612_v32 = vadd.f32 %v6079_v7, %v2228_v26 }
 0x2a9   : > { %v1588_v27 = vpop.f32.mrf.mxu2 }
 0x2aa   : > { %v2617_v46 = vadd.f32 %v4948_v42, %v2233_v13  ;;  %v1677_v11 = vpop.f32.mrf.mxu3  ;;  %v2804_v52 = vadd.f32 %v3618_v47, %v2612_v32  ;;  %v1589_v10 = vadd.f32 %v1588_v27, %v4380_v28  ;;  %v6083_v27 = vld [vmem:[#allocation67_spill] sm:$0xff] }
 0x2ab   : > { %v1412_v55 = vpop.f32.mrf.mxu0 }
 0x2ac   : > { %v1501_v58 = vpop.f32.mrf.mxu1  ;;  %v2809_v51 = vadd.f32 %v3619_v4, %v2617_v46  ;;  %v1413_v24 = vadd.f32 %v1412_v55, %v6082_v54  ;;  %v2996_v33 = vmax.f32 %v2804_v52, 0.0  ;;  %v1678_v0 = vadd.f32 %v1677_v11, %v1589_v10  ;;  %v3620_v4 = vld [vmem:[%s3781_s10 + $0x5b8] sm:$0xff] }
 0x2ae   : > { %v3001_v63 = vmax.f32 %v2809_v51, 0.0  ;;  %v1502_v12 = vadd.f32 %v1501_v58, %v1413_v24  ;;  %3188 = vst [vmem:[%s4325_s16 + $0x588] sm:$0xff] %v2996_v33  ;;  %v2234_v26 = vmul.f32 %v4989_v34, %v1678_v0  ;;  %v3621_v58 = vld [vmem:[%s3781_s10 + $0x5e0] sm:$0xff]  ;;  %v6084_v24 = vld [vmem:[#allocation12_spill] sm:$0xff] }
 0x2af   : > { %v3622_v0 = vld [vmem:[%s4264_s24] sm:$0x3f] }
 0x2b0   : > { %3193 = vst [vmem:[%s4325_s16 + $0x5b0] sm:$0xff] %v3001_v63  ;;  %v2239_v13 = vmul.f32 %v4975_v20, %v1502_v12  ;;  %v2618_v32 = vadd.f32 %v4948_v42, %v2234_v26  ;;  %v5397_v20 = vperm.slane %v3622_v0, 4  ;;  %v6085_v26 = vld [vmem:[#allocation27_spill] sm:$0xff] }
 0x2b1   : > { %v1590_v28 = vpop.f32.mrf.mxu2 }
 0x2b2   : > { %v2623_v47 = vadd.f32 %v6083_v27, %v2239_v13  ;;  %v1679_v46 = vpop.f32.mrf.mxu3  ;;  %v2810_v55 = vadd.f32 %v3620_v4, %v2618_v32  ;;  %v1591_v11 = vadd.f32 %v1590_v28, %v6082_v54  ;;  %v6086_v13 = vld [vmem:[#allocation28_spill] sm:$0xff] }
 0x2b3   : > { %v1691_v52 = vpop.f32.mrf.mxu0 }
 0x2b4   : > { %v1780_v10 = vpop.f32.mrf.mxu1  ;;  %v2815_v51 = vadd.f32 %v3621_v58, %v2623_v47  ;;  %v1692_v33 = vadd.f32 %v1691_v52, %v6084_v24  ;;  %v3002_v63 = vmax.f32 %v2810_v55, 0.0  ;;  %v1680_v12 = vadd.f32 %v1679_v46, %v1591_v11  ;;  %v3623_v58 = vld [vmem:[%s3781_s10 + $0x5e8] sm:$0xff] }
 0x2b5   : > { %1730 = vmatmul.bf16.gmra.mxu0 %v6085_v26 }
 0x2b6   : > { %1819 = vmatmul.bf16.gmra.mxu1 %v6086_v13  ;;  %v3007_v32 = vmax.f32 %v2815_v51, 0.0  ;;  %v1781_v28 = vadd.f32 %v1780_v10, %v1692_v33  ;;  %1908 = vmatmul.bf16.gmra.mxu2 %v6085_v26  ;;  %3194 = vst [vmem:[%s4325_s16 + $0x5b8] sm:$0xff] %v3002_v63  ;;  %v2240_v47 = vmul.f32 %v4989_v34, %v1680_v12  ;;  %v5411_v33 = vperm.slane %v3622_v0, 5  ;;  %v6087_v12 = vld [vmem:[#allocation16_spill] sm:$0xff]  ;;  %v6088_v0 = vld [vmem:[#allocation41_spill] sm:$0xff] }
 0x2b7   : > { %1997 = vmatmul.bf16.gmra.mxu3 %v6086_v13 }
 0x2b8   : > { %3199 = vst [vmem:[%s4325_s16 + $0x5e0] sm:$0xff] %v3007_v32  ;;  %v2055_v4 = vmul.f32 %v5397_v20, %v1781_v28  ;;  %v2624_v55 = vadd.f32 %v6083_v27, %v2240_v47 }
 0x2b9   : > { %v1869_v11 = vpop.f32.mrf.mxu2 }
 0x2ba   : > { %v2439_v46 = vadd.f32 %v6032_v53, %v2055_v4  ;;  %v1958_v52 = vpop.f32.mrf.mxu3  ;;  %v2816_v10 = vadd.f32 %v3623_v58, %v2624_v55  ;;  %v1870_v51 = vadd.f32 %v1869_v11, %v6084_v24 }
 0x2bb   : > { %v1693_v63 = vpop.f32.mrf.mxu0 }
 0x2bc   : > { %v1782_v26 = vpop.f32.mrf.mxu1  ;;  %v2631_v34 = vadd.f32 %v2439_v46, %v5131_v9  ;;  %v1694_v13 = vadd.f32 %v1693_v63, %v6087_v12  ;;  %v3008_v32 = vmax.f32 %v2816_v10, 0.0  ;;  %v1959_v28 = vadd.f32 %v1958_v52, %v1870_v51 }
 0x2be   : > { %v2823_v47 = vmax.f32 %v2631_v34, 0.0  ;;  %v1783_v27 = vadd.f32 %v1782_v26, %v1694_v13  ;;  %3200 = vst [vmem:[%s4325_s16 + $0x5e8] sm:$0xff] %v3008_v32  ;;  %v2056_v4 = vmul.f32 %v5411_v33, %v1959_v28  ;;  %v6090_v34 = vld [vmem:[#allocation36_spill] sm:$0xff] }
 0x2c0   : > { %3015 = vst [vmem:[%s4325_s16 + $0x20] sm:$0xff] %v2823_v47  ;;  %v2061_v55 = vmul.f32 %v5397_v20, %v1783_v27  ;;  %v2440_v24 = vadd.f32 %v6032_v53, %v2056_v4  ;;  %v6089_v53 = vld [vmem:[#allocation33_spill] sm:$0xff] }
 0x2c1   : > { %v1871_v58 = vpop.f32.mrf.mxu2  ;;  %v3624_v4 = vld [vmem:[%s3781_s10 + $0x58] sm:$0xff] }
 0x2c2   : > { %v2445_v11 = vadd.f32 %v6088_v0, %v2061_v55  ;;  %v1960_v54 = vpop.f32.mrf.mxu3  ;;  %v2632_v9 = vadd.f32 %v2440_v24, %v5110_v59  ;;  %v1872_v46 = vadd.f32 %v1871_v58, %v6087_v12 }
 0x2c3   : > { %v1696_v52 = vpop.f32.mrf.mxu0 }
 0x2c4   : > { %v1785_v10 = vpop.f32.mrf.mxu1  ;;  %v2637_v51 = vadd.f32 %v2445_v11, %v5134_v18  ;;  %v1697_v63 = vadd.f32 %v1696_v52, %v6034_v31  ;;  %v2824_v26 = vmax.f32 %v2632_v9, 0.0  ;;  %v1961_v27 = vadd.f32 %v1960_v54, %v1872_v46  ;;  %v3625_v9 = vld [vmem:[%s3781_s10 + $0x80] sm:$0xff] }
 0x2c5   : > { %1735 = vmatmul.bf16.gmra.mxu0 %v6089_v53 }
 0x2c6   : > { %1824 = vmatmul.bf16.gmra.mxu1 %v6090_v34  ;;  %v2829_v13 = vmax.f32 %v2637_v51, 0.0  ;;  %v1786_v32 = vadd.f32 %v1785_v10, %v1697_v63  ;;  %1913 = vmatmul.bf16.gmra.mxu2 %v6089_v53  ;;  %3016 = vst [vmem:[%s4325_s16 + $0x28] sm:$0xff] %v2824_v26  ;;  %v2062_v59 = vmul.f32 %v5411_v33, %v1961_v27 }
 0x2c7   : > { %2002 = vmatmul.bf16.gmra.mxu3 %v6090_v34 }
 0x2c8   : > { %3021 = vst [vmem:[%s4325_s16 + $0x50] sm:$0xff] %v2829_v13  ;;  %v2067_v18 = vmul.f32 %v5397_v20, %v1786_v32  ;;  %v2446_v12 = vadd.f32 %v6088_v0, %v2062_v59  ;;  %v3626_v32 = vld [vmem:[%s3781_s10 + $0x88] sm:$0xff] }
 0x2c9   : > { %v1874_v28 = vpop.f32.mrf.mxu2 }
 0x2ca   : > { %v2451_v54 = vadd.f32 %v4405_v37, %v2067_v18  ;;  %v1963_v47 = vpop.f32.mrf.mxu3  ;;  %v2638_v55 = vadd.f32 %v3624_v4, %v2446_v12  ;;  %v1875_v24 = vadd.f32 %v1874_v28, %v6034_v31  ;;  %v3627_v28 = vld [vmem:[%s3781_s10 + $0xb0] sm:$0xff] }
 0x2cb   : > { %v1698_v11 = vpop.f32.mrf.mxu0 }
 0x2cc   : > { %v1787_v58 = vpop.f32.mrf.mxu1  ;;  %v2643_v46 = vadd.f32 %v3625_v9, %v2451_v54  ;;  %v1699_v52 = vadd.f32 %v1698_v11, %v4158_v3  ;;  %v2830_v10 = vmax.f32 %v2638_v55, 0.0  ;;  %v1964_v51 = vadd.f32 %v1963_v47, %v1875_v24 }
 0x2ce   : > { %v2835_v0 = vmax.f32 %v2643_v46, 0.0  ;;  %v1788_v63 = vadd.f32 %v1787_v58, %v1699_v52  ;;  %3022 = vst [vmem:[%s4325_s16 + $0x58] sm:$0xff] %v2830_v10  ;;  %v2068_v26 = vmul.f32 %v5411_v33, %v1964_v51  ;;  %v3628_v51 = vld [vmem:[%s3781_s10 + $0xb8] sm:$0xff] }
 0x2d0   : > { %3027 = vst [vmem:[%s4325_s16 + $0x80] sm:$0xff] %v2835_v0  ;;  %v2073_v27 = vmul.f32 %v5397_v20, %v1788_v63  ;;  %v2452_v31 = vadd.f32 %v4405_v37, %v2068_v26  ;;  %v3629_v26 = vld [vmem:[%s3781_s10 + $0xe0] sm:$0xff] }
 0x2d1   : > { %v1876_v34 = vpop.f32.mrf.mxu2 }
 0x2d2   : > { %v2457_v53 = vadd.f32 %v4369_v2, %v2073_v27  ;;  %v1965_v13 = vpop.f32.mrf.mxu3  ;;  %v2644_v59 = vadd.f32 %v3626_v32, %v2452_v31  ;;  %v1877_v18 = vadd.f32 %v1876_v34, %v4158_v3 }
 0x2d3   : > { %v1701_v12 = vpop.f32.mrf.mxu0 }
 0x2d4   : > { %v1790_v54 = vpop.f32.mrf.mxu1  ;;  %v2649_v47 = vadd.f32 %v3627_v28, %v2457_v53  ;;  %v1702_v4 = vadd.f32 %v1701_v12, %v4074_v15  ;;  %v2836_v55 = vmax.f32 %v2644_v59, 0.0  ;;  %v1966_v24 = vadd.f32 %v1965_v13, %v1877_v18  ;;  %v3630_v28 = vld [vmem:[%s3781_s10 + $0xe8] sm:$0xff] }
 0x2d5   : > { %1740 = vmatmul.bf16.gmra.mxu0 %v4382_v60 }
 0x2d6   : > { %1829 = vmatmul.bf16.gmra.mxu1 %v4384_v48  ;;  %v2841_v37 = vmax.f32 %v2649_v47, 0.0  ;;  %v1791_v11 = vadd.f32 %v1790_v54, %v1702_v4  ;;  %1918 = vmatmul.bf16.gmra.mxu2 %v4382_v60  ;;  %3028 = vst [vmem:[%s4325_s16 + $0x88] sm:$0xff] %v2836_v55  ;;  %v2074_v3 = vmul.f32 %v5411_v33, %v1966_v24 }
 0x2d7   : > { %2007 = vmatmul.bf16.gmra.mxu3 %v4384_v48 }
 0x2d8   : > { %3033 = vst [vmem:[%s4325_s16 + $0xb0] sm:$0xff] %v2841_v37  ;;  %v2079_v58 = vmul.f32 %v5397_v20, %v1791_v11  ;;  %v2458_v9 = vadd.f32 %v4369_v2, %v2074_v3  ;;  %v3631_v37 = vld [vmem:[%s3781_s10 + $0x110] sm:$0xff] }
 0x2d9   : > { %v1879_v52 = vpop.f32.mrf.mxu2 }
 0x2da   : > { %v2463_v46 = vadd.f32 %v4448_v43, %v2079_v58  ;;  %v1968_v10 = vpop.f32.mrf.mxu3  ;;  %v2650_v0 = vadd.f32 %v3628_v51, %v2458_v9  ;;  %v1880_v60 = vadd.f32 %v1879_v52, %v4074_v15 }
 0x2db   : > { %v1703_v63 = vpop.f32.mrf.mxu0 }
 0x2dc   : > { %v1792_v48 = vpop.f32.mrf.mxu1  ;;  %v2655_v27 = vadd.f32 %v3629_v26, %v2463_v46  ;;  %v1704_v31 = vadd.f32 %v1703_v63, %v4101_v29  ;;  %v2842_v53 = vmax.f32 %v2650_v0, 0.0  ;;  %v1969_v34 = vadd.f32 %v1968_v10, %v1880_v60  ;;  %v3632_v63 = vld [vmem:[%s3781_s10 + $0x118] sm:$0xff] }
 0x2de   : > { %v2847_v2 = vmax.f32 %v2655_v27, 0.0  ;;  %v1793_v13 = vadd.f32 %v1792_v48, %v1704_v31  ;;  %3034 = vst [vmem:[%s4325_s16 + $0xb8] sm:$0xff] %v2842_v53  ;;  %v2080_v32 = vmul.f32 %v5411_v33, %v1969_v34  ;;  %v3633_v27 = vld [vmem:[%s3781_s10 + $0x140] sm:$0xff] }
 0x2e0   : > { %3039 = vst [vmem:[%s4325_s16 + $0xe0] sm:$0xff] %v2847_v2  ;;  %v2085_v59 = vmul.f32 %v5397_v20, %v1793_v13  ;;  %v2464_v15 = vadd.f32 %v4448_v43, %v2080_v32 }
 0x2e1   : > { %v1881_v12 = vpop.f32.mrf.mxu2 }
 0x2e2   : > { %v2469_v18 = vadd.f32 %v4446_v35, %v2085_v59  ;;  %v1970_v54 = vpop.f32.mrf.mxu3  ;;  %v2656_v47 = vadd.f32 %v3630_v28, %v2464_v15  ;;  %v1882_v4 = vadd.f32 %v1881_v12, %v4101_v29  ;;  %v6091_v15 = vld [vmem:[#allocation42_spill] sm:$0xff]  ;;  %v3634_v28 = vld [vmem:[%s3781_s10 + $0x148] sm:$0xff] }
 0x2e3   : > { %v1706_v55 = vpop.f32.mrf.mxu0 }
 0x2e4   : > { %v1795_v24 = vpop.f32.mrf.mxu1  ;;  %v2661_v11 = vadd.f32 %v3631_v37, %v2469_v18  ;;  %v1707_v3 = vadd.f32 %v1706_v55, %v4181_v17  ;;  %v2848_v58 = vmax.f32 %v2656_v47, 0.0  ;;  %v1971_v9 = vadd.f32 %v1970_v54, %v1882_v4  ;;  %v3635_v37 = vld [vmem:[%s3781_s10 + $0x170] sm:$0xff] }
 0x2e5   : > { %1745 = vmatmul.bf16.gmra.mxu0 %v4439_v8 }
 0x2e6   : > { %1834 = vmatmul.bf16.gmra.mxu1 %v4450_v56  ;;  %v2853_v43 = vmax.f32 %v2661_v11, 0.0  ;;  %v1796_v46 = vadd.f32 %v1795_v24, %v1707_v3  ;;  %1923 = vmatmul.bf16.gmra.mxu2 %v4439_v8  ;;  %3040 = vst [vmem:[%s4325_s16 + $0xe8] sm:$0xff] %v2848_v58  ;;  %v2086_v29 = vmul.f32 %v5411_v33, %v1971_v9  ;;  %v6092_v3 = vld [vmem:[#allocation10_spill] sm:$0xff] }
 0x2e7   : > { %2012 = vmatmul.bf16.gmra.mxu3 %v4450_v56 }
 0x2e8   : > { %3045 = vst [vmem:[%s4325_s16 + $0x110] sm:$0xff] %v2853_v43  ;;  %v2091_v52 = vmul.f32 %v5397_v20, %v1796_v46  ;;  %v2470_v10 = vadd.f32 %v4446_v35, %v2086_v29  ;;  %v6094_v46 = vld [vmem:[#allocation44_spill] sm:$0xff] }
 0x2e9   : > { %v1884_v0 = vpop.f32.mrf.mxu2 }
 0x2ea   : > { %v2475_v51 = vadd.f32 %v4475_v21, %v2091_v52  ;;  %v1973_v60 = vpop.f32.mrf.mxu3  ;;  %v2662_v48 = vadd.f32 %v3632_v63, %v2470_v10  ;;  %v1885_v8 = vadd.f32 %v1884_v0, %v4181_v17  ;;  %v6095_v0 = vld [vmem:[#allocation45_spill] sm:$0xff] }
 0x2eb   : > { %v1708_v26 = vpop.f32.mrf.mxu0 }
 0x2ec   : > { %v1797_v56 = vpop.f32.mrf.mxu1  ;;  %v2667_v31 = vadd.f32 %v3633_v27, %v2475_v51  ;;  %v1709_v53 = vadd.f32 %v1708_v26, %v4179_v16  ;;  %v2854_v34 = vmax.f32 %v2662_v48, 0.0  ;;  %v1974_v2 = vadd.f32 %v1973_v60, %v1885_v8  ;;  %v3636_v8 = vld [vmem:[%s3781_s10 + $0x178] sm:$0xff] }
 0x2ee   : > { %v2859_v35 = vmax.f32 %v2667_v31, 0.0  ;;  %v1798_v13 = vadd.f32 %v1797_v56, %v1709_v53  ;;  %3046 = vst [vmem:[%s4325_s16 + $0x118] sm:$0xff] %v2854_v34  ;;  %v2092_v32 = vmul.f32 %v5411_v33, %v1974_v2  ;;  %v3637_v53 = vld [vmem:[%s3781_s10 + $0x1a0] sm:$0xff]  ;;  %v6096_v2 = vld [vmem:[#allocation19_spill] sm:$0xff] }
 0x2f0   : > { %3051 = vst [vmem:[%s4325_s16 + $0x140] sm:$0xff] %v2859_v35  ;;  %v2097_v59 = vmul.f32 %v5397_v20, %v1798_v13  ;;  %v2476_v17 = vadd.f32 %v4475_v21, %v2092_v32  ;;  %v6093_v21 = vld [vmem:[#allocation43_spill] sm:$0xff] }
 0x2f1   : > { %v1886_v12 = vpop.f32.mrf.mxu2 }
 0x2f2   : > { %v2481_v18 = vadd.f32 %v6091_v15, %v2097_v59  ;;  %v1975_v54 = vpop.f32.mrf.mxu3  ;;  %v2668_v47 = vadd.f32 %v3634_v28, %v2476_v17  ;;  %v1887_v4 = vadd.f32 %v1886_v12, %v4179_v16 }
 0x2f3   : > { %v1711_v55 = vpop.f32.mrf.mxu0 }
 0x2f4   : > { %v1800_v24 = vpop.f32.mrf.mxu1  ;;  %v2673_v11 = vadd.f32 %v3635_v37, %v2481_v18  ;;  %v1712_v58 = vadd.f32 %v1711_v55, %v6092_v3  ;;  %v2860_v9 = vmax.f32 %v2668_v47, 0.0  ;;  %v1976_v43 = vadd.f32 %v1975_v54, %v1887_v4  ;;  %v6097_v54 = vld [vmem:[#allocation46_spill] sm:$0xff]  ;;  %v3638_v55 = vld [vmem:[%s3781_s10 + $0x1a8] sm:$0xff] }
 0x2f5   : > { %1750 = vmatmul.bf16.gmra.mxu0 %v6093_v21 }
 0x2f6   : > { %1839 = vmatmul.bf16.gmra.mxu1 %v6094_v46  ;;  %v2865_v29 = vmax.f32 %v2673_v11, 0.0  ;;  %v1801_v52 = vadd.f32 %v1800_v24, %v1712_v58  ;;  %1928 = vmatmul.bf16.gmra.mxu2 %v6093_v21  ;;  %3052 = vst [vmem:[%s4325_s16 + $0x148] sm:$0xff] %v2860_v9  ;;  %v2098_v16 = vmul.f32 %v5411_v33, %v1976_v43  ;;  %v3639_v58 = vld [vmem:[%s3781_s10 + $0x1d0] sm:$0xff] }
 0x2f7   : > { %2017 = vmatmul.bf16.gmra.mxu3 %v6094_v46 }
 0x2f8   : > { %3057 = vst [vmem:[%s4325_s16 + $0x170] sm:$0xff] %v2865_v29  ;;  %v2103_v10 = vmul.f32 %v5397_v20, %v1801_v52  ;;  %v2482_v51 = vadd.f32 %v6091_v15, %v2098_v16  ;;  %v6098_v29 = vld [vmem:[#allocation47_spill] sm:$0xff]  ;;  %v6099_v52 = vld [vmem:[#allocation48_spill] sm:$0xff] }
 0x2f9   : > { %v1889_v63 = vpop.f32.mrf.mxu2 }
 0x2fa   : > { %v2487_v60 = vadd.f32 %v6095_v0, %v2103_v10  ;;  %v1978_v48 = vpop.f32.mrf.mxu3  ;;  %v2674_v26 = vadd.f32 %v3636_v8, %v2482_v51  ;;  %v1890_v56 = vadd.f32 %v1889_v63, %v6092_v3 }
 0x2fb   : > { %v1713_v27 = vpop.f32.mrf.mxu0 }
 0x2fc   : > { %v1802_v31 = vpop.f32.mrf.mxu1  ;;  %v2679_v34 = vadd.f32 %v3637_v53, %v2487_v60  ;;  %v1714_v35 = vadd.f32 %v1713_v27, %v6096_v2  ;;  %v2866_v13 = vmax.f32 %v2674_v26, 0.0  ;;  %v1979_v32 = vadd.f32 %v1978_v48, %v1890_v56  ;;  %v3640_v26 = vld [vmem:[%s3781_s10 + $0x1d8] sm:$0xff] }
 0x2fe   : > { %v2871_v59 = vmax.f32 %v2679_v34, 0.0  ;;  %v1803_v17 = vadd.f32 %v1802_v31, %v1714_v35  ;;  %3058 = vst [vmem:[%s4325_s16 + $0x178] sm:$0xff] %v2866_v13  ;;  %v2104_v15 = vmul.f32 %v5411_v33, %v1979_v32  ;;  %v3641_v34 = vld [vmem:[%s3781_s10 + $0x200] sm:$0xff] }
 0x300   : > { %3063 = vst [vmem:[%s4325_s16 + $0x1a0] sm:$0xff] %v2871_v59  ;;  %v2109_v18 = vmul.f32 %v5397_v20, %v1803_v17  ;;  %v2488_v12 = vadd.f32 %v6095_v0, %v2104_v15 }
 0x301   : > { %v1891_v47 = vpop.f32.mrf.mxu2 }
 0x302   : > { %v2493_v28 = vadd.f32 %v6097_v54, %v2109_v18  ;;  %v1980_v4 = vpop.f32.mrf.mxu3  ;;  %v2680_v24 = vadd.f32 %v3638_v55, %v2488_v12  ;;  %v1892_v37 = vadd.f32 %v1891_v47, %v6096_v2  ;;  %v6100_v12 = vld [vmem:[#allocation50_spill] sm:$0xff] }
 0x303   : > { %v1716_v11 = vpop.f32.mrf.mxu0 }
 0x304   : > { %v1805_v3 = vpop.f32.mrf.mxu1  ;;  %v2685_v9 = vadd.f32 %v3639_v58, %v2493_v28  ;;  %v1717_v43 = vadd.f32 %v1716_v11, %v4193_v23  ;;  %v2872_v21 = vmax.f32 %v2680_v24, 0.0  ;;  %v1981_v46 = vadd.f32 %v1980_v4, %v1892_v37  ;;  %v3642_v4 = vld [vmem:[%s3781_s10 + $0x208] sm:$0xff] }
 0x305   : > { %1755 = vmatmul.bf16.gmra.mxu0 %v6098_v29 }
 0x306   : > { %1844 = vmatmul.bf16.gmra.mxu1 %v6099_v52  ;;  %v2877_v16 = vmax.f32 %v2685_v9, 0.0  ;;  %v1806_v10 = vadd.f32 %v1805_v3, %v1717_v43  ;;  %1933 = vmatmul.bf16.gmra.mxu2 %v6098_v29  ;;  %3064 = vst [vmem:[%s4325_s16 + $0x1a8] sm:$0xff] %v2872_v21  ;;  %v2110_v51 = vmul.f32 %v5411_v33, %v1981_v46  ;;  %v3643_v3 = vld [vmem:[%s3781_s10 + $0x230] sm:$0xff]  ;;  %v6101_v9 = vld [vmem:[#allocation21_spill] sm:$0xff] }
 0x307   : > { %2022 = vmatmul.bf16.gmra.mxu3 %v6099_v52  ;;  %v6103_v29 = vld [vmem:[#allocation52_spill] sm:$0xff] }
 0x308   : > { %3069 = vst [vmem:[%s4325_s16 + $0x1d0] sm:$0xff] %v2877_v16  ;;  %v2115_v0 = vmul.f32 %v5397_v20, %v1806_v10  ;;  %v2494_v60 = vadd.f32 %v6097_v54, %v2110_v51 }
 0x309   : > { %v1894_v48 = vpop.f32.mrf.mxu2 }
 0x30a   : > { %v2499_v63 = vadd.f32 %v6041_v39, %v2115_v0  ;;  %v1983_v8 = vpop.f32.mrf.mxu3  ;;  %v2686_v56 = vadd.f32 %v3640_v26, %v2494_v60  ;;  %v1895_v27 = vadd.f32 %v1894_v48, %v4193_v23  ;;  %v3644_v48 = vld [vmem:[%s3781_s10 + $0x238] sm:$0xff] }
 0x30b   : > { %v1718_v31 = vpop.f32.mrf.mxu0 }
 0x30c   : > { %v1807_v53 = vpop.f32.mrf.mxu1  ;;  %v2691_v2 = vadd.f32 %v3641_v34, %v2499_v63  ;;  %v1719_v35 = vadd.f32 %v1718_v31, %v6042_v62  ;;  %v2878_v13 = vmax.f32 %v2686_v56, 0.0  ;;  %v1984_v32 = vadd.f32 %v1983_v8, %v1895_v27  ;;  %v3645_v31 = vld [vmem:[%s3781_s10 + $0x260] sm:$0xff] }
 0x30e   : > { %v2883_v59 = vmax.f32 %v2691_v2, 0.0  ;;  %v1808_v17 = vadd.f32 %v1807_v53, %v1719_v35  ;;  %3070 = vst [vmem:[%s4325_s16 + $0x1d8] sm:$0xff] %v2878_v13  ;;  %v2116_v15 = vmul.f32 %v5411_v33, %v1984_v32 }
 0x310   : > { %3075 = vst [vmem:[%s4325_s16 + $0x200] sm:$0xff] %v2883_v59  ;;  %v2121_v18 = vmul.f32 %v5397_v20, %v1808_v17  ;;  %v2500_v23 = vadd.f32 %v6041_v39, %v2116_v15  ;;  %v6102_v39 = vld [vmem:[#allocation51_spill] sm:$0xff] }
 0x311   : > { %v1896_v28 = vpop.f32.mrf.mxu2 }
 0x312   : > { %v2505_v54 = vadd.f32 %v6100_v12, %v2121_v18  ;;  %v1985_v47 = vpop.f32.mrf.mxu3  ;;  %v2692_v55 = vadd.f32 %v3642_v4, %v2500_v23  ;;  %v1897_v24 = vadd.f32 %v1896_v28, %v6042_v62 }
 0x313   : > { %v1721_v37 = vpop.f32.mrf.mxu0 }
 0x314   : > { %v1810_v11 = vpop.f32.mrf.mxu1  ;;  %v2697_v58 = vadd.f32 %v3643_v3, %v2505_v54  ;;  %v1722_v43 = vadd.f32 %v1721_v37, %v6101_v9  ;;  %v2884_v21 = vmax.f32 %v2692_v55, 0.0  ;;  %v1986_v46 = vadd.f32 %v1985_v47, %v1897_v24  ;;  %v3646_v54 = vld [vmem:[%s3781_s10 + $0x268] sm:$0xff]  ;;  %v3647_v24 = vld [vmem:[%s3781_s10 + $0x290] sm:$0xff] }
 0x315   : > { %1760 = vmatmul.bf16.gmra.mxu0 %v6102_v39 }
 0x316   : > { %1849 = vmatmul.bf16.gmra.mxu1 %v6103_v29  ;;  %v2889_v52 = vmax.f32 %v2697_v58, 0.0  ;;  %v1811_v16 = vadd.f32 %v1810_v11, %v1722_v43  ;;  %1938 = vmatmul.bf16.gmra.mxu2 %v6102_v39  ;;  %3076 = vst [vmem:[%s4325_s16 + $0x208] sm:$0xff] %v2884_v21  ;;  %v2122_v62 = vmul.f32 %v5411_v33, %v1986_v46 }
 0x317   : > { %2027 = vmatmul.bf16.gmra.mxu3 %v6103_v29 }
 0x318   : > { %3081 = vst [vmem:[%s4325_s16 + $0x230] sm:$0xff] %v2889_v52  ;;  %v2127_v10 = vmul.f32 %v5397_v20, %v1811_v16  ;;  %v2506_v51 = vadd.f32 %v6100_v12, %v2122_v62  ;;  %v3648_v16 = vld [vmem:[%s3781_s10 + $0x298] sm:$0xff] }
 0x319   : > { %v1899_v60 = vpop.f32.mrf.mxu2 }
 0x31a   : > { %v2511_v0 = vadd.f32 %v6047_v19, %v2127_v10  ;;  %v1988_v63 = vpop.f32.mrf.mxu3  ;;  %v2698_v8 = vadd.f32 %v3644_v48, %v2506_v51  ;;  %v1900_v26 = vadd.f32 %v1899_v60, %v6101_v9 }
 0x31b   : > { %v1723_v56 = vpop.f32.mrf.mxu0 }
 0x31c   : > { %v1812_v27 = vpop.f32.mrf.mxu1  ;;  %v2703_v53 = vadd.f32 %v3645_v31, %v2511_v0  ;;  %v1724_v34 = vadd.f32 %v1723_v56, %v4218_v50  ;;  %v2890_v2 = vmax.f32 %v2698_v8, 0.0  ;;  %v1989_v35 = vadd.f32 %v1988_v63, %v1900_v26  ;;  %v3649_v0 = vld [vmem:[%s3781_s10 + $0x2c0] sm:$0xff] }
 0x31e   : > { %v2895_v13 = vmax.f32 %v2703_v53, 0.0  ;;  %v1813_v32 = vadd.f32 %v1812_v27, %v1724_v34  ;;  %3082 = vst [vmem:[%s4325_s16 + $0x238] sm:$0xff] %v2890_v2  ;;  %v2128_v59 = vmul.f32 %v5411_v33, %v1989_v35  ;;  %v3650_v2 = vld [vmem:[%s3781_s10 + $0x2c8] sm:$0xff] }
 0x320   : > { %3087 = vst [vmem:[%s4325_s16 + $0x260] sm:$0xff] %v2895_v13  ;;  %v2133_v17 = vmul.f32 %v5397_v20, %v1813_v32  ;;  %v2512_v15 = vadd.f32 %v6047_v19, %v2128_v59  ;;  %v6104_v19 = vld [vmem:[#allocation54_spill] sm:$0xff] }
 0x321   : > { %v1901_v23 = vpop.f32.mrf.mxu2 }
 0x322   : > { %v2517_v18 = vadd.f32 %v4662_v25, %v2133_v17  ;;  %v1990_v12 = vpop.f32.mrf.mxu3  ;;  %v2704_v28 = vadd.f32 %v3646_v54, %v2512_v15  ;;  %v1902_v47 = vadd.f32 %v1901_v23, %v4218_v50  ;;  %v3651_v17 = vld [vmem:[%s3781_s10 + $0x2f0] sm:$0xff] }
 0x323   : > { %v1726_v4 = vpop.f32.mrf.mxu0 }
 0x324   : > { %v1815_v55 = vpop.f32.mrf.mxu1  ;;  %v2709_v37 = vadd.f32 %v3647_v24, %v2517_v18  ;;  %v1727_v11 = vadd.f32 %v1726_v4, %v4162_v5  ;;  %v2896_v3 = vmax.f32 %v2704_v28, 0.0  ;;  %v1991_v58 = vadd.f32 %v1990_v12, %v1902_v47  ;;  %v6105_v18 = vld [vmem:[#allocation25_spill] sm:$0xff] }
 0x325   : > { %1765 = vmatmul.bf16.gmra.mxu0 %v4669_v41 }
 0x326   : > { %1854 = vmatmul.bf16.gmra.mxu1 %v6104_v19  ;;  %v2901_v9 = vmax.f32 %v2709_v37, 0.0  ;;  %v1816_v43 = vadd.f32 %v1815_v55, %v1727_v11  ;;  %1943 = vmatmul.bf16.gmra.mxu2 %v4669_v41  ;;  %3088 = vst [vmem:[%s4325_s16 + $0x268] sm:$0xff] %v2896_v3  ;;  %v2134_v50 = vmul.f32 %v5411_v33, %v1991_v58  ;;  %v3652_v11 = vld [vmem:[%s3781_s10 + $0x2f8] sm:$0xff] }
 0x327   : > { %2032 = vmatmul.bf16.gmra.mxu3 %v6104_v19 }
 0x328   : > { %3093 = vst [vmem:[%s4325_s16 + $0x290] sm:$0xff] %v2901_v9  ;;  %v2139_v21 = vmul.f32 %v5397_v20, %v1816_v43  ;;  %v2518_v46 = vadd.f32 %v4662_v25, %v2134_v50  ;;  %v3653_v43 = vld [vmem:[%s3781_s10 + $0x320] sm:$0xff] }
 0x329   : > { %v1904_v29 = vpop.f32.mrf.mxu2 }
 0x32a   : > { %v2523_v39 = vadd.f32 %v4693_v57, %v2139_v21  ;;  %v1993_v52 = vpop.f32.mrf.mxu3  ;;  %v2710_v62 = vadd.f32 %v3648_v16, %v2518_v46  ;;  %v1905_v41 = vadd.f32 %v1904_v29, %v4162_v5 }
 0x32b   : > { %v1728_v10 = vpop.f32.mrf.mxu0 }
 0x32c   : > { %v1817_v51 = vpop.f32.mrf.mxu1  ;;  %v2715_v60 = vadd.f32 %v3649_v0, %v2523_v39  ;;  %v1729_v63 = vadd.f32 %v1728_v10, %v4241_v14  ;;  %v2902_v48 = vmax.f32 %v2710_v62, 0.0  ;;  %v1994_v8 = vadd.f32 %v1993_v52, %v1905_v41  ;;  %v3654_v0 = vld [vmem:[%s3781_s10 + $0x328] sm:$0xff] }
 0x32e   : > { %v2907_v25 = vmax.f32 %v2715_v60, 0.0  ;;  %v1818_v26 = vadd.f32 %v1817_v51, %v1729_v63  ;;  %3094 = vst [vmem:[%s4325_s16 + $0x298] sm:$0xff] %v2902_v48  ;;  %v2140_v56 = vmul.f32 %v5411_v33, %v1994_v8 }
 0x330   : > { %3099 = vst [vmem:[%s4325_s16 + $0x2c0] sm:$0xff] %v2907_v25  ;;  %v2145_v27 = vmul.f32 %v5397_v20, %v1818_v26  ;;  %v2524_v5 = vadd.f32 %v4693_v57, %v2140_v56  ;;  %v3655_v25 = vld [vmem:[%s3781_s10 + $0x350] sm:$0xff] }
 0x331   : > { %v1906_v53 = vpop.f32.mrf.mxu2 }
 0x332   : > { %v2529_v31 = vadd.f32 %v6048_v40, %v2145_v27  ;;  %v1995_v34 = vpop.f32.mrf.mxu3  ;;  %v2716_v35 = vadd.f32 %v3650_v2, %v2524_v5  ;;  %v1907_v13 = vadd.f32 %v1906_v53, %v4241_v14 }
 0x333   : > { %v1731_v32 = vpop.f32.mrf.mxu0 }
 0x334   : > { %v1820_v59 = vpop.f32.mrf.mxu1  ;;  %v2721_v15 = vadd.f32 %v3651_v17, %v2529_v31  ;;  %v1732_v23 = vadd.f32 %v1731_v32, %v6105_v18  ;;  %v2908_v12 = vmax.f32 %v2716_v35, 0.0  ;;  %v1996_v54 = vadd.f32 %v1995_v34, %v1907_v13  ;;  %v3656_v32 = vld [vmem:[%s3781_s10 + $0x358] sm:$0xff] }
 0x336   : > { %v2913_v57 = vmax.f32 %v2721_v15, 0.0  ;;  %v1821_v28 = vadd.f32 %v1820_v59, %v1732_v23  ;;  %3100 = vst [vmem:[%s4325_s16 + $0x2c8] sm:$0xff] %v2908_v12  ;;  %v2146_v47 = vmul.f32 %v5411_v33, %v1996_v54  ;;  %v3657_v23 = vld [vmem:[%s3781_s10 + $0x380] sm:$0xff] }
 0x338   : > { %3105 = vst [vmem:[%s4325_s16 + $0x2f0] sm:$0xff] %v2913_v57  ;;  %v2151_v4 = vmul.f32 %v5397_v20, %v1821_v28  ;;  %v2530_v14 = vadd.f32 %v6048_v40, %v2146_v47 }
 0x339   : > { %v1909_v24 = vpop.f32.mrf.mxu2 }
 0x33a   : > { %v2535_v55 = vadd.f32 %v4721_v1, %v2151_v4  ;;  %v1998_v37 = vpop.f32.mrf.mxu3  ;;  %v2722_v3 = vadd.f32 %v3652_v11, %v2530_v14  ;;  %v1910_v58 = vadd.f32 %v1909_v24, %v6105_v18 }
 0x33b   : > { %v1733_v19 = vpop.f32.mrf.mxu0 }
 0x33c   : > { %v1822_v9 = vpop.f32.mrf.mxu1  ;;  %v2727_v50 = vadd.f32 %v3653_v43, %v2535_v55  ;;  %v1734_v21 = vadd.f32 %v1733_v19, %v4187_v22  ;;  %v2914_v46 = vmax.f32 %v2722_v3, 0.0  ;;  %v1999_v39 = vadd.f32 %v1998_v37, %v1910_v58  ;;  %v6106_v55 = vld [vmem:[#allocation56_spill] sm:$0xff]  ;;  %v3658_v3 = vld [vmem:[%s3781_s10 + $0x388] sm:$0xff] }
 0x33e   : > { %v2919_v40 = vmax.f32 %v2727_v50, 0.0  ;;  %v1823_v29 = vadd.f32 %v1822_v9, %v1734_v21  ;;  %3106 = vst [vmem:[%s4325_s16 + $0x2f8] sm:$0xff] %v2914_v46  ;;  %v2152_v52 = vmul.f32 %v5411_v33, %v1999_v39  ;;  %v3659_v50 = vld [vmem:[%s3781_s10 + $0x3b0] sm:$0xff] }
 0x33f   : > { %v6107_v46 = vld [vmem:[#allocation20_spill] sm:$0xff] }
 0x340   : > { %3111 = vst [vmem:[%s4325_s16 + $0x320] sm:$0xff] %v2919_v40  ;;  %v2157_v16 = vmul.f32 %v5397_v20, %v1823_v29  ;;  %v2536_v62 = vadd.f32 %v4721_v1, %v2152_v52 }
 0x341   : > { %v1911_v10 = vpop.f32.mrf.mxu2 }
 0x342   : > { %v2541_v41 = vadd.f32 %v4736_v61, %v2157_v16  ;;  %v2000_v51 = vpop.f32.mrf.mxu3  ;;  %v2728_v60 = vadd.f32 %v3654_v0, %v2536_v62  ;;  %v1912_v63 = vadd.f32 %v1911_v10, %v4187_v22 }
 0x343   : > { %v1736_v48 = vpop.f32.mrf.mxu0 }
 0x344   : > { %v1825_v8 = vpop.f32.mrf.mxu1  ;;  %v2733_v26 = vadd.f32 %v3655_v25, %v2541_v41  ;;  %v1737_v56 = vadd.f32 %v1736_v48, %v4271_v45  ;;  %v2920_v27 = vmax.f32 %v2728_v60, 0.0  ;;  %v2001_v5 = vadd.f32 %v2000_v51, %v1912_v63  ;;  %v6108_v41 = vld [vmem:[#allocation57_spill] sm:$0xff] }
 0x345   : > { %v3660_v60 = vld [vmem:[%s3781_s10 + $0x3b8] sm:$0xff] }
 0x346   : > { %v2925_v1 = vmax.f32 %v2733_v26, 0.0  ;;  %v1826_v31 = vadd.f32 %v1825_v8, %v1737_v56  ;;  %3112 = vst [vmem:[%s4325_s16 + $0x328] sm:$0xff] %v2920_v27  ;;  %v2158_v53 = vmul.f32 %v5411_v33, %v2001_v5  ;;  %v3661_v26 = vld [vmem:[%s3781_s10 + $0x3e0] sm:$0xff]  ;;  %v6109_v27 = vld [vmem:[#allocation31_spill] sm:$0xff] }
 0x348   : > { %3117 = vst [vmem:[%s4325_s16 + $0x350] sm:$0xff] %v2925_v1  ;;  %v2163_v34 = vmul.f32 %v5397_v20, %v1826_v31  ;;  %v2542_v22 = vadd.f32 %v4736_v61, %v2158_v53 }
 0x349   : > { %v1914_v35 = vpop.f32.mrf.mxu2 }
 0x34a   : > { %v2547_v2 = vadd.f32 %v4760_v49, %v2163_v34  ;;  %v2003_v13 = vpop.f32.mrf.mxu3  ;;  %v2734_v59 = vadd.f32 %v3656_v32, %v2542_v22  ;;  %v1915_v17 = vadd.f32 %v1914_v35, %v4271_v45 }
 0x34b   : > { %v1738_v15 = vpop.f32.mrf.mxu0 }
 0x34c   : > { %v1827_v18 = vpop.f32.mrf.mxu1  ;;  %v2739_v12 = vadd.f32 %v3657_v23, %v2547_v2  ;;  %v1739_v54 = vadd.f32 %v1738_v15, %v4269_v44  ;;  %v2926_v57 = vmax.f32 %v2734_v59, 0.0  ;;  %v2004_v28 = vadd.f32 %v2003_v13, %v1915_v17  ;;  %v6110_v13 = vld [vmem:[#allocation58_spill] sm:$0xff]  ;;  %v3662_v15 = vld [vmem:[%s3781_s10 + $0x3e8] sm:$0xff] }
 0x34e   : > { %v2931_v61 = vmax.f32 %v2739_v12, 0.0  ;;  %v1828_v47 = vadd.f32 %v1827_v18, %v1739_v54  ;;  %3118 = vst [vmem:[%s4325_s16 + $0x358] sm:$0xff] %v2926_v57  ;;  %v2164_v4 = vmul.f32 %v5411_v33, %v2004_v28  ;;  %v3663_v57 = vld [vmem:[%s3781_s10 + $0x410] sm:$0xff] }
 0x350   : > { %3123 = vst [vmem:[%s4325_s16 + $0x380] sm:$0xff] %v2931_v61  ;;  %v2169_v14 = vmul.f32 %v5397_v20, %v1828_v47  ;;  %v2548_v45 = vadd.f32 %v4760_v49, %v2164_v4  ;;  %v6111_v61 = vld [vmem:[#allocation30_spill] sm:$0xff] }
 0x351   : > { %v1916_v37 = vpop.f32.mrf.mxu2 }
 0x352   : > { %v2553_v24 = vadd.f32 %v6106_v55, %v2169_v14  ;;  %v2005_v11 = vpop.f32.mrf.mxu3  ;;  %v2740_v58 = vadd.f32 %v3658_v3, %v2548_v45  ;;  %v1917_v19 = vadd.f32 %v1916_v37, %v4269_v44 }
 0x353   : > { %v1741_v9 = vpop.f32.mrf.mxu0 }
 0x354   : > { %v1830_v43 = vpop.f32.mrf.mxu1  ;;  %v2745_v21 = vadd.f32 %v3659_v50, %v2553_v24  ;;  %v1742_v39 = vadd.f32 %v1741_v9, %v6107_v46  ;;  %v2932_v40 = vmax.f32 %v2740_v58, 0.0  ;;  %v2006_v29 = vadd.f32 %v2005_v11, %v1917_v19  ;;  %v3664_v9 = vld [vmem:[%s3781_s10 + $0x418] sm:$0xff] }
 0x356   : > { %v2937_v49 = vmax.f32 %v2745_v21, 0.0  ;;  %v1831_v52 = vadd.f32 %v1830_v43, %v1742_v39  ;;  %3124 = vst [vmem:[%s4325_s16 + $0x388] sm:$0xff] %v2932_v40  ;;  %v2170_v16 = vmul.f32 %v5411_v33, %v2006_v29  ;;  %v3665_v39 = vld [vmem:[%s3781_s10 + $0x440] sm:$0xff] }
 0x358   : > { %3129 = vst [vmem:[%s4325_s16 + $0x3b0] sm:$0xff] %v2937_v49  ;;  %v2175_v62 = vmul.f32 %v5397_v20, %v1831_v52  ;;  %v2554_v44 = vadd.f32 %v6106_v55, %v2170_v16 }
 0x359   : > { %v1919_v51 = vpop.f32.mrf.mxu2 }
 0x35a   : > { %v2559_v10 = vadd.f32 %v6108_v41, %v2175_v62  ;;  %v2008_v0 = vpop.f32.mrf.mxu3  ;;  %v2746_v63 = vadd.f32 %v3660_v60, %v2554_v44  ;;  %v1920_v48 = vadd.f32 %v1919_v51, %v6107_v46  ;;  %v6112_v51 = vld [vmem:[#allocation60_spill] sm:$0xff] }
 0x35b   : > { %v1743_v8 = vpop.f32.mrf.mxu0 }
 0x35c   : > { %v1832_v25 = vpop.f32.mrf.mxu1  ;;  %v2751_v56 = vadd.f32 %v3661_v26, %v2559_v10  ;;  %v1744_v5 = vadd.f32 %v1743_v8, %v6109_v27  ;;  %v2938_v1 = vmax.f32 %v2746_v63, 0.0  ;;  %v2009_v31 = vadd.f32 %v2008_v0, %v1920_v48  ;;  %v3666_v48 = vld [vmem:[%s3781_s10 + $0x448] sm:$0xff] }
 0x35e   : > { %v2943_v53 = vmax.f32 %v2751_v56, 0.0  ;;  %v1833_v34 = vadd.f32 %v1832_v25, %v1744_v5  ;;  %3130 = vst [vmem:[%s4325_s16 + $0x3b8] sm:$0xff] %v2938_v1  ;;  %v2176_v22 = vmul.f32 %v5411_v33, %v2009_v31  ;;  %v6113_v1 = vld [vmem:[#allocation35_spill] sm:$0xff] }
 0x360   : > { %3135 = vst [vmem:[%s4325_s16 + $0x3e0] sm:$0xff] %v2943_v53  ;;  %v2181_v2 = vmul.f32 %v5397_v20, %v1833_v34  ;;  %v2560_v35 = vadd.f32 %v6108_v41, %v2176_v22 }
 0x361   : > { %v1921_v59 = vpop.f32.mrf.mxu2 }
 0x362   : > { %v2565_v32 = vadd.f32 %v6110_v13, %v2181_v2  ;;  %v2010_v17 = vpop.f32.mrf.mxu3  ;;  %v2752_v18 = vadd.f32 %v3662_v15, %v2560_v35  ;;  %v1922_v23 = vadd.f32 %v1921_v59, %v6109_v27  ;;  %v3667_v27 = vld [vmem:[%s3781_s10 + $0x470] sm:$0xff]  ;;  %v3668_v15 = vld [vmem:[%s3781_s10 + $0x478] sm:$0xff] }
 0x363   : > { %v1746_v12 = vpop.f32.mrf.mxu0 }
 0x364   : > { %v1835_v54 = vpop.f32.mrf.mxu1  ;;  %v2757_v28 = vadd.f32 %v3663_v57, %v2565_v32  ;;  %v1747_v47 = vadd.f32 %v1746_v12, %v6111_v61  ;;  %v2944_v4 = vmax.f32 %v2752_v18, 0.0  ;;  %v2011_v14 = vadd.f32 %v2010_v17, %v1922_v23  ;;  %v3669_v57 = vld [vmem:[%s3781_s10 + $0x4a0] sm:$0xff] }
 0x366   : > { %v2949_v45 = vmax.f32 %v2757_v28, 0.0  ;;  %v1836_v55 = vadd.f32 %v1835_v54, %v1747_v47  ;;  %3136 = vst [vmem:[%s4325_s16 + $0x3e8] sm:$0xff] %v2944_v4  ;;  %v2182_v24 = vmul.f32 %v5411_v33, %v2011_v14 }
 0x368   : > { %3141 = vst [vmem:[%s4325_s16 + $0x410] sm:$0xff] %v2949_v45  ;;  %v2187_v37 = vmul.f32 %v5397_v20, %v1836_v55  ;;  %v2566_v11 = vadd.f32 %v6110_v13, %v2182_v24  ;;  %v6114_v13 = vld [vmem:[#allocation61_spill] sm:$0xff] }
 0x369   : > { %v1924_v58 = vpop.f32.mrf.mxu2 }
 0x36a   : > { %v2571_v3 = vadd.f32 %v6061_v38, %v2187_v37  ;;  %v2013_v19 = vpop.f32.mrf.mxu3  ;;  %v2758_v43 = vadd.f32 %v3664_v9, %v2566_v11  ;;  %v1925_v50 = vadd.f32 %v1924_v58, %v6111_v61  ;;  %v6115_v61 = vld [vmem:[#allocation34_spill] sm:$0xff] }
 0x36b   : > { %v1748_v21 = vpop.f32.mrf.mxu0 }
 0x36c   : > { %v1837_v46 = vpop.f32.mrf.mxu1  ;;  %v2763_v40 = vadd.f32 %v3665_v39, %v2571_v3  ;;  %v1749_v29 = vadd.f32 %v1748_v21, %v6062_v6  ;;  %v2950_v49 = vmax.f32 %v2758_v43, 0.0  ;;  %v2014_v52 = vadd.f32 %v2013_v19, %v1925_v50  ;;  %v6116_v3 = vld [vmem:[#allocation62_spill] sm:$0xff]  ;;  %v3670_v43 = vld [vmem:[%s3781_s10 + $0x4a8] sm:$0xff] }
 0x36e   : > { %v2955_v16 = vmax.f32 %v2763_v40, 0.0  ;;  %v1838_v62 = vadd.f32 %v1837_v46, %v1749_v29  ;;  %3142 = vst [vmem:[%s4325_s16 + $0x418] sm:$0xff] %v2950_v49  ;;  %v2188_v44 = vmul.f32 %v5411_v33, %v2014_v52  ;;  %v3671_v40 = vld [vmem:[%s3781_s10 + $0x4d0] sm:$0xff]  ;;  %v6117_v49 = vld [vmem:[#allocation26_spill] sm:$0xff] }
 0x370   : > { %3147 = vst [vmem:[%s4325_s16 + $0x440] sm:$0xff] %v2955_v16  ;;  %v2193_v41 = vmul.f32 %v5397_v20, %v1838_v62  ;;  %v2572_v10 = vadd.f32 %v6061_v38, %v2188_v44 }
 0x371   : > { %v1926_v60 = vpop.f32.mrf.mxu2 }
 0x372   : > { %v2577_v0 = vadd.f32 %v6112_v51, %v2193_v41  ;;  %v2015_v63 = vpop.f32.mrf.mxu3  ;;  %v2764_v8 = vadd.f32 %v3666_v48, %v2572_v10  ;;  %v1927_v25 = vadd.f32 %v1926_v60, %v6062_v6  ;;  %v6118_v60 = vld [vmem:[#allocation63_spill] sm:$0xff] }
 0x373   : > { %v1751_v26 = vpop.f32.mrf.mxu0 }
 0x374   : > { %v1840_v56 = vpop.f32.mrf.mxu1  ;;  %v2769_v5 = vadd.f32 %v3667_v27, %v2577_v0  ;;  %v1752_v31 = vadd.f32 %v1751_v26, %v6113_v1  ;;  %v2956_v53 = vmax.f32 %v2764_v8, 0.0  ;;  %v2016_v34 = vadd.f32 %v2015_v63, %v1927_v25  ;;  %v3672_v25 = vld [vmem:[%s3781_s10 + $0x4d8] sm:$0xff] }
 0x376   : > { %v2961_v38 = vmax.f32 %v2769_v5, 0.0  ;;  %v1841_v22 = vadd.f32 %v1840_v56, %v1752_v31  ;;  %3148 = vst [vmem:[%s4325_s16 + $0x448] sm:$0xff] %v2956_v53  ;;  %v2194_v2 = vmul.f32 %v5411_v33, %v2016_v34  ;;  %v6119_v53 = vld [vmem:[#allocation38_spill] sm:$0xff] }
 0x378   : > { %3153 = vst [vmem:[%s4325_s16 + $0x470] sm:$0xff] %v2961_v38  ;;  %v2199_v35 = vmul.f32 %v5397_v20, %v1841_v22  ;;  %v2578_v6 = vadd.f32 %v6112_v51, %v2194_v2 }
 0x379   : > { %v1929_v59 = vpop.f32.mrf.mxu2 }
 0x37a   : > { %v2583_v32 = vadd.f32 %v6114_v13, %v2199_v35  ;;  %v2018_v17 = vpop.f32.mrf.mxu3  ;;  %v2770_v18 = vadd.f32 %v3668_v15, %v2578_v6  ;;  %v1930_v23 = vadd.f32 %v1929_v59, %v6113_v1  ;;  %v3673_v1 = vld [vmem:[%s3781_s10 + $0x500] sm:$0xff]  ;;  %v6120_v59 = vld [vmem:[#allocation64_spill] sm:$0xff] }
 0x37b   : > { %v1753_v12 = vpop.f32.mrf.mxu0 }
 0x37c   : > { %v1842_v54 = vpop.f32.mrf.mxu1  ;;  %v2775_v28 = vadd.f32 %v3669_v57, %v2583_v32  ;;  %v1754_v47 = vadd.f32 %v1753_v12, %v6115_v61  ;;  %v2962_v4 = vmax.f32 %v2770_v18, 0.0  ;;  %v2019_v14 = vadd.f32 %v2018_v17, %v1930_v23  ;;  %v3674_v23 = vld [vmem:[%s3781_s10 + $0x508] sm:$0xff] }
 0x37e   : > { %v2967_v45 = vmax.f32 %v2775_v28, 0.0  ;;  %v1843_v55 = vadd.f32 %v1842_v54, %v1754_v47  ;;  %3154 = vst [vmem:[%s4325_s16 + $0x478] sm:$0xff] %v2962_v4  ;;  %v2200_v24 = vmul.f32 %v5411_v33, %v2019_v14  ;;  %v6121_v4 = vld [vmem:[#allocation37_spill] sm:$0xff] }
 0x380   : > { %3159 = vst [vmem:[%s4325_s16 + $0x4a0] sm:$0xff] %v2967_v45  ;;  %v2205_v37 = vmul.f32 %v5397_v20, %v1843_v55  ;;  %v2584_v11 = vadd.f32 %v6114_v13, %v2200_v24 }
 0x381   : > { %v1931_v19 = vpop.f32.mrf.mxu2 }
 0x382   : > { %v2589_v58 = vadd.f32 %v6116_v3, %v2205_v37  ;;  %v2020_v9 = vpop.f32.mrf.mxu3  ;;  %v2776_v50 = vadd.f32 %v3670_v43, %v2584_v11  ;;  %v1932_v21 = vadd.f32 %v1931_v19, %v6115_v61  ;;  %v3675_v61 = vld [vmem:[%s3781_s10 + $0x530] sm:$0xff] }
 0x383   : > { %v1756_v46 = vpop.f32.mrf.mxu0 }
 0x384   : > { %v1845_v39 = vpop.f32.mrf.mxu1  ;;  %v2781_v29 = vadd.f32 %v3671_v40, %v2589_v58  ;;  %v1757_v52 = vadd.f32 %v1756_v46, %v6117_v49  ;;  %v2968_v16 = vmax.f32 %v2776_v50, 0.0  ;;  %v2021_v62 = vadd.f32 %v2020_v9, %v1932_v21  ;;  %v3676_v50 = vld [vmem:[%s3781_s10 + $0x538] sm:$0xff] }
 0x386   : > { %v2973_v44 = vmax.f32 %v2781_v29, 0.0  ;;  %v1846_v41 = vadd.f32 %v1845_v39, %v1757_v52  ;;  %3160 = vst [vmem:[%s4325_s16 + $0x4a8] sm:$0xff] %v2968_v16  ;;  %v2206_v10 = vmul.f32 %v5411_v33, %v2021_v62  ;;  %v3677_v29 = vld [vmem:[%s3781_s10 + $0x560] sm:$0xff] }
 0x388   : > { %3165 = vst [vmem:[%s4325_s16 + $0x4d0] sm:$0xff] %v2973_v44  ;;  %v2211_v51 = vmul.f32 %v5397_v20, %v1846_v41  ;;  %v2590_v0 = vadd.f32 %v6116_v3, %v2206_v10 }
 0x389   : > { %v1934_v48 = vpop.f32.mrf.mxu2 }
 0x38a   : > { %v2595_v63 = vadd.f32 %v6118_v60, %v2211_v51  ;;  %v2023_v8 = vpop.f32.mrf.mxu3  ;;  %v2782_v26 = vadd.f32 %v3672_v25, %v2590_v0  ;;  %v1935_v56 = vadd.f32 %v1934_v48, %v6117_v49 }
 0x38b   : > { %v1758_v27 = vpop.f32.mrf.mxu0 }
 0x38c   : > { %v1847_v5 = vpop.f32.mrf.mxu1  ;;  %v2787_v31 = vadd.f32 %v3673_v1, %v2595_v63  ;;  %v1759_v34 = vadd.f32 %v1758_v27, %v6119_v53  ;;  %v2974_v38 = vmax.f32 %v2782_v26, 0.0  ;;  %v2024_v22 = vadd.f32 %v2023_v8, %v1935_v56  ;;  %v3678_v8 = vld [vmem:[%s3781_s10 + $0x568] sm:$0xff] }
 0x38e   : > { %v2979_v2 = vmax.f32 %v2787_v31, 0.0  ;;  %v1848_v35 = vadd.f32 %v1847_v5, %v1759_v34  ;;  %3166 = vst [vmem:[%s4325_s16 + $0x4d8] sm:$0xff] %v2974_v38  ;;  %v2212_v6 = vmul.f32 %v5411_v33, %v2024_v22  ;;  %v3679_v5 = vld [vmem:[%s3781_s10 + $0x590] sm:$0xff] }
 0x38f   : > { %v6122_v31 = vld [vmem:[#allocation40_spill] sm:$0xff] }
 0x390   : > { %3171 = vst [vmem:[%s4325_s16 + $0x500] sm:$0xff] %v2979_v2  ;;  %v2217_v13 = vmul.f32 %v5397_v20, %v1848_v35  ;;  %v2596_v32 = vadd.f32 %v6118_v60, %v2212_v6 }
 0x391   : > { %v1936_v15 = vpop.f32.mrf.mxu2 }
 0x392   : > { %v2601_v17 = vadd.f32 %v6120_v59, %v2217_v13  ;;  %v2025_v18 = vpop.f32.mrf.mxu3  ;;  %v2788_v12 = vadd.f32 %v3674_v23, %v2596_v32  ;;  %v1937_v54 = vadd.f32 %v1936_v15, %v6119_v53  ;;  %v3681_v23 = vld [vmem:[%s3781_s10 + $0x5c0] sm:$0xff] }
 0x393   : > { %v1761_v57 = vpop.f32.mrf.mxu0 }
 0x394   : > { %v1850_v28 = vpop.f32.mrf.mxu1  ;;  %v2793_v47 = vadd.f32 %v3675_v61, %v2601_v17  ;;  %v1762_v14 = vadd.f32 %v1761_v57, %v6121_v4  ;;  %v2980_v45 = vmax.f32 %v2788_v12, 0.0  ;;  %v2026_v55 = vadd.f32 %v2025_v18, %v1937_v54  ;;  %v6123_v54 = vld [vmem:[#allocation39_spill] sm:$0xff] }
 0x396   : > { %v2985_v24 = vmax.f32 %v2793_v47, 0.0  ;;  %v1851_v37 = vadd.f32 %v1850_v28, %v1762_v14  ;;  %3172 = vst [vmem:[%s4325_s16 + $0x508] sm:$0xff] %v2980_v45  ;;  %v2218_v11 = vmul.f32 %v5411_v33, %v2026_v55 }
 0x398   : > { %3177 = vst [vmem:[%s4325_s16 + $0x530] sm:$0xff] %v2985_v24  ;;  %v2223_v3 = vmul.f32 %v5397_v20, %v1851_v37  ;;  %v2602_v58 = vadd.f32 %v6120_v59, %v2218_v11  ;;  %v3680_v59 = vld [vmem:[%s3781_s10 + $0x598] sm:$0xff]  ;;  %v6124_v24 = vld [vmem:[#allocation67_spill] sm:$0xff] }
 0x399   : > { %v1939_v9 = vpop.f32.mrf.mxu2 }
 0x39a   : > { %v2607_v19 = vadd.f32 %v6077_v36, %v2223_v3  ;;  %v2028_v43 = vpop.f32.mrf.mxu3  ;;  %v2794_v21 = vadd.f32 %v3676_v50, %v2602_v58  ;;  %v1940_v46 = vadd.f32 %v1939_v9, %v6121_v4  ;;  %v3682_v3 = vld [vmem:[%s3781_s10 + $0x5c8] sm:$0xff]  ;;  %v3683_v9 = vld [vmem:[%s3781_s10 + $0x5f0] sm:$0xff] }
 0x39b   : > { %v1763_v39 = vpop.f32.mrf.mxu0 }
 0x39c   : > { %v1852_v40 = vpop.f32.mrf.mxu1  ;;  %v2799_v49 = vadd.f32 %v3677_v29, %v2607_v19  ;;  %v1764_v52 = vadd.f32 %v1763_v39, %v6078_v30  ;;  %v2986_v16 = vmax.f32 %v2794_v21, 0.0  ;;  %v2029_v62 = vadd.f32 %v2028_v43, %v1940_v46 }
 0x39e   : > { %v2991_v44 = vmax.f32 %v2799_v49, 0.0  ;;  %v1853_v41 = vadd.f32 %v1852_v40, %v1764_v52  ;;  %3178 = vst [vmem:[%s4325_s16 + $0x538] sm:$0xff] %v2986_v16  ;;  %v2224_v10 = vmul.f32 %v5411_v33, %v2029_v62  ;;  %v3684_v40 = vld [vmem:[%s3781_s10 + $0x5f8] sm:$0xff] }
 0x3a0   : > { %3183 = vst [vmem:[%s4325_s16 + $0x560] sm:$0xff] %v2991_v44  ;;  %v2229_v51 = vmul.f32 %v5397_v20, %v1853_v41  ;;  %v2608_v0 = vadd.f32 %v6077_v36, %v2224_v10 }
 0x3a1   : > { %v1941_v63 = vpop.f32.mrf.mxu2 }
 0x3a2   : > { %v2613_v60 = vadd.f32 %v6079_v7, %v2229_v51  ;;  %v2030_v48 = vpop.f32.mrf.mxu3  ;;  %v2800_v25 = vadd.f32 %v3678_v8, %v2608_v0  ;;  %v1942_v26 = vadd.f32 %v1941_v63, %v6078_v30 }
 0x3a3   : > { %v1766_v56 = vpop.f32.mrf.mxu0 }
 0x3a4   : > { %v1855_v27 = vpop.f32.mrf.mxu1  ;;  %v2805_v1 = vadd.f32 %v3679_v5, %v2613_v60  ;;  %v1767_v53 = vadd.f32 %v1766_v56, %v6122_v31  ;;  %v2992_v34 = vmax.f32 %v2800_v25, 0.0  ;;  %v2031_v36 = vadd.f32 %v2030_v48, %v1942_v26 }
 0x3a6   : > { %v2997_v38 = vmax.f32 %v2805_v1, 0.0  ;;  %v1856_v22 = vadd.f32 %v1855_v27, %v1767_v53  ;;  %3184 = vst [vmem:[%s4325_s16 + $0x568] sm:$0xff] %v2992_v34  ;;  %v2230_v2 = vmul.f32 %v5411_v33, %v2031_v36 }
 0x3a8   : > { %3189 = vst [vmem:[%s4325_s16 + $0x590] sm:$0xff] %v2997_v38  ;;  %v2235_v35 = vmul.f32 %v5397_v20, %v1856_v22  ;;  %v2614_v30 = vadd.f32 %v6079_v7, %v2230_v2 }
 0x3a9   : > { %v1944_v13 = vpop.f32.mrf.mxu2 }
 0x3aa   : > { %v2619_v6 = vadd.f32 %v4948_v42, %v2235_v35  ;;  %v2033_v32 = vpop.f32.mrf.mxu3  ;;  %v2806_v17 = vadd.f32 %v3680_v59, %v2614_v30  ;;  %v1945_v15 = vadd.f32 %v1944_v13, %v6122_v31 }
 0x3ab   : > { %v1768_v18 = vpop.f32.mrf.mxu0 }
 0x3ac   : > { %v2811_v12 = vadd.f32 %v3681_v23, %v2619_v6  ;;  %v1769_v57 = vadd.f32 %v1768_v18, %v6123_v54  ;;  %v2998_v28 = vmax.f32 %v2806_v17, 0.0  ;;  %v2034_v61 = vadd.f32 %v2033_v32, %v1945_v15  ;;  %v1857_v7 = vpop.f32.mrf.mxu1 }
 0x3ae   : > { %v3003_v47 = vmax.f32 %v2811_v12, 0.0  ;;  %v1858_v4 = vadd.f32 %v1857_v7, %v1769_v57  ;;  %3190 = vst [vmem:[%s4325_s16 + $0x598] sm:$0xff] %v2998_v28  ;;  %v2236_v14 = vmul.f32 %v5411_v33, %v2034_v61 }
 0x3b0   : > { %3195 = vst [vmem:[%s4325_s16 + $0x5c0] sm:$0xff] %v3003_v47  ;;  %v2241_v45 = vmul.f32 %v5397_v20, %v1858_v4  ;;  %v2620_v55 = vadd.f32 %v4948_v42, %v2236_v14 }
 0x3b1   : > { %v1946_v11 = vpop.f32.mrf.mxu2 }
 0x3b2   : > { %v2625_v37 = vadd.f32 %v6124_v24, %v2241_v45  ;;  %v2812_v58 = vadd.f32 %v3682_v3, %v2620_v55  ;;  %v1947_v19 = vadd.f32 %v1946_v11, %v6123_v54  ;;  %v2035_v50 = vpop.f32.mrf.mxu3 }
 0x3b4   : > { %v2817_v43 = vadd.f32 %v3683_v9, %v2625_v37  ;;  %v3004_v21 = vmax.f32 %v2812_v58, 0.0  ;;  %v2036_v46 = vadd.f32 %v2035_v50, %v1947_v19 }
 0x3b6   : > { %v3009_v39 = vmax.f32 %v2817_v43, 0.0  ;;  %3196 = vst [vmem:[%s4325_s16 + $0x5c8] sm:$0xff] %v3004_v21  ;;  %v2242_v20 = vmul.f32 %v5411_v33, %v2036_v46 }
 0x3b8   : > { %3201 = vst [vmem:[%s4325_s16 + $0x5f0] sm:$0xff] %v3009_v39  ;;  %v2626_v42 = vadd.f32 %v6124_v24, %v2242_v20 }
 0x3ba   : > { %v2818_v29 = vadd.f32 %v3684_v40, %v2626_v42 }
 0x3bc   : > { %v3010_v49 = vmax.f32 %v2818_v29, 0.0 }
 0x3be   : > { %3202 = vst [vmem:[%s4325_s16 + $0x5f8] sm:$0xff] %v3010_v49 }
 0x3bf PF: > { %s15_s20 = sadd.s32 1, %s3707_s20   ;;  %s6125_s18 = smov %s3703_s19 }
 0x3c0   : > { %p12_p5 = scmp.ge.s32.totalorder %s15_s20, 4   ;;  %s6126_s19 = smov %s6128_s21 }
 0x3c2   :  { %14 = sbr.rel (!%p12_p5) target bundleno = 2 (0x2), region = 73 }

</bundles_post_ra>
